<compile_context>
chip_gen: v6e
topology: v6e:2x2x1
jax: 0.10.0
libtpu: 0.0.40
codegen_flags: <defaults>
</compile_context>

<pallas_src>
import functools
import math

import jax
import jax.numpy as jnp
from jax.experimental import pallas as pl
from jax.experimental.pallas import tpu as pltpu

BN_EPS = 1e-5


# ---------------------------------------------------------------------------
# Pass 1: 3x3 conv (stride 1, pad 1) + per-tile BN partial statistics.
# ---------------------------------------------------------------------------
def conv_stats_kernel(x_ref, w_ref, y_ref, tsum_ref, tm2_ref, *,
                      rows, w_img, cin, cout):
    """One M-tile (`rows` output image rows of one image).

    x_ref:    (slab_rows, Cin)       halo slab, flattened row-major over the
                                     zero-padded (h, w) plane of this tile
    w_ref:    (9*Cin, Cout)          tap-major conv weights
    y_ref:    (rows*(W+2), Cout)     raw conv output (incl. 2 wrap cols/row)
    tsum_ref: (1, Cout)              per-tile sum over valid positions
    tm2_ref:  (1, Cout)              per-tile centered sum of squares
    """
    wp = w_img + 2                 # padded width
    L = rows * wp                  # flattened output positions in this tile

    # 3x3 conv: nine shifted contiguous slices of the halo slab, each feeding
    # an accumulating MXU push.  Slice [i] of tap (dh, dw) is padded-input
    # position (r + dh, c + dw) for i = r*wp + c, so acc[i] is the conv
    # output at (r, c); columns c in {W, W+1} wrap to the next row and are
    # garbage (masked from stats, dropped in pass 2).
    acc = jnp.zeros((L, cout), jnp.float32)
    for dh in range(3):
        for dw in range(3):
            shift = dh * wp + dw
            tap = x_ref[shift:shift + L, :]                       # (L, Cin)
            k0 = (dh * 3 + dw) * cin
            acc = acc + jnp.dot(tap, w_ref[k0:k0 + cin, :],
                                preferred_element_type=jnp.float32)

    y_ref[...] = acc.astype(y_ref.dtype)

    # Per-tile centered BN partials over the valid columns only.
    col = jax.lax.broadcasted_iota(jnp.int32, (L, 1), 0) % wp
    valid = col < w_img
    cnt = float(rows * w_img)
    acc_valid = jnp.where(valid, acc, 0.0)
    tile_sum = jnp.sum(acc_valid, axis=0, keepdims=True)          # (1, Cout)
    tile_mean = tile_sum * (1.0 / cnt)
    centered = jnp.where(valid, acc - tile_mean, 0.0)
    tsum_ref[...] = tile_sum
    tm2_ref[...] = jnp.sum(centered * centered, axis=0, keepdims=True)


# ---------------------------------------------------------------------------
# Pass 2: folded BN (per-channel scale/shift) + ReLU, lane-dense store.
# ---------------------------------------------------------------------------
def bn_relu_kernel(y_ref, scale_ref, shift_ref, o_ref, *, w_cols):
    y = y_ref[:, :w_cols]                       # drop the 2*Cout wrap columns
    o_ref[...] = jnp.maximum(y * scale_ref[...] + shift_ref[...],
                             0.0).astype(o_ref.dtype)


# ---------------------------------------------------------------------------
# Wrapper
# ---------------------------------------------------------------------------
def _largest_divisor_leq(n, cap):
    cap = max(1, min(n, cap))
    best = 1
    for d in range(1, cap + 1):
        if n % d == 0:
            best = d
    return best


def _rows_per_step(total_rows, target):
    """Rows per pass-2 block: divides total_rows; multiple of 8 unless it is
    the full extent (then the (8,128) rule is satisfied by 'equals full dim')."""
    if total_rows <= target:
        return total_rows
    best = None
    d = 8
    while d <= target:
        if total_rows % d == 0:
            best = d
        d += 8
    return best if best is not None else total_rows


def conv_bn_relu(x_nchw, weight_oihw, gamma, beta, *, target_rows=2048):
    """x_nchw: (N, Cin, H, W) f32. Returns (N, Cout, H, W) f32."""
    n, cin, h, w = x_nchw.shape
    cout, _, kh, kw = weight_oihw.shape
    assert (kh, kw) == (3, 3)
    wp = w + 2

    # Output image rows per tile: largest divisor of H keeping the flattened
    # tile (th * (W+2) rows) near the ~2k roofline knee.  Divisor => no
    # padded rows, all tiles have identical valid counts.
    th = _largest_divisor_leq(h, max(1, target_rows // wp))
    n_h = h // th
    n_tiles = n * n_h
    L = th * wp                         # flattened positions per tile
    slab_rows = (th + 2) * wp + 2       # halo slab (+2 for last row's wrap taps)

    # ---- glue: NCHW -> NHWC, zero pad, per-tile halo slabs (~1.1x bytes) ---
    x_nhwc = jnp.transpose(x_nchw, (0, 2, 3, 1)).astype(jnp.float32)
    x_pad = jnp.pad(x_nhwc, ((0, 0), (1, 1), (1, 1), (0, 0)))
    x_flat = x_pad.reshape(n, (h + 2) * wp, cin)
    x_flat = jnp.pad(x_flat, ((0, 0), (0, 2), (0, 0)))
    slabs = jnp.stack(
        [x_flat[img, k * th * wp: k * th * wp + slab_rows, :]
         for img in range(n) for k in range(n_h)], axis=0)        # (T, slab_rows, Cin)

    # weights (Cout, Cin, 3, 3) -> (9*Cin, Cout), tap-major.
    w_mat = jnp.transpose(weight_oihw, (2, 3, 1, 0)).reshape(9 * cin, cout)
    w_mat = w_mat.astype(jnp.float32)

    kernel1 = functools.partial(conv_stats_kernel, rows=th, w_img=w,
                                cin=cin, cout=cout)
    y, tsum, tm2 = pl.pallas_call(
        kernel1,
        out_shape=(
            jax.ShapeDtypeStruct((n_tiles, L, cout), jnp.float32),
            jax.ShapeDtypeStruct((n_tiles, 1, cout), jnp.float32),
            jax.ShapeDtypeStruct((n_tiles, 1, cout), jnp.float32),
        ),
        grid_spec=pltpu.PrefetchScalarGridSpec(
            num_scalar_prefetch=0,
            grid=(n_tiles,),
            in_specs=[
                pl.BlockSpec((None, slab_rows, cin), lambda i: (i, 0, 0)),
                pl.BlockSpec((9 * cin, cout), lambda i: (0, 0)),
            ],
            out_specs=(
                pl.BlockSpec((None, L, cout), lambda i: (i, 0, 0)),
                pl.BlockSpec((None, 1, cout), lambda i: (i, 0, 0)),
                pl.BlockSpec((None, 1, cout), lambda i: (i, 0, 0)),
            ),
        ),
        compiler_params=pltpu.CompilerParams(
            # No cross-tile scratch -> M axis can megacore-shard on v7x.
            dimension_semantics=("parallel",),
            # Budget: 2x(slab + y tile) + weights << 48 MiB for tiles <= ~2k rows;
            # also fits v7x's 64 MiB physical VMEM with headroom.
            vmem_limit_bytes=48 * 1024 * 1024,
        ),
    )(slabs, w_mat)

    # ---- tiny wrapper-side combine of per-tile stats (Chan's algorithm) ----
    sums = tsum.reshape(n_tiles, cout)
    m2s = tm2.reshape(n_tiles, cout)
    cnt_t = float(th * w)
    total = float(n_tiles) * cnt_t                      # = N*H*W
    mean = jnp.sum(sums, axis=0) / total
    tile_mean = sums / cnt_t
    m2 = jnp.sum(m2s, axis=0) + cnt_t * jnp.sum(
        jnp.square(tile_mean - mean[None, :]), axis=0)
    var = m2 / total                                     # biased (training BN)
    scale = gamma.astype(jnp.float32) * jax.lax.rsqrt(var + BN_EPS)
    shift = beta.astype(jnp.float32) - mean * scale

    # Fold W into lanes so the apply pass reads/writes lane-dense rows.
    w_cols = w * cout
    scale_f = jnp.tile(scale, w).reshape(1, w_cols)
    shift_f = jnp.tile(shift, w).reshape(1, w_cols)
    y2 = y.reshape(n_tiles * th, wp * cout)              # free row-major reshape

    rows_total = n_tiles * th                            # = N*H
    rows_p2 = _rows_per_step(rows_total, target_rows)
    kernel2 = functools.partial(bn_relu_kernel, w_cols=w_cols)
    out2d = pl.pallas_call(
        kernel2,
        out_shape=jax.ShapeDtypeStruct((rows_total, w_cols), jnp.float32),
        grid_spec=pltpu.PrefetchScalarGridSpec(
            num_scalar_prefetch=0,
            grid=(rows_total // rows_p2,),
            in_specs=[
                pl.BlockSpec((rows_p2, wp * cout), lambda i: (i, 0)),
                pl.BlockSpec((1, w_cols), lambda i: (0, 0)),
                pl.BlockSpec((1, w_cols), lambda i: (0, 0)),
            ],
            out_specs=pl.BlockSpec((rows_p2, w_cols), lambda i: (i, 0)),
        ),
        compiler_params=pltpu.CompilerParams(
            dimension_semantics=("parallel",),
            vmem_limit_bytes=48 * 1024 * 1024,
        ),
    )(y2, scale_f, shift_f)

    # ---- glue: back to NCHW -------------------------------------------------
    return jnp.transpose(out2d.reshape(n, h, w, cout), (0, 3, 1, 2))


def reference(x_nchw, weight_oihw, gamma, beta):
    """Pure-JAX reference (conv + training-mode BN + relu) for validation."""
    y = jax.lax.conv_general_dilated(
        x_nchw, weight_oihw, window_strides=(1, 1), padding=((1, 1), (1, 1)),
        dimension_numbers=("NCHW", "OIHW", "NCHW"),
    )
    mean = jnp.mean(y, axis=(0, 2, 3), keepdims=True)
    var = jnp.mean(jnp.square(y - mean), axis=(0, 2, 3), keepdims=True)
    yhat = (y - mean) * jax.lax.rsqrt(var + BN_EPS)
    yhat = yhat * gamma.reshape(1, -1, 1, 1) + beta.reshape(1, -1, 1, 1)
    return jnp.maximum(yhat, 0.0)


if __name__ == "__main__":
    N, CIN, COUT, H, W = 2, 4, 8, 16, 16

    key = jax.random.PRNGKey(0)
    kx, kw = jax.random.split(key)

    x = jax.random.normal(kx, (N, CIN, H, W), dtype=jnp.float32)

    # Conv2d default init: kaiming_uniform(a=sqrt(5)) => U(-1/sqrt(fan_in), +).
    fan_in = CIN * 3 * 3
    bound = 1.0 / math.sqrt(fan_in)
    weight = jax.random.uniform(
        kw, (COUT, CIN, 3, 3), minval=-bound, maxval=bound, dtype=jnp.float32
    )
    # BatchNorm2d default init: gamma = 1, beta = 0.
    gamma = jnp.ones((COUT,), jnp.float32)
    beta = jnp.zeros((COUT,), jnp.float32)

    run = jax.jit(conv_bn_relu)
    out = jax.block_until_ready(run(x, weight, gamma, beta))

    ref = jax.block_until_ready(reference(x, weight, gamma, beta))
    assert out.shape == (N, COUT, H, W)
    assert jnp.allclose(out, ref, atol=1e-4, rtol=1e-4), "mismatch vs reference"

    print("KERNEL_OK")
</pallas_src>

<mosaic_0001>
module attributes {stable_mosaic.version = 11 : i64} {
  func.func @conv_stats_kernel(%arg0: i32, %arg1: memref<1x326x4xf32, #tpu.memory_space<vmem>>, %arg2: memref<36x8xf32, #tpu.memory_space<vmem>>, %arg3: memref<1x288x8xf32, #tpu.memory_space<vmem>>, %arg4: memref<1x1x8xf32, #tpu.memory_space<vmem>>, %arg5: memref<1x1x8xf32, #tpu.memory_space<vmem>>) attributes {dimension_semantics = [#tpu.dimension_semantics<parallel>], iteration_bounds = array<i64: 2>, scalar_prefetch = 0 : i64, scratch_operands = 0 : i64, tpu.core_type = #tpu.core_type<tc>, window_params = [{transform_indices = @transform_0, window_bounds = array<i64: 1, 326, 4>}, {pipeline_mode = #tpu.pipeline_mode<synchronous>, transform_indices = @transform_1, window_bounds = array<i64: 36, 8>}, {transform_indices = @transform_2, window_bounds = array<i64: 1, 288, 8>}, {transform_indices = @transform_3, window_bounds = array<i64: 1, 1, 8>}, {transform_indices = @transform_4, window_bounds = array<i64: 1, 1, 8>}]} {
    %cst = arith.constant 0.000000e+00 : f32
    %0 = vector.broadcast %cst : f32 to vector<288x8xf32>
    %c0 = arith.constant 0 : index
    %c0_0 = arith.constant 0 : index
    %c0_1 = arith.constant 0 : index
    %1 = vector.load %arg1[%c0, %c0_0, %c0_1] : memref<1x326x4xf32, #tpu.memory_space<vmem>>, vector<1x288x4xf32>
    %2 = vector.shape_cast %1 : vector<1x288x4xf32> to vector<288x4xf32>
    %c0_2 = arith.constant 0 : index
    %c0_3 = arith.constant 0 : index
    %3 = vector.load %arg2[%c0_2, %c0_3] : memref<36x8xf32, #tpu.memory_space<vmem>>, vector<4x8xf32>
    %cst_4 = arith.constant dense<0.000000e+00> : vector<288x8xf32>
    %4 = tpu.matmul %2, %3, %cst_4 {dimension_numbers = #tpu.dot_dimension_numbers<[1], [0], [0], [1], [0, 0, 1, 1], [], []>} : vector<288x4xf32>, vector<4x8xf32>, vector<288x8xf32> -> vector<288x8xf32>
    %5 = arith.addf %0, %4 : vector<288x8xf32>
    %c0_5 = arith.constant 0 : index
    %c1 = arith.constant 1 : index
    %c0_6 = arith.constant 0 : index
    %6 = vector.load %arg1[%c0_5, %c1, %c0_6] : memref<1x326x4xf32, #tpu.memory_space<vmem>>, vector<1x288x4xf32>
    %7 = vector.shape_cast %6 : vector<1x288x4xf32> to vector<288x4xf32>
    %c4 = arith.constant 4 : index
    %c0_7 = arith.constant 0 : index
    %8 = vector.load %arg2[%c4, %c0_7] : memref<36x8xf32, #tpu.memory_space<vmem>>, vector<4x8xf32>
    %cst_8 = arith.constant dense<0.000000e+00> : vector<288x8xf32>
    %9 = tpu.matmul %7, %8, %cst_8 {dimension_numbers = #tpu.dot_dimension_numbers<[1], [0], [0], [1], [0, 0, 1, 1], [], []>} : vector<288x4xf32>, vector<4x8xf32>, vector<288x8xf32> -> vector<288x8xf32>
    %10 = arith.addf %5, %9 : vector<288x8xf32>
    %c0_9 = arith.constant 0 : index
    %c2 = arith.constant 2 : index
    %c0_10 = arith.constant 0 : index
    %11 = vector.load %arg1[%c0_9, %c2, %c0_10] : memref<1x326x4xf32, #tpu.memory_space<vmem>>, vector<1x288x4xf32>
    %12 = vector.shape_cast %11 : vector<1x288x4xf32> to vector<288x4xf32>
    %c8 = arith.constant 8 : index
    %c0_11 = arith.constant 0 : index
    %13 = vector.load %arg2[%c8, %c0_11] : memref<36x8xf32, #tpu.memory_space<vmem>>, vector<4x8xf32>
    %cst_12 = arith.constant dense<0.000000e+00> : vector<288x8xf32>
    %14 = tpu.matmul %12, %13, %cst_12 {dimension_numbers = #tpu.dot_dimension_numbers<[1], [0], [0], [1], [0, 0, 1, 1], [], []>} : vector<288x4xf32>, vector<4x8xf32>, vector<288x8xf32> -> vector<288x8xf32>
    %15 = arith.addf %10, %14 : vector<288x8xf32>
    %c0_13 = arith.constant 0 : index
    %c18 = arith.constant 18 : index
    %c0_14 = arith.constant 0 : index
    %16 = vector.load %arg1[%c0_13, %c18, %c0_14] : memref<1x326x4xf32, #tpu.memory_space<vmem>>, vector<1x288x4xf32>
    %17 = vector.shape_cast %16 : vector<1x288x4xf32> to vector<288x4xf32>
    %c12 = arith.constant 12 : index
    %c0_15 = arith.constant 0 : index
    %18 = vector.load %arg2[%c12, %c0_15] : memref<36x8xf32, #tpu.memory_space<vmem>>, vector<4x8xf32>
    %cst_16 = arith.constant dense<0.000000e+00> : vector<288x8xf32>
    %19 = tpu.matmul %17, %18, %cst_16 {dimension_numbers = #tpu.dot_dimension_numbers<[1], [0], [0], [1], [0, 0, 1, 1], [], []>} : vector<288x4xf32>, vector<4x8xf32>, vector<288x8xf32> -> vector<288x8xf32>
    %20 = arith.addf %15, %19 : vector<288x8xf32>
    %c0_17 = arith.constant 0 : index
    %c19 = arith.constant 19 : index
    %c0_18 = arith.constant 0 : index
    %21 = vector.load %arg1[%c0_17, %c19, %c0_18] : memref<1x326x4xf32, #tpu.memory_space<vmem>>, vector<1x288x4xf32>
    %22 = vector.shape_cast %21 : vector<1x288x4xf32> to vector<288x4xf32>
    %c16 = arith.constant 16 : index
    %c0_19 = arith.constant 0 : index
    %23 = vector.load %arg2[%c16, %c0_19] : memref<36x8xf32, #tpu.memory_space<vmem>>, vector<4x8xf32>
    %cst_20 = arith.constant dense<0.000000e+00> : vector<288x8xf32>
    %24 = tpu.matmul %22, %23, %cst_20 {dimension_numbers = #tpu.dot_dimension_numbers<[1], [0], [0], [1], [0, 0, 1, 1], [], []>} : vector<288x4xf32>, vector<4x8xf32>, vector<288x8xf32> -> vector<288x8xf32>
    %25 = arith.addf %20, %24 : vector<288x8xf32>
    %c0_21 = arith.constant 0 : index
    %c20 = arith.constant 20 : index
    %c0_22 = arith.constant 0 : index
    %26 = vector.load %arg1[%c0_21, %c20, %c0_22] : memref<1x326x4xf32, #tpu.memory_space<vmem>>, vector<1x288x4xf32>
    %27 = vector.shape_cast %26 : vector<1x288x4xf32> to vector<288x4xf32>
    %c20_23 = arith.constant 20 : index
    %c0_24 = arith.constant 0 : index
    %28 = vector.load %arg2[%c20_23, %c0_24] : memref<36x8xf32, #tpu.memory_space<vmem>>, vector<4x8xf32>
    %cst_25 = arith.constant dense<0.000000e+00> : vector<288x8xf32>
    %29 = tpu.matmul %27, %28, %cst_25 {dimension_numbers = #tpu.dot_dimension_numbers<[1], [0], [0], [1], [0, 0, 1, 1], [], []>} : vector<288x4xf32>, vector<4x8xf32>, vector<288x8xf32> -> vector<288x8xf32>
    %30 = arith.addf %25, %29 : vector<288x8xf32>
    %c0_26 = arith.constant 0 : index
    %c36 = arith.constant 36 : index
    %c0_27 = arith.constant 0 : index
    %31 = vector.load %arg1[%c0_26, %c36, %c0_27] : memref<1x326x4xf32, #tpu.memory_space<vmem>>, vector<1x288x4xf32>
    %32 = vector.shape_cast %31 : vector<1x288x4xf32> to vector<288x4xf32>
    %c24 = arith.constant 24 : index
    %c0_28 = arith.constant 0 : index
    %33 = vector.load %arg2[%c24, %c0_28] : memref<36x8xf32, #tpu.memory_space<vmem>>, vector<4x8xf32>
    %cst_29 = arith.constant dense<0.000000e+00> : vector<288x8xf32>
    %34 = tpu.matmul %32, %33, %cst_29 {dimension_numbers = #tpu.dot_dimension_numbers<[1], [0], [0], [1], [0, 0, 1, 1], [], []>} : vector<288x4xf32>, vector<4x8xf32>, vector<288x8xf32> -> vector<288x8xf32>
    %35 = arith.addf %30, %34 : vector<288x8xf32>
    %c0_30 = arith.constant 0 : index
    %c37 = arith.constant 37 : index
    %c0_31 = arith.constant 0 : index
    %36 = vector.load %arg1[%c0_30, %c37, %c0_31] : memref<1x326x4xf32, #tpu.memory_space<vmem>>, vector<1x288x4xf32>
    %37 = vector.shape_cast %36 : vector<1x288x4xf32> to vector<288x4xf32>
    %c28 = arith.constant 28 : index
    %c0_32 = arith.constant 0 : index
    %38 = vector.load %arg2[%c28, %c0_32] : memref<36x8xf32, #tpu.memory_space<vmem>>, vector<4x8xf32>
    %cst_33 = arith.constant dense<0.000000e+00> : vector<288x8xf32>
    %39 = tpu.matmul %37, %38, %cst_33 {dimension_numbers = #tpu.dot_dimension_numbers<[1], [0], [0], [1], [0, 0, 1, 1], [], []>} : vector<288x4xf32>, vector<4x8xf32>, vector<288x8xf32> -> vector<288x8xf32>
    %40 = arith.addf %35, %39 : vector<288x8xf32>
    %c0_34 = arith.constant 0 : index
    %c38 = arith.constant 38 : index
    %c0_35 = arith.constant 0 : index
    %41 = vector.load %arg1[%c0_34, %c38, %c0_35] : memref<1x326x4xf32, #tpu.memory_space<vmem>>, vector<1x288x4xf32>
    %42 = vector.shape_cast %41 : vector<1x288x4xf32> to vector<288x4xf32>
    %c32 = arith.constant 32 : index
    %c0_36 = arith.constant 0 : index
    %43 = vector.load %arg2[%c32, %c0_36] : memref<36x8xf32, #tpu.memory_space<vmem>>, vector<4x8xf32>
    %cst_37 = arith.constant dense<0.000000e+00> : vector<288x8xf32>
    %44 = tpu.matmul %42, %43, %cst_37 {dimension_numbers = #tpu.dot_dimension_numbers<[1], [0], [0], [1], [0, 0, 1, 1], [], []>} : vector<288x4xf32>, vector<4x8xf32>, vector<288x8xf32> -> vector<288x8xf32>
    %45 = arith.addf %40, %44 : vector<288x8xf32>
    %c0_38 = arith.constant 0 : index
    %c0_39 = arith.constant 0 : index
    %c0_40 = arith.constant 0 : index
    %46 = vector.load %arg3[%c0_38, %c0_39, %c0_40] : memref<1x288x8xf32, #tpu.memory_space<vmem>>, vector<1x288x8xf32>
    %47 = vector.shape_cast %46 : vector<1x288x8xf32> to vector<288x8xf32>
    %48 = vector.shape_cast %45 : vector<288x8xf32> to vector<1x288x8xf32>
    tpu.vector_store %arg3[%c0_38, %c0_39, %c0_40], %48 {strides = array<i32>} : memref<1x288x8xf32, #tpu.memory_space<vmem>>, vector<1x288x8xf32>,
    %49 = tpu.iota {dimensions = array<i32: 0>} : vector<288x1xi32>
    %c18_i32 = arith.constant 18 : i32
    %c0_i32 = arith.constant 0 : i32
    %50 = arith.cmpi eq, %c18_i32, %c0_i32 : i32
    %c1_i32 = arith.constant 1 : i32
    %51 = arith.select %50, %c1_i32, %c18_i32 : i32
    %52 = vector.broadcast %51 : i32 to vector<288x1xi32>
    %53 = arith.remsi %49, %52 : vector<288x1xi32>
    %c0_i32_41 = arith.constant 0 : i32
    %54 = vector.broadcast %c0_i32_41 : i32 to vector<288x1xi32>
    %55 = arith.cmpi ne, %53, %54 : vector<288x1xi32>
    %c0_i32_42 = arith.constant 0 : i32
    %56 = vector.broadcast %c0_i32_42 : i32 to vector<288x1xi32>
    %57 = arith.cmpi slt, %53, %56 : vector<288x1xi32>
    %c0_i32_43 = arith.constant 0 : i32
    %58 = arith.cmpi slt, %51, %c0_i32_43 : i32
    %59 = vector.broadcast %58 : i1 to vector<288x1xi1>
    %60 = vector.broadcast %59 : vector<288x1xi1> to vector<288x1xi1>
    %61 = arith.xori %57, %60 : vector<288x1xi1>
    %62 = arith.andi %61, %55 : vector<288x1xi1>
    %63 = vector.broadcast %51 : i32 to vector<288x1xi32>
    %64 = arith.addi %53, %63 : vector<288x1xi32>
    %65 = arith.select %62, %64, %53 : vector<288x1xi1>, vector<288x1xi32>
    %c16_i32 = arith.constant 16 : i32
    %66 = vector.broadcast %c16_i32 : i32 to vector<288x1xi32>
    %67 = arith.cmpi slt, %65, %66 : vector<288x1xi32>
    %cst_44 = arith.constant 0.000000e+00 : f32
    %68 = vector.shape_cast %67 : vector<288x1xi1> to vector<288x1xi1>
    %69 = vector.broadcast %68 : vector<288x1xi1> to vector<288x8xi1>
    %70 = vector.broadcast %cst_44 : f32 to vector<288x8xf32>
    %71 = arith.select %69, %45, %70 : vector<288x8xi1>, vector<288x8xf32>
    %cst_45 = arith.constant dense<0.000000e+00> : vector<8xf32>
    %72 = vector.multi_reduction <add>, %71, %cst_45 [0] : vector<288x8xf32> to vector<8xf32>
    %73 = vector.shape_cast %72 : vector<8xf32> to vector<1x8xf32>
    %cst_46 = arith.constant 3.906250e-03 : f32
    %74 = vector.broadcast %cst_46 : f32 to vector<1x8xf32>
    %75 = arith.mulf %73, %74 : vector<1x8xf32>
    %76 = vector.broadcast %75 : vector<1x8xf32> to vector<288x8xf32>
    %77 = arith.subf %45, %76 : vector<288x8xf32>
    %cst_47 = arith.constant 0.000000e+00 : f32
    %78 = vector.shape_cast %67 : vector<288x1xi1> to vector<288x1xi1>
    %79 = vector.broadcast %78 : vector<288x1xi1> to vector<288x8xi1>
    %80 = vector.broadcast %cst_47 : f32 to vector<288x8xf32>
    %81 = arith.select %79, %77, %80 : vector<288x8xi1>, vector<288x8xf32>
    %c0_48 = arith.constant 0 : index
    %c0_49 = arith.constant 0 : index
    %c0_50 = arith.constant 0 : index
    %82 = vector.load %arg4[%c0_48, %c0_49, %c0_50] : memref<1x1x8xf32, #tpu.memory_space<vmem>>, vector<1x1x8xf32>
    %83 = vector.shape_cast %82 : vector<1x1x8xf32> to vector<1x8xf32>
    %84 = vector.shape_cast %73 : vector<1x8xf32> to vector<1x1x8xf32>
    tpu.vector_store %arg4[%c0_48, %c0_49, %c0_50], %84 {strides = array<i32>} : memref<1x1x8xf32, #tpu.memory_space<vmem>>, vector<1x1x8xf32>,
    %85 = arith.mulf %81, %81 : vector<288x8xf32>
    %cst_51 = arith.constant dense<0.000000e+00> : vector<8xf32>
    %86 = vector.multi_reduction <add>, %85, %cst_51 [0] : vector<288x8xf32> to vector<8xf32>
    %87 = vector.shape_cast %86 : vector<8xf32> to vector<1x8xf32>
    %c0_52 = arith.constant 0 : index
    %c0_53 = arith.constant 0 : index
    %c0_54 = arith.constant 0 : index
    %88 = vector.load %arg5[%c0_52, %c0_53, %c0_54] : memref<1x1x8xf32, #tpu.memory_space<vmem>>, vector<1x1x8xf32>
    %89 = vector.shape_cast %88 : vector<1x1x8xf32> to vector<1x8xf32>
    %90 = vector.shape_cast %87 : vector<1x8xf32> to vector<1x1x8xf32>
    tpu.vector_store %arg5[%c0_52, %c0_53, %c0_54], %90 {strides = array<i32>} : memref<1x1x8xf32, #tpu.memory_space<vmem>>, vector<1x1x8xf32>,
    return
  }
  func.func @transform_0(%arg0: i32) -> (i32, i32, i32) {
    %c0_i32 = arith.constant 0 : i32
    %c0_i32_0 = arith.constant 0 : i32
    %c0_i32_1 = arith.constant 0 : i32
    return %arg0, %c0_i32, %c0_i32_0 : i32, i32, i32
  }
  func.func @transform_1(%arg0: i32) -> (i32, i32) {
    %c0_i32 = arith.constant 0 : i32
    %c0_i32_0 = arith.constant 0 : i32
    %c0_i32_1 = arith.constant 0 : i32
    return %c0_i32, %c0_i32_0 : i32, i32
  }
  func.func @transform_2(%arg0: i32) -> (i32, i32, i32) {
    %c0_i32 = arith.constant 0 : i32
    %c0_i32_0 = arith.constant 0 : i32
    %c0_i32_1 = arith.constant 0 : i32
    return %arg0, %c0_i32, %c0_i32_0 : i32, i32, i32
  }
  func.func @transform_3(%arg0: i32) -> (i32, i32, i32) {
    %c0_i32 = arith.constant 0 : i32
    %c0_i32_0 = arith.constant 0 : i32
    %c0_i32_1 = arith.constant 0 : i32
    return %arg0, %c0_i32, %c0_i32_0 : i32, i32, i32
  }
  func.func @transform_4(%arg0: i32) -> (i32, i32, i32) {
    %c0_i32 = arith.constant 0 : i32
    %c0_i32_0 = arith.constant 0 : i32
    %c0_i32_1 = arith.constant 0 : i32
    return %arg0, %c0_i32, %c0_i32_0 : i32, i32, i32
  }
}

module attributes {stable_mosaic.version = 11 : i64} {
  func.func @bn_relu_kernel(%arg0: i32, %arg1: memref<32x144xf32, #tpu.memory_space<vmem>>, %arg2: memref<1x128xf32, #tpu.memory_space<vmem>>, %arg3: memref<1x128xf32, #tpu.memory_space<vmem>>, %arg4: memref<32x128xf32, #tpu.memory_space<vmem>>) attributes {dimension_semantics = [#tpu.dimension_semantics<parallel>], iteration_bounds = array<i64: 1>, scalar_prefetch = 0 : i64, scratch_operands = 0 : i64, tpu.core_type = #tpu.core_type<tc>, window_params = [{transform_indices = @transform_0, window_bounds = array<i64: 32, 144>}, {pipeline_mode = #tpu.pipeline_mode<synchronous>, transform_indices = @transform_1, window_bounds = array<i64: 1, 128>}, {pipeline_mode = #tpu.pipeline_mode<synchronous>, transform_indices = @transform_2, window_bounds = array<i64: 1, 128>}, {transform_indices = @transform_3, window_bounds = array<i64: 32, 128>}]} {
    %c0 = arith.constant 0 : index
    %c0_0 = arith.constant 0 : index
    %0 = vector.load %arg1[%c0, %c0_0] : memref<32x144xf32, #tpu.memory_space<vmem>>, vector<32x128xf32>
    %c0_1 = arith.constant 0 : index
    %c0_2 = arith.constant 0 : index
    %1 = vector.load %arg2[%c0_1, %c0_2] : memref<1x128xf32, #tpu.memory_space<vmem>>, vector<1x128xf32>
    %2 = vector.broadcast %1 : vector<1x128xf32> to vector<32x128xf32>
    %3 = arith.mulf %0, %2 : vector<32x128xf32>
    %c0_3 = arith.constant 0 : index
    %c0_4 = arith.constant 0 : index
    %4 = vector.load %arg3[%c0_3, %c0_4] : memref<1x128xf32, #tpu.memory_space<vmem>>, vector<1x128xf32>
    %5 = vector.broadcast %4 : vector<1x128xf32> to vector<32x128xf32>
    %6 = arith.addf %3, %5 : vector<32x128xf32>
    %cst = arith.constant 0.000000e+00 : f32
    %7 = vector.broadcast %cst : f32 to vector<32x128xf32>
    %8 = arith.maximumf %6, %7 : vector<32x128xf32>
    %c0_5 = arith.constant 0 : index
    %c0_6 = arith.constant 0 : index
    %9 = vector.load %arg4[%c0_5, %c0_6] : memref<32x128xf32, #tpu.memory_space<vmem>>, vector<32x128xf32>
    tpu.vector_store %arg4[%c0_5, %c0_6], %8 {strides = array<i32>} : memref<32x128xf32, #tpu.memory_space<vmem>>, vector<32x128xf32>,
    return
  }
  func.func @transform_0(%arg0: i32) -> (i32, i32) {
    %c0_i32 = arith.constant 0 : i32
    %c0_i32_0 = arith.constant 0 : i32
    return %arg0, %c0_i32 : i32, i32
  }
  func.func @transform_1(%arg0: i32) -> (i32, i32) {
    %c0_i32 = arith.constant 0 : i32
    %c0_i32_0 = arith.constant 0 : i32
    %c0_i32_1 = arith.constant 0 : i32
    return %c0_i32, %c0_i32_0 : i32, i32
  }
  func.func @transform_2(%arg0: i32) -> (i32, i32) {
    %c0_i32 = arith.constant 0 : i32
    %c0_i32_0 = arith.constant 0 : i32
    %c0_i32_1 = arith.constant 0 : i32
    return %c0_i32, %c0_i32_0 : i32, i32
  }
  func.func @transform_3(%arg0: i32) -> (i32, i32) {
    %c0_i32 = arith.constant 0 : i32
    %c0_i32_0 = arith.constant 0 : i32
    return %arg0, %c0_i32 : i32, i32
  }
}

</mosaic_0001>

<bundles_post_ra>
// kernel: tile.13
= control target key start
LH: loop header
LB: loop body
LE: loop exit
PB: predicated region body
PF: predicated region fallthrough
CT: control target
= control target key end

     0   :  { %s28_s0 = inlined_call_operand.vmem [shape: f32[8], index: 0, kind: input, shape index: {}]   ;;  %s29_s1 = inlined_call_operand.vmem [shape: f32[16,8], index: 1, kind: output, shape index: {}]  }
   0x1   :  { %v4_v0 = vld [vmem:[%s28_s0] ss:$0 sm:$0xff] }
   0x2   :  { %5 = vst [vmem:[%s29_s1] sm:$0xff] %v4_v0  ;;  %8 = vst [vmem:[%s29_s1 + $0x8] sm:$0xff] %v4_v0 }

// kernel: tile.14
= control target key start
LH: loop header
LB: loop body
LE: loop exit
PB: predicated region body
PF: predicated region fallthrough
CT: control target
= control target key end

     0   :  { %s133_s10 = smov 120   ;;  %s134_s11 = smov 104   ;;  %vm3_vm0 = vcmask 64512   ;;  %vm9_vm1 = vcmask 1048512   ;;  %vm15_vm2 = vcmask 982912   ;;  %vm21_vm3 = vcmask 917312   ;;  %s209_s0 = inlined_call_operand.vmem [shape: f32[16,8], index: 0, kind: input, shape index: {}]   ;;  %s210_s1 = inlined_call_operand.vmem [shape: f32[1,128], index: 1, kind: output, shape index: {}]  }
   0x1   :  { %v103_v0 = vld [vmem:[%s209_s0 + $0xf] sm:$0x1]   ;;  %v105_v1 = vld [vmem:[%s209_s0 + $0xd] sm:$0x1]   ;;  %v104_v2 = vld [vmem:[%s209_s0 + $0xe] sm:$0x1]  }
   0x2   :  { %7 = vrot.lane.b32.xlu0 %v103_v0, %s133_s10  ;;  %19 = vrot.lane.b32.xlu1 %v105_v1, %s134_s11  ;;  %v106_v3 = vld [vmem:[%s209_s0 + $0xc] sm:$0x1]   ;;  %s135_s16 = smov 112   ;;  %s136_s17 = smov 96   ;;  %v107_v4 = vld [vmem:[%s209_s0 + $0xb] sm:$0x1]  }
   0x3   :  { %v108_v5 = vld [vmem:[%s209_s0 + $0xa] sm:$0x1]   ;;  %v2_v6 = vld [vmem:[%s209_s0] sm:$0x1]   ;;  %s137_s24 = smov 88   ;;  %s138_s25 = smov 80  }
   0x4   :  { %4 = vst.msk [vmem:[#allocation0] sm:$0x1] %vm3_vm0, %v2_v6   ;;  %v109_v7 = vld [vmem:[%s209_s0 + $0x9] sm:$0x1]   ;;  %v110_v8 = vld [vmem:[%s209_s0 + $0x8] sm:$0x1]  }
   0x5   :  { %s139_s30 = smov 72   ;;  %s140_s2 = smov 64   ;;  %v111_v9 = vld [vmem:[%s209_s0 + $0x7] sm:$0x1]   ;;  %v112_v10 = vld [vmem:[%s209_s0 + $0x6] sm:$0x1]  }
   0x6   :  { %13 = vrot.lane.b32.xlu0 %v104_v2, %s135_s16  ;;  %25 = vrot.lane.b32.xlu1 %v106_v3, %s136_s17  ;;  %s141_s7 = smov 56   ;;  %s142_s8 = smov 48   ;;  %v113_v11 = vld [vmem:[%s209_s0 + $0x5] sm:$0x1]   ;;  %v114_v12 = vld [vmem:[%s209_s0 + $0x4] sm:$0x1]  }
   0x7   :  { %s143_s13 = smov 40   ;;  %s144_s14 = smov 32   ;;  %v115_v13 = vld [vmem:[%s209_s0 + $0x3] sm:$0x1]   ;;  %v116_v14 = vld [vmem:[%s209_s0 + $0x2] sm:$0x1]  }
   0x8   :  { %s145_s19 = smov 24   ;;  %s146_s20 = smov 16   ;;  %v117_v15 = vld [vmem:[%s209_s0 + $0x1] sm:$0x1]   ;;  %vm27_vm4 = vcmask 851712   ;;  %vm33_vm5 = vcmask 786112  }
   0x9   :  { %s147_s0 = smov 8   ;;  %vm39_vm6 = vcmask 720512   ;;  %vm45_vm7 = vcmask 654912   ;;  %vm51_vm8 = vcmask 589312   ;;  %vm57_vm9 = vcmask 523712  }
   0xa   :  { %31 = vrot.lane.b32.xlu0 %v107_v4, %s137_s24  ;;  %37 = vrot.lane.b32.xlu1 %v108_v5, %s138_s25  ;;  %vm63_vm10 = vcmask 458112   ;;  %vm69_vm11 = vcmask 392512   ;;  %vm75_vm12 = vcmask 326912   ;;  %vm81_vm13 = vcmask 261312  }
   0xb   :  { %vm87_vm14 = vcmask 195712   ;;  %vm93_vm15 = vcmask 130112  }
   0xe   :  { %43 = vrot.lane.b32.xlu0 %v109_v7, %s139_s30  ;;  %49 = vrot.lane.b32.xlu1 %v110_v8, %s140_s2 }
  0x12   :  { %55 = vrot.lane.b32.xlu0 %v111_v9, %s141_s7  ;;  %61 = vrot.lane.b32.xlu1 %v112_v10, %s142_s8 }
  0x16   :  { %67 = vrot.lane.b32.xlu0 %v113_v11, %s143_s13  ;;  %73 = vrot.lane.b32.xlu1 %v114_v12, %s144_s14 }
  0x1a   :  { %79 = vrot.lane.b32.xlu0 %v115_v13, %s145_s19  ;;  %85 = vrot.lane.b32.xlu1 %v116_v14, %s146_s20 }
  0x1e   :  { %91 = vrot.lane.b32.xlu0 %v117_v15, %s147_s0 }
  0x74   :  { %v8_v16 = vpop.permute.xlu0 %7   ;;  %v20_v17 = vpop.permute.xlu1 %19  }
  0x75   :  { %10 = vst.msk [vmem:[#allocation0] sm:$0x1] %vm9_vm1, %v8_v16  }
  0x78   :  { %v14_v18 = vpop.permute.xlu0 %13   ;;  %v26_v19 = vpop.permute.xlu1 %25  }
  0x79   :  { %16 = vst.msk [vmem:[#allocation0] sm:$0x1] %vm15_vm2, %v14_v18  }
  0x7a   :  { %22 = vst.msk [vmem:[#allocation0] sm:$0x1] %vm21_vm3, %v20_v17  }
  0x7b   :  { %28 = vst.msk [vmem:[#allocation0] sm:$0x1] %vm27_vm4, %v26_v19  }
  0x7c   :  { %v32_v20 = vpop.permute.xlu0 %31   ;;  %v38_v21 = vpop.permute.xlu1 %37  }
  0x7d   :  { %34 = vst.msk [vmem:[#allocation0] sm:$0x1] %vm33_vm5, %v32_v20  }
  0x7e   :  { %40 = vst.msk [vmem:[#allocation0] sm:$0x1] %vm39_vm6, %v38_v21  }
  0x80   :  { %v44_v22 = vpop.permute.xlu0 %43   ;;  %v50_v23 = vpop.permute.xlu1 %49  }
  0x81   :  { %46 = vst.msk [vmem:[#allocation0] sm:$0x1] %vm45_vm7, %v44_v22  }
  0x82   :  { %52 = vst.msk [vmem:[#allocation0] sm:$0x1] %vm51_vm8, %v50_v23  }
  0x84   :  { %v56_v24 = vpop.permute.xlu0 %55   ;;  %v62_v25 = vpop.permute.xlu1 %61  }
  0x85   :  { %58 = vst.msk [vmem:[#allocation0] sm:$0x1] %vm57_vm9, %v56_v24  }
  0x86   :  { %64 = vst.msk [vmem:[#allocation0] sm:$0x1] %vm63_vm10, %v62_v25  }
  0x88   :  { %v68_v26 = vpop.permute.xlu0 %67   ;;  %v74_v27 = vpop.permute.xlu1 %73  }
  0x89   :  { %70 = vst.msk [vmem:[#allocation0] sm:$0x1] %vm69_vm11, %v68_v26  }
  0x8a   :  { %76 = vst.msk [vmem:[#allocation0] sm:$0x1] %vm75_vm12, %v74_v27  }
  0x8c   :  { %v80_v28 = vpop.permute.xlu0 %79   ;;  %v86_v29 = vpop.permute.xlu1 %85  }
  0x8d   :  { %82 = vst.msk [vmem:[#allocation0] sm:$0x1] %vm81_vm13, %v80_v28  }
  0x8e   :  { %88 = vst.msk [vmem:[#allocation0] sm:$0x1] %vm87_vm14, %v86_v29  }
  0x90   :  { %v92_v30 = vpop.permute.xlu0 %91  }
  0x91   :  { %94 = vst.msk [vmem:[#allocation0] sm:$0x1] %vm93_vm15, %v92_v30  }
  0x98   :  { %v99_v31 = vld [vmem:[#allocation0] sm:$0x1] }
  0x99   :  { %102 = vst [vmem:[%s210_s1] sm:$0x1] %v99_v31 }

// kernel: conv_bn_relu.3
= control target key start
LH: loop header
LB: loop body
LE: loop exit
PB: predicated region body
PF: predicated region fallthrough
CT: control target
= control target key end

     0   :  { %s104_s0 = inlined_call_operand.vmem [shape: f32[32,144], index: 0, kind: input, shape index: {}]   ;;  %s105_s1 = inlined_call_operand.vmem [shape: f32[1,128], index: 1, kind: input, shape index: {}]   ;;  %s106_s2 = inlined_call_operand.vmem [shape: f32[1,128], index: 2, kind: input, shape index: {}]   ;;  %s107_s3 = inlined_call_operand.vmem [shape: f32[32,128], index: 3, kind: output, shape index: {}]  }
   0x1   :  { %v14_v0 = vld [vmem:[%s104_s0] sm:$0xff]  ;;  %v15_v4 = vld [vmem:[%s104_s0 + $0x10] sm:$0xff] }
   0x2   :  { %v52_v1 = vld [vmem:[%s105_s1] ss:$0 sm:$0xff]  ;;  %v17_v6 = vld [vmem:[%s104_s0 + $0x30] sm:$0xff] }
   0x3   :  { %v53_v2 = vld [vmem:[%s106_s2] ss:$0 sm:$0xff]  ;;  %v25_v3 = vmul.f32 %v52_v1, %v14_v0  ;;  %v26_v7 = vmul.f32 %v52_v1, %v15_v4  ;;  %v28_v9 = vmul.f32 %v52_v1, %v17_v6 }
   0x4   :  { %v16_v5 = vld [vmem:[%s104_s0 + $0x20] sm:$0xff] }
   0x5   :  { %v27_v8 = vmul.f32 %v52_v1, %v16_v5  ;;  %v36_v10 = vadd.f32 %v53_v2, %v25_v3  ;;  %v37_v11 = vadd.f32 %v53_v2, %v26_v7  ;;  %v39_v13 = vadd.f32 %v53_v2, %v28_v9 }
   0x7   :  { %v38_v12 = vadd.f32 %v53_v2, %v27_v8  ;;  %v40_v14 = vmax.f32 %v36_v10, 0.0  ;;  %v41_v15 = vmax.f32 %v37_v11, 0.0  ;;  %v43_v17 = vmax.f32 %v39_v13, 0.0 }
   0x9   :  { %v42_v16 = vmax.f32 %v38_v12, 0.0  ;;  %44 = vst [vmem:[%s107_s3] sm:$0xff] %v40_v14  ;;  %45 = vst [vmem:[%s107_s3 + $0x8] sm:$0xff] %v41_v15 }
   0xa   :  { %47 = vst [vmem:[%s107_s3 + $0x18] sm:$0xff] %v43_v17 }
   0xb   :  { %46 = vst [vmem:[%s107_s3 + $0x10] sm:$0xff] %v42_v16 }

// kernel: conv_bn_relu.2
= control target key start
LH: loop header
LB: loop body
LE: loop exit
PB: predicated region body
PF: predicated region fallthrough
CT: control target
= control target key end

     0   :  { %s6467_s15 = smov 0   ;;  %s9570_s0 = inlined_call_operand.vmem [shape: f32[2,326,4], index: 0, kind: input, shape index: {}]   ;;  %s9571_s1 = inlined_call_operand.vmem [shape: f32[36,8], index: 1, kind: input, shape index: {}]   ;;  %s9572_s2 = inlined_call_operand.vmem [shape: f32[2,288,8], index: 2, kind: output, shape index: {0}]   ;;  %s9573_s3 = inlined_call_operand.vmem [shape: f32[2,1,8], index: 3, kind: output, shape index: {1}]   ;;  %s9574_s4 = inlined_call_operand.vmem [shape: f32[2,1,8], index: 4, kind: output, shape index: {2}]  }
   0x1 LB: > { %s5171_s16 = sadd.s32 4294967295, %s6440_s15   ;;  %p5175_p0 = scmp.ge.s32.totalorder %s6440_s15, 1  ;;  %s6440_s15 = sphi %s6467_s15, %s15_s15  }
   0x2   : > { %p167_p1 = scmp.lt.s32.totalorder %s6440_s15, 3 }
   0x4   : > { %p168_p2 = pnand %p5175_p0, %p167_p1 }
   0x6   : > { %171 = sbr.rel (%p168_p2) target bundleno = 691 (0x2b3), region = 28 }
   0xb   : > { %v288_v0 = vld [vmem:[%s9571_s1 + $0x4] sm:$0xf]  ;;  %vm398_vm0 = vcmask 1043456   ;;  %p199_p3 = scmp.lt.s32.totalorder %s5171_s16, 1  ;;  %v251_v1 = vld [vmem:[%s9571_s1] sm:$0xf] }
   0xc   : > { %6350 = vmatprep.subr.msk.mxu1 %vm398_vm0, %v288_v0  ;;  %5846 = vmatprep.subr.msk.mxu0 %vm398_vm0, %v288_v0  ;;  %v1039_v2 = vld [vmem:[%s9571_s1 + $0x8] sm:$0xf]  ;;  %vm289_vm1 = vcmask 31744   ;;  %v6511_v9 = vld [vmem:[%s9571_s1 + $0xc] sm:$0xf] }
   0xd   : > { %6351 = vmatpush3.msk.msra.mxu1 %vm398_vm0, %v288_v0  ;;  %5847 = vmatpush3.msk.msra.mxu0 %vm398_vm0, %v288_v0  ;;  %s10207_s16 = smov (!%p199_p3, %s5171_s16), 1  ;;  %v6516_v10 = vld [vmem:[%s9571_s1 + $0x10] sm:$0xf]  ;;  %v6601_v47 = vld [vmem:[%s9571_s1 + $0x14] sm:$0xf] }
   0xe   : > { %5902 = vmatprep.subr.msk.mxu1 %vm398_vm0, %v251_v1  ;;  %5958 = vmatprep.subr.msk.mxu0 %vm398_vm0, %v1039_v2  ;;  %s6352_s23 = smul.u32 328, %s10207_s16  ;;  %v6606_v48 = vld [vmem:[%s9571_s1 + $0x18] sm:$0xf]  ;;  %s211_s21 = scalar_lea.vmem %s9573_s3, %s10207_s16 }
   0xf   : > { %s6353_s13 = smul.u32 288, %s10207_s16  ;;  %s214_s24 = scalar_lea.vmem %s9574_s4, %s10207_s16 }
  0x10   : > { %s6496_s26 = scalar_lea.vmem %s9570_s0, %s6352_s23 }
  0x11   : > { %v252_v3 = vld [vmem:[%s6496_s26 + $0x1] sm:$0xff]  ;;  %v270_v4 = vld [vmem:[%s6496_s26 + $0x91] sm:$0xff]  ;;  %v253_v5 = vld [vmem:[%s6496_s26 + $0x9] sm:$0xff]  ;;  %s8364_s18 = scalar_lea.vmem %s9572_s2, %s6353_s13 }
  0x12   : > { %5848 = vmatprep.mubr.msk.f32.mxu0 %vm289_vm1, %v252_v3  ;;  %5875 = vmatprep.mubr.msk.f32.mxu1 %vm289_vm1, %v270_v4  ;;  %v271_v6 = vld [vmem:[%s6496_s26 + $0x99] sm:$0xff]  ;;  %v254_v7 = vld [vmem:[%s6496_s26 + $0x11] sm:$0xff]  ;;  %v272_v8 = vld [vmem:[%s6496_s26 + $0xa1] sm:$0xff] }
  0x13   : > { %5849 = vmatmul.mubr.msk.f32.vlgmr.msra.gmra.mxu0 %vm289_vm1, %v253_v5  ;;  %5876 = vmatmul.mubr.msk.f32.vlgmr.msra.gmra.mxu1 %vm289_vm1, %v271_v6  ;;  %v255_v11 = vld [vmem:[%s6496_s26 + $0x19] sm:$0xff]  ;;  %v273_v12 = vld [vmem:[%s6496_s26 + $0xa9] sm:$0xff]  ;;  %v256_v13 = vld [vmem:[%s6496_s26 + $0x21] sm:$0xff] }
  0x14   : > { %5903 = vmatpush3.msk.msra.mxu1 %vm398_vm0, %v251_v1  ;;  %5959 = vmatpush3.msk.msra.mxu0 %vm398_vm0, %v1039_v2  ;;  %v274_v14 = vld [vmem:[%s6496_s26 + $0xb1] sm:$0xff]  ;;  %v257_v15 = vld [vmem:[%s6496_s26 + $0x29] sm:$0xff]  ;;  %v275_v16 = vld [vmem:[%s6496_s26 + $0xb9] sm:$0xff] }
  0x15   : > { %5851 = vmatprep.mubr.msk.f32.mxu0 %vm289_vm1, %v254_v7  ;;  %5878 = vmatprep.mubr.msk.f32.mxu1 %vm289_vm1, %v272_v8  ;;  %v258_v17 = vld [vmem:[%s6496_s26 + $0x31] sm:$0xff]  ;;  %v276_v18 = vld [vmem:[%s6496_s26 + $0xc1] sm:$0xff]  ;;  %v259_v19 = vld [vmem:[%s6496_s26 + $0x39] sm:$0xff] }
  0x16   : > { %6014 = vmatprep.subr.msk.mxu1 %vm398_vm0, %v6511_v9  ;;  %6070 = vmatprep.subr.msk.mxu0 %vm398_vm0, %v6516_v10  ;;  %v277_v20 = vld [vmem:[%s6496_s26 + $0xc9] sm:$0xff]  ;;  %v260_v21 = vld [vmem:[%s6496_s26 + $0x41] sm:$0xff]  ;;  %v278_v22 = vld [vmem:[%s6496_s26 + $0xd1] sm:$0xff] }
  0x17   : > { %5852 = vmatmul.mubr.msk.f32.gmra.mxu0 %vm289_vm1, %v255_v11  ;;  %5879 = vmatmul.mubr.msk.f32.gmra.mxu1 %vm289_vm1, %v273_v12  ;;  %v261_v23 = vld [vmem:[%s6496_s26 + $0x49] sm:$0xff]  ;;  %v279_v24 = vld [vmem:[%s6496_s26 + $0xd9] sm:$0xff]  ;;  %v262_v25 = vld [vmem:[%s6496_s26 + $0x51] sm:$0xff] }
  0x18   : > { %5854 = vmatprep.mubr.msk.f32.mxu0 %vm289_vm1, %v256_v13  ;;  %5881 = vmatprep.mubr.msk.f32.mxu1 %vm289_vm1, %v274_v14  ;;  %v280_v26 = vld [vmem:[%s6496_s26 + $0xe1] sm:$0xff]  ;;  %v263_v27 = vld [vmem:[%s6496_s26 + $0x59] sm:$0xff]  ;;  %v281_v28 = vld [vmem:[%s6496_s26 + $0xe9] sm:$0xff] }
  0x19   : > { %v264_v29 = vld [vmem:[%s6496_s26 + $0x61] sm:$0xff]  ;;  %v282_v30 = vld [vmem:[%s6496_s26 + $0xf1] sm:$0xff]  ;;  %v265_v31 = vld [vmem:[%s6496_s26 + $0x69] sm:$0xff] }
  0x1a   : > { %v283_v32 = vld [vmem:[%s6496_s26 + $0xf9] sm:$0xff]  ;;  %v266_v33 = vld [vmem:[%s6496_s26 + $0x71] sm:$0xff]  ;;  %v284_v34 = vld [vmem:[%s6496_s26 + $0x101] sm:$0xff] }
  0x1b   : > { %5855 = vmatmul.mubr.msk.f32.gmra.mxu0 %vm289_vm1, %v257_v15  ;;  %5882 = vmatmul.mubr.msk.f32.gmra.mxu1 %vm289_vm1, %v275_v16  ;;  %v267_v35 = vld [vmem:[%s6496_s26 + $0x79] sm:$0xff]  ;;  %v285_v36 = vld [vmem:[%s6496_s26 + $0x109] sm:$0xff]  ;;  %v268_v37 = vld [vmem:[%s6496_s26 + $0x81] sm:$0xff] }
  0x1c   : > { %5857 = vmatprep.mubr.msk.f32.mxu0 %vm289_vm1, %v258_v17  ;;  %5884 = vmatprep.mubr.msk.f32.mxu1 %vm289_vm1, %v276_v18  ;;  %v286_v38 = vld [vmem:[%s6496_s26 + $0x111] sm:$0xff]  ;;  %v269_v39 = vld [vmem:[%s6496_s26 + $0x89] sm:$0xff]  ;;  %v287_v40 = vld [vmem:[%s6496_s26 + $0x119] sm:$0xff] }
  0x1d   : > { %v215_v41 = vld [vmem:[%s6496_s26] sm:$0xff]  ;;  %v216_v43 = vld [vmem:[%s6496_s26 + $0x8] sm:$0xff]  ;;  %v217_v45 = vld [vmem:[%s6496_s26 + $0x10] sm:$0xff] }
  0x1e   : > { %v1003_v42 = vld [vmem:[%s6496_s26 + $0x2] sm:$0xff]  ;;  %v1004_v44 = vld [vmem:[%s6496_s26 + $0xa] sm:$0xff]  ;;  %v6594_v46 = vld [vmem:[%s6496_s26 + $0x12] sm:$0xff] }
  0x1f   : > { %5858 = vmatmul.mubr.msk.f32.gmra.mxu0 %vm289_vm1, %v259_v19  ;;  %5885 = vmatmul.mubr.msk.f32.gmra.mxu1 %vm289_vm1, %v277_v20  ;;  %v218_v49 = vld [vmem:[%s6496_s26 + $0x18] sm:$0xff]  ;;  %v219_v51 = vld [vmem:[%s6496_s26 + $0x20] sm:$0xff]  ;;  %v220_v53 = vld [vmem:[%s6496_s26 + $0x28] sm:$0xff] }
  0x20   : > { %5860 = vmatprep.mubr.msk.f32.mxu0 %vm289_vm1, %v260_v21  ;;  %5887 = vmatprep.mubr.msk.f32.mxu1 %vm289_vm1, %v278_v22  ;;  %v6614_v50 = vld [vmem:[%s6496_s26 + $0x1a] sm:$0xff]  ;;  %v6621_v52 = vld [vmem:[%s6496_s26 + $0x22] sm:$0xff]  ;;  %v6635_v54 = vld [vmem:[%s6496_s26 + $0x2a] sm:$0xff] }
  0x21   : > { %v221_v55 = vld [vmem:[%s6496_s26 + $0x30] sm:$0xff]  ;;  %v222_v57 = vld [vmem:[%s6496_s26 + $0x38] sm:$0xff]  ;;  %v223_v59 = vld [vmem:[%s6496_s26 + $0x40] sm:$0xff] }
  0x22   : > { %v6639_v56 = vld [vmem:[%s6496_s26 + $0x32] sm:$0xff]  ;;  %v6649_v58 = vld [vmem:[%s6496_s26 + $0x3a] sm:$0xff]  ;;  %v6653_v60 = vld [vmem:[%s6496_s26 + $0x42] sm:$0xff] }
  0x23   : > { %5861 = vmatmul.mubr.msk.f32.gmra.mxu0 %vm289_vm1, %v261_v23  ;;  %5888 = vmatmul.mubr.msk.f32.gmra.mxu1 %vm289_vm1, %v279_v24  ;;  %v224_v61 = vld [vmem:[%s6496_s26 + $0x48] sm:$0xff]  ;;  %v225_v63 = vld [vmem:[%s6496_s26 + $0x50] sm:$0xff]  ;;  %v226_v1 = vld [vmem:[%s6496_s26 + $0x58] sm:$0xff] }
  0x24   : > { %5863 = vmatprep.mubr.msk.f32.mxu0 %vm289_vm1, %v262_v25  ;;  %5890 = vmatprep.mubr.msk.f32.mxu1 %vm289_vm1, %v280_v26  ;;  %v6663_v62 = vld [vmem:[%s6496_s26 + $0x4a] sm:$0xff]  ;;  %v6667_v0 = vld [vmem:[%s6496_s26 + $0x52] sm:$0xff]  ;;  %v6677_v2 = vld [vmem:[%s6496_s26 + $0x5a] sm:$0xff] }
  0x25   : > { %v227_v3 = vld [vmem:[%s6496_s26 + $0x60] sm:$0xff]  ;;  %v228_v5 = vld [vmem:[%s6496_s26 + $0x68] sm:$0xff]  ;;  %v229_v7 = vld [vmem:[%s6496_s26 + $0x70] sm:$0xff] }
  0x26   : > { %v6681_v4 = vld [vmem:[%s6496_s26 + $0x62] sm:$0xff]  ;;  %v6691_v6 = vld [vmem:[%s6496_s26 + $0x6a] sm:$0xff]  ;;  %v6695_v8 = vld [vmem:[%s6496_s26 + $0x72] sm:$0xff] }
  0x27   : > { %5864 = vmatmul.mubr.msk.f32.gmra.mxu0 %vm289_vm1, %v263_v27  ;;  %5891 = vmatmul.mubr.msk.f32.gmra.mxu1 %vm289_vm1, %v281_v28  ;;  %v231_v11 = vld [vmem:[%s6496_s26 + $0x80] sm:$0xff]  ;;  %v232_v13 = vld [vmem:[%s6496_s26 + $0x88] sm:$0xff]  ;;  %v233_v15 = vld [vmem:[%s6496_s26 + $0x90] sm:$0xff] }
  0x28   : > { %5866 = vmatprep.mubr.msk.f32.mxu0 %vm289_vm1, %v264_v29  ;;  %5893 = vmatprep.mubr.msk.f32.mxu1 %vm289_vm1, %v282_v30  ;;  %v6709_v12 = vld [vmem:[%s6496_s26 + $0x82] sm:$0xff]  ;;  %v6719_v14 = vld [vmem:[%s6496_s26 + $0x8a] sm:$0xff]  ;;  %v6723_v16 = vld [vmem:[%s6496_s26 + $0x92] sm:$0xff] }
  0x29   : > { %v234_v17 = vld [vmem:[%s6496_s26 + $0x98] sm:$0xff]  ;;  %v235_v19 = vld [vmem:[%s6496_s26 + $0xa0] sm:$0xff]  ;;  %v236_v21 = vld [vmem:[%s6496_s26 + $0xa8] sm:$0xff] }
  0x2a   : > { %v6733_v18 = vld [vmem:[%s6496_s26 + $0x9a] sm:$0xff]  ;;  %v6737_v20 = vld [vmem:[%s6496_s26 + $0xa2] sm:$0xff]  ;;  %v6747_v22 = vld [vmem:[%s6496_s26 + $0xaa] sm:$0xff] }
  0x2b   : > { %5867 = vmatmul.mubr.msk.f32.gmra.mxu0 %vm289_vm1, %v265_v31  ;;  %5894 = vmatmul.mubr.msk.f32.gmra.mxu1 %vm289_vm1, %v283_v32  ;;  %v237_v23 = vld [vmem:[%s6496_s26 + $0xb0] sm:$0xff]  ;;  %v238_v25 = vld [vmem:[%s6496_s26 + $0xb8] sm:$0xff]  ;;  %v239_v27 = vld [vmem:[%s6496_s26 + $0xc0] sm:$0xff] }
  0x2c   : > { %5869 = vmatprep.mubr.msk.f32.mxu0 %vm289_vm1, %v266_v33  ;;  %5896 = vmatprep.mubr.msk.f32.mxu1 %vm289_vm1, %v284_v34  ;;  %v6751_v24 = vld [vmem:[%s6496_s26 + $0xb2] sm:$0xff]  ;;  %v6761_v26 = vld [vmem:[%s6496_s26 + $0xba] sm:$0xff]  ;;  %v6765_v28 = vld [vmem:[%s6496_s26 + $0xc2] sm:$0xff] }
  0x2d   : > { %v240_v29 = vld [vmem:[%s6496_s26 + $0xc8] sm:$0xff]  ;;  %v241_v31 = vld [vmem:[%s6496_s26 + $0xd0] sm:$0xff]  ;;  %v242_v33 = vld [vmem:[%s6496_s26 + $0xd8] sm:$0xff] }
  0x2e   : > { %v6775_v30 = vld [vmem:[%s6496_s26 + $0xca] sm:$0xff]  ;;  %v6779_v32 = vld [vmem:[%s6496_s26 + $0xd2] sm:$0xff]  ;;  %v6789_v34 = vld [vmem:[%s6496_s26 + $0xda] sm:$0xff] }
  0x2f   : > { %5870 = vmatmul.mubr.msk.f32.gmra.mxu0 %vm289_vm1, %v267_v35  ;;  %5897 = vmatmul.mubr.msk.f32.gmra.mxu1 %vm289_vm1, %v285_v36  ;;  %v243_v35 = vld [vmem:[%s6496_s26 + $0xe0] sm:$0xff] }
  0x30   : > { %5872 = vmatprep.mubr.msk.f32.mxu0 %vm289_vm1, %v268_v37  ;;  %5899 = vmatprep.mubr.msk.f32.mxu1 %vm289_vm1, %v286_v38  ;;  %v6793_v36 = vld [vmem:[%s6496_s26 + $0xe2] sm:$0xff]  ;;  %v6803_v38 = vld [vmem:[%s6496_s26 + $0xea] sm:$0xff] }
  0x31   : > { %v244_v37 = vld [vmem:[%s6496_s26 + $0xe8] sm:$0xff] }
  0x33   : > { %5873 = vmatmul.mubr.msk.f32.gmra.mxu0 %vm289_vm1, %v269_v39  ;;  %5900 = vmatmul.mubr.msk.f32.gmra.mxu1 %vm289_vm1, %v287_v40  ;;  %v245_v39 = vld [vmem:[%s6496_s26 + $0xf0] sm:$0xff] }
  0x34   : > { %5904 = vmatprep.mubr.msk.f32.mxu1 %vm289_vm1, %v215_v41  ;;  %5960 = vmatprep.mubr.msk.f32.mxu0 %vm289_vm1, %v1003_v42  ;;  %v6807_v40 = vld [vmem:[%s6496_s26 + $0xf2] sm:$0xff]  ;;  %v6817_v42 = vld [vmem:[%s6496_s26 + $0xfa] sm:$0xff] }
  0x35   : > { %v246_v41 = vld [vmem:[%s6496_s26 + $0xf8] sm:$0xff] }
  0x37   : > { %5905 = vmatmul.mubr.msk.f32.vlgmr.msra.gmra.mxu1 %vm289_vm1, %v216_v43  ;;  %5961 = vmatmul.mubr.msk.f32.vlgmr.msra.gmra.mxu0 %vm289_vm1, %v1004_v44  ;;  %v247_v43 = vld [vmem:[%s6496_s26 + $0x100] sm:$0xff] }
  0x38   : > { %6015 = vmatpush3.msk.msra.mxu1 %vm398_vm0, %v6511_v9  ;;  %6071 = vmatpush3.msk.msra.mxu0 %vm398_vm0, %v6516_v10  ;;  %v230_v9 = vld [vmem:[%s6496_s26 + $0x78] sm:$0xff]  ;;  %v6821_v44 = vld [vmem:[%s6496_s26 + $0x102] sm:$0xff] }
  0x39   : > { %5907 = vmatprep.mubr.msk.f32.mxu1 %vm289_vm1, %v217_v45  ;;  %5963 = vmatprep.mubr.msk.f32.mxu0 %vm289_vm1, %v6594_v46  ;;  %v6705_v10 = vld [vmem:[%s6496_s26 + $0x7a] sm:$0xff]  ;;  %v248_v45 = vld [vmem:[%s6496_s26 + $0x108] sm:$0xff] }
  0x3a   : > { %6126 = vmatprep.subr.msk.mxu1 %vm398_vm0, %v6601_v47  ;;  %6182 = vmatprep.subr.msk.mxu0 %vm398_vm0, %v6606_v48 }
  0x3b   : > { %5908 = vmatmul.mubr.msk.f32.gmra.mxu1 %vm289_vm1, %v218_v49  ;;  %5964 = vmatmul.mubr.msk.f32.gmra.mxu0 %vm289_vm1, %v6614_v50  ;;  %v6831_v49 = vld [vmem:[%s6496_s26 + $0x10a] sm:$0xff] }
  0x3c   : > { %5910 = vmatprep.mubr.msk.f32.mxu1 %vm289_vm1, %v219_v51  ;;  %5966 = vmatprep.mubr.msk.f32.mxu0 %vm289_vm1, %v6621_v52  ;;  %v249_v51 = vld [vmem:[%s6496_s26 + $0x110] sm:$0xff] }
  0x3f   : > { %5911 = vmatmul.mubr.msk.f32.gmra.mxu1 %vm289_vm1, %v220_v53  ;;  %5967 = vmatmul.mubr.msk.f32.gmra.mxu0 %vm289_vm1, %v6635_v54  ;;  %v6835_v53 = vld [vmem:[%s6496_s26 + $0x112] sm:$0xff] }
  0x40   : > { %5913 = vmatprep.mubr.msk.f32.mxu1 %vm289_vm1, %v221_v55  ;;  %5969 = vmatprep.mubr.msk.f32.mxu0 %vm289_vm1, %v6639_v56  ;;  %v250_v55 = vld [vmem:[%s6496_s26 + $0x118] sm:$0xff] }
  0x43   : > { %5914 = vmatmul.mubr.msk.f32.gmra.mxu1 %vm289_vm1, %v222_v57  ;;  %5970 = vmatmul.mubr.msk.f32.gmra.mxu0 %vm289_vm1, %v6649_v58  ;;  %v6845_v57 = vld [vmem:[%s6496_s26 + $0x11a] sm:$0xff] }
  0x44   : > { %5916 = vmatprep.mubr.msk.f32.mxu1 %vm289_vm1, %v223_v59  ;;  %5972 = vmatprep.mubr.msk.f32.mxu0 %vm289_vm1, %v6653_v60  ;;  %v1861_v59 = vld [vmem:[%s6496_s26 + $0x13] sm:$0xff] }
  0x47   : > { %5917 = vmatmul.mubr.msk.f32.gmra.mxu1 %vm289_vm1, %v224_v61  ;;  %5973 = vmatmul.mubr.msk.f32.gmra.mxu0 %vm289_vm1, %v6663_v62  ;;  %v1862_v61 = vld [vmem:[%s6496_s26 + $0x1b] sm:$0xff] }
  0x48   : > { %5919 = vmatprep.mubr.msk.f32.mxu1 %vm289_vm1, %v225_v63  ;;  %5975 = vmatprep.mubr.msk.f32.mxu0 %vm289_vm1, %v6667_v0  ;;  %v1863_v63 = vld [vmem:[%s6496_s26 + $0x23] sm:$0xff] }
  0x4b   : > { %5920 = vmatmul.mubr.msk.f32.gmra.mxu1 %vm289_vm1, %v226_v1  ;;  %5976 = vmatmul.mubr.msk.f32.gmra.mxu0 %vm289_vm1, %v6677_v2  ;;  %v6862_v1 = vld [vmem:[%s9571_s1 + $0x1c] sm:$0xf] }
  0x4c   : > { %5922 = vmatprep.mubr.msk.f32.mxu1 %vm289_vm1, %v227_v3  ;;  %5978 = vmatprep.mubr.msk.f32.mxu0 %vm289_vm1, %v6681_v4  ;;  %v1865_v3 = vld [vmem:[%s6496_s26 + $0x33] sm:$0xff] }
  0x4f   : > { %5923 = vmatmul.mubr.msk.f32.gmra.mxu1 %vm289_vm1, %v228_v5  ;;  %5979 = vmatmul.mubr.msk.f32.gmra.mxu0 %vm289_vm1, %v6691_v6  ;;  %v1877_v5 = vld [vmem:[%s6496_s26 + $0x93] sm:$0xff] }
  0x50   : > { %5925 = vmatprep.mubr.msk.f32.mxu1 %vm289_vm1, %v229_v7  ;;  %5981 = vmatprep.mubr.msk.f32.mxu0 %vm289_vm1, %v6695_v8  ;;  %v1879_v7 = vld [vmem:[%s6496_s26 + $0xa3] sm:$0xff] }
  0x53   : > { %5926 = vmatmul.mubr.msk.f32.gmra.mxu1 %vm289_vm1, %v230_v9  ;;  %5982 = vmatmul.mubr.msk.f32.gmra.mxu0 %vm289_vm1, %v6705_v10  ;;  %v1881_v9 = vld [vmem:[%s6496_s26 + $0xb3] sm:$0xff] }
  0x54   : > { %5928 = vmatprep.mubr.msk.f32.mxu1 %vm289_vm1, %v231_v11  ;;  %5984 = vmatprep.mubr.msk.f32.mxu0 %vm289_vm1, %v6709_v12  ;;  %v1883_v11 = vld [vmem:[%s6496_s26 + $0xc3] sm:$0xff] }
  0x57   : > { %5929 = vmatmul.mubr.msk.f32.gmra.mxu1 %vm289_vm1, %v232_v13  ;;  %5985 = vmatmul.mubr.msk.f32.gmra.mxu0 %vm289_vm1, %v6719_v14  ;;  %v1885_v13 = vld [vmem:[%s6496_s26 + $0xd3] sm:$0xff] }
  0x58   : > { %5931 = vmatprep.mubr.msk.f32.mxu1 %vm289_vm1, %v233_v15  ;;  %5987 = vmatprep.mubr.msk.f32.mxu0 %vm289_vm1, %v6723_v16  ;;  %v1887_v15 = vld [vmem:[%s6496_s26 + $0xe3] sm:$0xff] }
  0x5b   : > { %5932 = vmatmul.mubr.msk.f32.gmra.mxu1 %vm289_vm1, %v234_v17  ;;  %5988 = vmatmul.mubr.msk.f32.gmra.mxu0 %vm289_vm1, %v6733_v18  ;;  %v1889_v17 = vld [vmem:[%s6496_s26 + $0xf3] sm:$0xff] }
  0x5c   : > { %5934 = vmatprep.mubr.msk.f32.mxu1 %vm289_vm1, %v235_v19  ;;  %5990 = vmatprep.mubr.msk.f32.mxu0 %vm289_vm1, %v6737_v20  ;;  %v1891_v19 = vld [vmem:[%s6496_s26 + $0x103] sm:$0xff] }
  0x5f   : > { %5935 = vmatmul.mubr.msk.f32.gmra.mxu1 %vm289_vm1, %v236_v21  ;;  %5991 = vmatmul.mubr.msk.f32.gmra.mxu0 %vm289_vm1, %v6747_v22  ;;  %v1893_v21 = vld [vmem:[%s6496_s26 + $0x113] sm:$0xff] }
  0x60   : > { %5937 = vmatprep.mubr.msk.f32.mxu1 %vm289_vm1, %v237_v23  ;;  %5993 = vmatprep.mubr.msk.f32.mxu0 %vm289_vm1, %v6751_v24  ;;  %v1466_v23 = vld [vmem:[%s6496_s26 + $0x122] sm:$0xff] }
  0x63   : > { %5938 = vmatmul.mubr.msk.f32.gmra.mxu1 %vm289_vm1, %v238_v25  ;;  %5994 = vmatmul.mubr.msk.f32.gmra.mxu0 %vm289_vm1, %v6761_v26  ;;  %v1467_v25 = vld [vmem:[%s6496_s26 + $0x12a] sm:$0xff] }
  0x64   : > { %5940 = vmatprep.mubr.msk.f32.mxu1 %vm289_vm1, %v239_v27  ;;  %5996 = vmatprep.mubr.msk.f32.mxu0 %vm289_vm1, %v6765_v28  ;;  %v2290_v27 = vld [vmem:[%s6496_s26 + $0x14] sm:$0xff] }
  0x67   : > { %5941 = vmatmul.mubr.msk.f32.gmra.mxu1 %vm289_vm1, %v240_v29  ;;  %5997 = vmatmul.mubr.msk.f32.gmra.mxu0 %vm289_vm1, %v6775_v30  ;;  %v2291_v29 = vld [vmem:[%s6496_s26 + $0x1c] sm:$0xff] }
  0x68   : > { %5943 = vmatprep.mubr.msk.f32.mxu1 %vm289_vm1, %v241_v31  ;;  %5999 = vmatprep.mubr.msk.f32.mxu0 %vm289_vm1, %v6779_v32  ;;  %v2721_v31 = vld [vmem:[%s6496_s26 + $0x34] sm:$0xff] }
  0x6b   : > { %5944 = vmatmul.mubr.msk.f32.gmra.mxu1 %vm289_vm1, %v242_v33  ;;  %6000 = vmatmul.mubr.msk.f32.gmra.mxu0 %vm289_vm1, %v6789_v34  ;;  %v2723_v33 = vld [vmem:[%s6496_s26 + $0x44] sm:$0xff] }
  0x6c   : > { %5946 = vmatprep.mubr.msk.f32.mxu1 %vm289_vm1, %v243_v35  ;;  %6002 = vmatprep.mubr.msk.f32.mxu0 %vm289_vm1, %v6793_v36  ;;  %v2725_v35 = vld [vmem:[%s6496_s26 + $0x54] sm:$0xff] }
  0x6f   : > { %5947 = vmatmul.mubr.msk.f32.gmra.mxu1 %vm289_vm1, %v244_v37  ;;  %6003 = vmatmul.mubr.msk.f32.gmra.mxu0 %vm289_vm1, %v6803_v38  ;;  %v2727_v37 = vld [vmem:[%s6496_s26 + $0x64] sm:$0xff] }
  0x70   : > { %5949 = vmatprep.mubr.msk.f32.mxu1 %vm289_vm1, %v245_v39  ;;  %6005 = vmatprep.mubr.msk.f32.mxu0 %vm289_vm1, %v6807_v40 }
  0x73   : > { %5950 = vmatmul.mubr.msk.f32.gmra.mxu1 %vm289_vm1, %v246_v41  ;;  %6006 = vmatmul.mubr.msk.f32.gmra.mxu0 %vm289_vm1, %v6817_v42 }
  0x74   : > { %5952 = vmatprep.mubr.msk.f32.mxu1 %vm289_vm1, %v247_v43  ;;  %6008 = vmatprep.mubr.msk.f32.mxu0 %vm289_vm1, %v6821_v44  ;;  %v2729_v43 = vld [vmem:[%s6496_s26 + $0x74] sm:$0xff] }
  0x77   : > { %5953 = vmatmul.mubr.msk.f32.gmra.mxu1 %vm289_vm1, %v248_v45  ;;  %6009 = vmatmul.mubr.msk.f32.gmra.mxu0 %vm289_vm1, %v6831_v49 }
  0x78   : > { %5955 = vmatprep.mubr.msk.f32.mxu1 %vm289_vm1, %v249_v51  ;;  %6011 = vmatprep.mubr.msk.f32.mxu0 %vm289_vm1, %v6835_v53 }
  0x7b   : > { %5956 = vmatmul.mubr.msk.f32.gmra.mxu1 %vm289_vm1, %v250_v55  ;;  %6012 = vmatmul.mubr.msk.f32.gmra.mxu0 %vm289_vm1, %v6845_v57  ;;  %v2731_v55 = vld [vmem:[%s6496_s26 + $0x84] sm:$0xff] }
  0x7c   : > { %6016 = vmatprep.mubr.msk.f32.mxu1 %vm289_vm1, %v6594_v46  ;;  %6072 = vmatprep.mubr.msk.f32.mxu0 %vm289_vm1, %v1861_v59  ;;  %v6867_v46 = vld [vmem:[%s9571_s1 + $0x20] sm:$0xf] }
  0x7f   : > { %6017 = vmatmul.mubr.msk.f32.vlgmr.msra.gmra.mxu1 %vm289_vm1, %v6614_v50  ;;  %6073 = vmatmul.mubr.msk.f32.vlgmr.msra.gmra.mxu0 %vm289_vm1, %v1862_v61  ;;  %v1864_v50 = vld [vmem:[%s6496_s26 + $0x2b] sm:$0xff] }
  0x80   : > { %6127 = vmatpush3.msk.msra.mxu1 %vm398_vm0, %v6601_v47  ;;  %6183 = vmatpush3.msk.msra.mxu0 %vm398_vm0, %v6606_v48  ;;  %v1866_v47 = vld [vmem:[%s6496_s26 + $0x3b] sm:$0xff]  ;;  %v1867_v48 = vld [vmem:[%s6496_s26 + $0x43] sm:$0xff]  ;;  %v2732_v61 = vld [vmem:[%s6496_s26 + $0x8c] sm:$0xff] }
  0x81   : > { %6019 = vmatprep.mubr.msk.f32.mxu1 %vm289_vm1, %v6621_v52  ;;  %6075 = vmatprep.mubr.msk.f32.mxu0 %vm289_vm1, %v1863_v63  ;;  %v1868_v52 = vld [vmem:[%s6496_s26 + $0x4b] sm:$0xff] }
  0x82   : > { %6238 = vmatprep.subr.msk.mxu1 %vm398_vm0, %v6862_v1  ;;  %6294 = vmatprep.subr.msk.mxu0 %vm398_vm0, %v6867_v46 }
  0x83   : > { %6020 = vmatmul.mubr.msk.f32.gmra.mxu1 %vm289_vm1, %v6635_v54  ;;  %6076 = vmatmul.mubr.msk.f32.gmra.mxu0 %vm289_vm1, %v1864_v50  ;;  %v1869_v54 = vld [vmem:[%s6496_s26 + $0x53] sm:$0xff] }
  0x84   : > { %6022 = vmatprep.mubr.msk.f32.mxu1 %vm289_vm1, %v6639_v56  ;;  %6078 = vmatprep.mubr.msk.f32.mxu0 %vm289_vm1, %v1865_v3  ;;  %v1870_v56 = vld [vmem:[%s6496_s26 + $0x5b] sm:$0xff] }
  0x87   : > { %6023 = vmatmul.mubr.msk.f32.gmra.mxu1 %vm289_vm1, %v6649_v58  ;;  %6079 = vmatmul.mubr.msk.f32.gmra.mxu0 %vm289_vm1, %v1866_v47  ;;  %v1871_v58 = vld [vmem:[%s6496_s26 + $0x63] sm:$0xff] }
  0x88   : > { %6025 = vmatprep.mubr.msk.f32.mxu1 %vm289_vm1, %v6653_v60  ;;  %6081 = vmatprep.mubr.msk.f32.mxu0 %vm289_vm1, %v1867_v48  ;;  %v1872_v60 = vld [vmem:[%s6496_s26 + $0x6b] sm:$0xff]  ;;  %v2734_v47 = vld [vmem:[%s6496_s26 + $0x9c] sm:$0xff] }
  0x8b   : > { %6026 = vmatmul.mubr.msk.f32.gmra.mxu1 %vm289_vm1, %v6663_v62  ;;  %6082 = vmatmul.mubr.msk.f32.gmra.mxu0 %vm289_vm1, %v1868_v52  ;;  %v1873_v62 = vld [vmem:[%s6496_s26 + $0x73] sm:$0xff] }
  0x8c   : > { %6028 = vmatprep.mubr.msk.f32.mxu1 %vm289_vm1, %v6667_v0  ;;  %6084 = vmatprep.mubr.msk.f32.mxu0 %vm289_vm1, %v1869_v54  ;;  %v1874_v0 = vld [vmem:[%s6496_s26 + $0x7b] sm:$0xff]  ;;  %v2735_v54 = vld [vmem:[%s6496_s26 + $0xa4] sm:$0xff] }
  0x8f   : > { %6029 = vmatmul.mubr.msk.f32.gmra.mxu1 %vm289_vm1, %v6677_v2  ;;  %6085 = vmatmul.mubr.msk.f32.gmra.mxu0 %vm289_vm1, %v1870_v56  ;;  %v1875_v2 = vld [vmem:[%s6496_s26 + $0x83] sm:$0xff] }
  0x90   : > { %6031 = vmatprep.mubr.msk.f32.mxu1 %vm289_vm1, %v6681_v4  ;;  %6087 = vmatprep.mubr.msk.f32.mxu0 %vm289_vm1, %v1871_v58  ;;  %v1876_v4 = vld [vmem:[%s6496_s26 + $0x8b] sm:$0xff] }
  0x93   : > { %6032 = vmatmul.mubr.msk.f32.gmra.mxu1 %vm289_vm1, %v6691_v6  ;;  %6088 = vmatmul.mubr.msk.f32.gmra.mxu0 %vm289_vm1, %v1872_v60  ;;  %v1878_v6 = vld [vmem:[%s6496_s26 + $0x9b] sm:$0xff]  ;;  %v2736_v60 = vld [vmem:[%s6496_s26 + $0xac] sm:$0xff] }
  0x94   : > { %6034 = vmatprep.mubr.msk.f32.mxu1 %vm289_vm1, %v6695_v8  ;;  %6090 = vmatprep.mubr.msk.f32.mxu0 %vm289_vm1, %v1873_v62  ;;  %v1880_v8 = vld [vmem:[%s6496_s26 + $0xab] sm:$0xff] }
  0x97   : > { %6035 = vmatmul.mubr.msk.f32.gmra.mxu1 %vm289_vm1, %v6705_v10  ;;  %6091 = vmatmul.mubr.msk.f32.gmra.mxu0 %vm289_vm1, %v1874_v0  ;;  %v1882_v10 = vld [vmem:[%s6496_s26 + $0xbb] sm:$0xff] }
  0x98   : > { %6037 = vmatprep.mubr.msk.f32.mxu1 %vm289_vm1, %v6709_v12  ;;  %6093 = vmatprep.mubr.msk.f32.mxu0 %vm289_vm1, %v1875_v2  ;;  %v1884_v12 = vld [vmem:[%s6496_s26 + $0xcb] sm:$0xff]  ;;  %v2737_v2 = vld [vmem:[%s6496_s26 + $0xb4] sm:$0xff] }
  0x9b   : > { %6038 = vmatmul.mubr.msk.f32.gmra.mxu1 %vm289_vm1, %v6719_v14  ;;  %6094 = vmatmul.mubr.msk.f32.gmra.mxu0 %vm289_vm1, %v1876_v4  ;;  %v1886_v14 = vld [vmem:[%s6496_s26 + $0xdb] sm:$0xff] }
  0x9c   : > { %6040 = vmatprep.mubr.msk.f32.mxu1 %vm289_vm1, %v6723_v16  ;;  %6096 = vmatprep.mubr.msk.f32.mxu0 %vm289_vm1, %v1877_v5  ;;  %v1888_v16 = vld [vmem:[%s6496_s26 + $0xeb] sm:$0xff] }
  0x9f   : > { %6041 = vmatmul.mubr.msk.f32.gmra.mxu1 %vm289_vm1, %v6733_v18  ;;  %6097 = vmatmul.mubr.msk.f32.gmra.mxu0 %vm289_vm1, %v1878_v6  ;;  %v1890_v18 = vld [vmem:[%s6496_s26 + $0xfb] sm:$0xff] }
  0xa0   : > { %6043 = vmatprep.mubr.msk.f32.mxu1 %vm289_vm1, %v6737_v20  ;;  %6099 = vmatprep.mubr.msk.f32.mxu0 %vm289_vm1, %v1879_v7  ;;  %v1892_v20 = vld [vmem:[%s6496_s26 + $0x10b] sm:$0xff]  ;;  %v2738_v6 = vld [vmem:[%s6496_s26 + $0xbc] sm:$0xff] }
  0xa3   : > { %6044 = vmatmul.mubr.msk.f32.gmra.mxu1 %vm289_vm1, %v6747_v22  ;;  %6100 = vmatmul.mubr.msk.f32.gmra.mxu0 %vm289_vm1, %v1880_v8  ;;  %v1894_v22 = vld [vmem:[%s6496_s26 + $0x11b] sm:$0xff] }
  0xa4   : > { %6046 = vmatprep.mubr.msk.f32.mxu1 %vm289_vm1, %v6751_v24  ;;  %6102 = vmatprep.mubr.msk.f32.mxu0 %vm289_vm1, %v1881_v9  ;;  %v1895_v24 = vld [vmem:[%s6496_s26 + $0x123] sm:$0xff] }
  0xa5   : > { %v2739_v9 = vld [vmem:[%s6496_s26 + $0xc4] sm:$0xff] }
  0xa7   : > { %6047 = vmatmul.mubr.msk.f32.gmra.mxu1 %vm289_vm1, %v6761_v26  ;;  %6103 = vmatmul.mubr.msk.f32.gmra.mxu0 %vm289_vm1, %v1882_v10  ;;  %v1896_v26 = vld [vmem:[%s6496_s26 + $0x12b] sm:$0xff] }
  0xa8   : > { %6049 = vmatprep.mubr.msk.f32.mxu1 %vm289_vm1, %v6765_v28  ;;  %6105 = vmatprep.mubr.msk.f32.mxu0 %vm289_vm1, %v1883_v11  ;;  %v2719_v28 = vld [vmem:[%s6496_s26 + $0x24] sm:$0xff] }
  0xab   : > { %6050 = vmatmul.mubr.msk.f32.gmra.mxu1 %vm289_vm1, %v6775_v30  ;;  %6106 = vmatmul.mubr.msk.f32.gmra.mxu0 %vm289_vm1, %v1884_v12  ;;  %v2720_v30 = vld [vmem:[%s6496_s26 + $0x2c] sm:$0xff] }
  0xac   : > { %6052 = vmatprep.mubr.msk.f32.mxu1 %vm289_vm1, %v6779_v32  ;;  %6108 = vmatprep.mubr.msk.f32.mxu0 %vm289_vm1, %v1885_v13  ;;  %v2722_v32 = vld [vmem:[%s6496_s26 + $0x3c] sm:$0xff]  ;;  %v2740_v12 = vld [vmem:[%s6496_s26 + $0xcc] sm:$0xff] }
  0xaf   : > { %6053 = vmatmul.mubr.msk.f32.gmra.mxu1 %vm289_vm1, %v6789_v34  ;;  %6109 = vmatmul.mubr.msk.f32.gmra.mxu0 %vm289_vm1, %v1886_v14  ;;  %v2724_v34 = vld [vmem:[%s6496_s26 + $0x4c] sm:$0xff] }
  0xb0   : > { %6055 = vmatprep.mubr.msk.f32.mxu1 %vm289_vm1, %v6793_v36  ;;  %6111 = vmatprep.mubr.msk.f32.mxu0 %vm289_vm1, %v1887_v15  ;;  %v2726_v36 = vld [vmem:[%s6496_s26 + $0x5c] sm:$0xff]  ;;  %v2741_v15 = vld [vmem:[%s6496_s26 + $0xd4] sm:$0xff] }
  0xb3   : > { %6056 = vmatmul.mubr.msk.f32.gmra.mxu1 %vm289_vm1, %v6803_v38  ;;  %6112 = vmatmul.mubr.msk.f32.gmra.mxu0 %vm289_vm1, %v1888_v16 }
  0xb4   : > { %6058 = vmatprep.mubr.msk.f32.mxu1 %vm289_vm1, %v6807_v40  ;;  %6114 = vmatprep.mubr.msk.f32.mxu0 %vm289_vm1, %v1889_v17  ;;  %v2728_v40 = vld [vmem:[%s6496_s26 + $0x6c] sm:$0xff] }
  0xb7   : > { %6059 = vmatmul.mubr.msk.f32.gmra.mxu1 %vm289_vm1, %v6817_v42  ;;  %6115 = vmatmul.mubr.msk.f32.gmra.mxu0 %vm289_vm1, %v1890_v18  ;;  %v2742_v18 = vld [vmem:[%s6496_s26 + $0xdc] sm:$0xff] }
  0xb8   : > { %6061 = vmatprep.mubr.msk.f32.mxu1 %vm289_vm1, %v6821_v44  ;;  %6117 = vmatprep.mubr.msk.f32.mxu0 %vm289_vm1, %v1891_v19 }
  0xbb   : > { %6062 = vmatmul.mubr.msk.f32.gmra.mxu1 %vm289_vm1, %v6831_v49  ;;  %6118 = vmatmul.mubr.msk.f32.gmra.mxu0 %vm289_vm1, %v1892_v20  ;;  %v2730_v49 = vld [vmem:[%s6496_s26 + $0x7c] sm:$0xff] }
  0xbc   : > { %6064 = vmatprep.mubr.msk.f32.mxu1 %vm289_vm1, %v6835_v53  ;;  %6120 = vmatprep.mubr.msk.f32.mxu0 %vm289_vm1, %v1893_v21  ;;  %v2743_v21 = vld [vmem:[%s6496_s26 + $0xe4] sm:$0xff] }
  0xbf   : > { %6065 = vmatmul.mubr.msk.f32.gmra.mxu1 %vm289_vm1, %v6845_v57  ;;  %6121 = vmatmul.mubr.msk.f32.gmra.mxu0 %vm289_vm1, %v1894_v22 }
  0xc0   : > { %6067 = vmatprep.mubr.msk.f32.mxu1 %vm289_vm1, %v1466_v23  ;;  %6123 = vmatprep.mubr.msk.f32.mxu0 %vm289_vm1, %v1895_v24  ;;  %v2744_v24 = vld [vmem:[%s6496_s26 + $0xec] sm:$0xff] }
  0xc3   : > { %6068 = vmatmul.mubr.msk.f32.gmra.mxu1 %vm289_vm1, %v1467_v25  ;;  %6124 = vmatmul.mubr.msk.f32.gmra.mxu0 %vm289_vm1, %v1896_v26 }
  0xc4   : > { %6128 = vmatprep.mubr.msk.f32.mxu1 %vm289_vm1, %v2290_v27  ;;  %6184 = vmatprep.mubr.msk.f32.mxu0 %vm289_vm1, %v2719_v28  ;;  %v2745_v27 = vld [vmem:[%s6496_s26 + $0xf4] sm:$0xff] }
  0xc7   : > { %6129 = vmatmul.mubr.msk.f32.vlgmr.msra.gmra.mxu1 %vm289_vm1, %v2291_v29  ;;  %6185 = vmatmul.mubr.msk.f32.vlgmr.msra.gmra.mxu0 %vm289_vm1, %v2720_v30 }
  0xc8   : > { %6239 = vmatpush3.msk.msra.mxu1 %vm398_vm0, %v6862_v1  ;;  %6295 = vmatpush3.msk.msra.mxu0 %vm398_vm0, %v6867_v46  ;;  %v2733_v46 = vld [vmem:[%s6496_s26 + $0x94] sm:$0xff] }
  0xc9   : > { %6131 = vmatprep.mubr.msk.f32.mxu1 %vm289_vm1, %v2719_v28  ;;  %6187 = vmatprep.mubr.msk.f32.mxu0 %vm289_vm1, %v2721_v31 }
  0xcb   : > { %6132 = vmatmul.mubr.msk.f32.gmra.mxu1 %vm289_vm1, %v2720_v30  ;;  %6188 = vmatmul.mubr.msk.f32.gmra.mxu0 %vm289_vm1, %v2722_v32 }
  0xcc   : > { %6134 = vmatprep.mubr.msk.f32.mxu1 %vm289_vm1, %v2721_v31  ;;  %6190 = vmatprep.mubr.msk.f32.mxu0 %vm289_vm1, %v2723_v33  ;;  %v2746_v31 = vld [vmem:[%s6496_s26 + $0xfc] sm:$0xff] }
  0xcf   : > { %6135 = vmatmul.mubr.msk.f32.gmra.mxu1 %vm289_vm1, %v2722_v32  ;;  %6191 = vmatmul.mubr.msk.f32.gmra.mxu0 %vm289_vm1, %v2724_v34 }
  0xd0   : > { %6137 = vmatprep.mubr.msk.f32.mxu1 %vm289_vm1, %v2723_v33  ;;  %6193 = vmatprep.mubr.msk.f32.mxu0 %vm289_vm1, %v2725_v35 }
  0xd3   : > { %v7041_v38 = vpop.f32.mrf.mxu0  ;;  %v7043_v39 = vpop.f32.mrf.mxu1  ;;  %6138 = vmatmul.mubr.msk.f32.gmra.mxu1 %vm289_vm1, %v2724_v34  ;;  %6194 = vmatmul.mubr.msk.f32.gmra.mxu0 %vm289_vm1, %v2726_v36  ;;  %v2747_v34 = vld [vmem:[%s6496_s26 + $0x104] sm:$0xff] }
  0xd4   : > { %6140 = vmatprep.mubr.msk.f32.mxu1 %vm289_vm1, %v2725_v35  ;;  %6196 = vmatprep.mubr.msk.f32.mxu0 %vm289_vm1, %v2727_v37 }
  0xd5   : > { %v7050_v41 = vpop.f32.mrf.mxu0  ;;  %v7052_v42 = vpop.f32.mrf.mxu1 }
  0xd7   : > { %v7055_v44 = vpop.f32.mrf.mxu0  ;;  %v7057_v45 = vpop.f32.mrf.mxu1  ;;  %6141 = vmatmul.mubr.msk.f32.gmra.mxu1 %vm289_vm1, %v2726_v36  ;;  %6197 = vmatmul.mubr.msk.f32.gmra.mxu0 %vm289_vm1, %v2728_v40 }
  0xd8   : > { %6143 = vmatprep.mubr.msk.f32.mxu1 %vm289_vm1, %v2727_v37  ;;  %6199 = vmatprep.mubr.msk.f32.mxu0 %vm289_vm1, %v2729_v43 }
  0xd9   : > { %v7064_v51 = vpop.f32.mrf.mxu0  ;;  %v7066_v53 = vpop.f32.mrf.mxu1 }
  0xdb   : > { %v7069_v57 = vpop.f32.mrf.mxu0  ;;  %v7071_v59 = vpop.f32.mrf.mxu1  ;;  %6144 = vmatmul.mubr.msk.f32.gmra.mxu1 %vm289_vm1, %v2728_v40  ;;  %6200 = vmatmul.mubr.msk.f32.gmra.mxu0 %vm289_vm1, %v2730_v49 }
  0xdc   : > { %6146 = vmatprep.mubr.msk.f32.mxu1 %vm289_vm1, %v2729_v43  ;;  %6202 = vmatprep.mubr.msk.f32.mxu0 %vm289_vm1, %v2731_v55 }
  0xdd   : > { %v7078_v63 = vpop.f32.mrf.mxu0  ;;  %v7080_v1 = vpop.f32.mrf.mxu1 }
  0xdf   : > { %v7083_v50 = vpop.f32.mrf.mxu0  ;;  %v7085_v3 = vpop.f32.mrf.mxu1  ;;  %6147 = vmatmul.mubr.msk.f32.gmra.mxu1 %vm289_vm1, %v2730_v49  ;;  %6203 = vmatmul.mubr.msk.f32.gmra.mxu0 %vm289_vm1, %v2732_v61  ;;  %v2748_v49 = vld [vmem:[%s6496_s26 + $0x10c] sm:$0xff] }
  0xe0   : > { %6149 = vmatprep.mubr.msk.f32.mxu1 %vm289_vm1, %v2731_v55  ;;  %6205 = vmatprep.mubr.msk.f32.mxu0 %vm289_vm1, %v2733_v46 }
  0xe1   : > { %v7092_v48 = vpop.f32.mrf.mxu0  ;;  %v7094_v52 = vpop.f32.mrf.mxu1 }
  0xe3   : > { %v7097_v56 = vpop.f32.mrf.mxu0  ;;  %v7099_v58 = vpop.f32.mrf.mxu1  ;;  %6150 = vmatmul.mubr.msk.f32.gmra.mxu1 %vm289_vm1, %v2732_v61  ;;  %6206 = vmatmul.mubr.msk.f32.gmra.mxu0 %vm289_vm1, %v2734_v47 }
  0xe4   : > { %6152 = vmatprep.mubr.msk.f32.mxu1 %vm289_vm1, %v2733_v46  ;;  %6208 = vmatprep.mubr.msk.f32.mxu0 %vm289_vm1, %v2735_v54 }
  0xe5   : > { %v7106_v62 = vpop.f32.mrf.mxu0  ;;  %v7108_v0 = vpop.f32.mrf.mxu1 }
  0xe7   : > { %v7111_v4 = vpop.f32.mrf.mxu0  ;;  %v7113_v5 = vpop.f32.mrf.mxu1  ;;  %6153 = vmatmul.mubr.msk.f32.gmra.mxu1 %vm289_vm1, %v2734_v47  ;;  %6209 = vmatmul.mubr.msk.f32.gmra.mxu0 %vm289_vm1, %v2736_v60 }
  0xe8   : > { %6155 = vmatprep.mubr.msk.f32.mxu1 %vm289_vm1, %v2735_v54  ;;  %6211 = vmatprep.mubr.msk.f32.mxu0 %vm289_vm1, %v2737_v2 }
  0xe9   : > { %v7120_v7 = vpop.f32.mrf.mxu0  ;;  %v7122_v8 = vpop.f32.mrf.mxu1 }
  0xeb   : > { %v7125_v10 = vpop.f32.mrf.mxu0  ;;  %v7127_v11 = vpop.f32.mrf.mxu1  ;;  %6156 = vmatmul.mubr.msk.f32.gmra.mxu1 %vm289_vm1, %v2736_v60  ;;  %6212 = vmatmul.mubr.msk.f32.gmra.mxu0 %vm289_vm1, %v2738_v6 }
  0xec   : > { %6158 = vmatprep.mubr.msk.f32.mxu1 %vm289_vm1, %v2737_v2  ;;  %6214 = vmatprep.mubr.msk.f32.mxu0 %vm289_vm1, %v2739_v9 }
  0xed   : > { %v7134_v13 = vpop.f32.mrf.mxu0  ;;  %v7136_v14 = vpop.f32.mrf.mxu1 }
  0xef   : > { %v7139_v16 = vpop.f32.mrf.mxu0  ;;  %v7141_v17 = vpop.f32.mrf.mxu1  ;;  %6159 = vmatmul.mubr.msk.f32.gmra.mxu1 %vm289_vm1, %v2738_v6  ;;  %6215 = vmatmul.mubr.msk.f32.gmra.mxu0 %vm289_vm1, %v2740_v12  ;;  %v2750_v6 = vld [vmem:[%s6496_s26 + $0x11c] sm:$0xff] }
  0xf0   : > { %6161 = vmatprep.mubr.msk.f32.mxu1 %vm289_vm1, %v2739_v9  ;;  %6217 = vmatprep.mubr.msk.f32.mxu0 %vm289_vm1, %v2741_v15 }
  0xf1   : > { %v7148_v19 = vpop.f32.mrf.mxu0  ;;  %v7150_v20 = vpop.f32.mrf.mxu1 }
  0xf3   : > { %v7153_v22 = vpop.f32.mrf.mxu0  ;;  %v7155_v23 = vpop.f32.mrf.mxu1  ;;  %6162 = vmatmul.mubr.msk.f32.gmra.mxu1 %vm289_vm1, %v2740_v12  ;;  %6218 = vmatmul.mubr.msk.f32.gmra.mxu0 %vm289_vm1, %v2742_v18 }
  0xf4   : > { %6164 = vmatprep.mubr.msk.f32.mxu1 %vm289_vm1, %v2741_v15  ;;  %6220 = vmatprep.mubr.msk.f32.mxu0 %vm289_vm1, %v2743_v21 }
  0xf5   : > { %v7162_v25 = vpop.f32.mrf.mxu0  ;;  %v7164_v26 = vpop.f32.mrf.mxu1 }
  0xf7   : > { %v5906_v28 = vpop.f32.mrf.mxu1  ;;  %v5962_v29 = vpop.f32.mrf.mxu0  ;;  %6165 = vmatmul.mubr.msk.f32.gmra.mxu1 %vm289_vm1, %v2742_v18  ;;  %6221 = vmatmul.mubr.msk.f32.gmra.mxu0 %vm289_vm1, %v2744_v24 }
  0xf8   : > { %v830_v30 = vadd.f32 %v5906_v28, %v7041_v38  ;;  %6167 = vmatprep.mubr.msk.f32.mxu1 %vm289_vm1, %v2743_v21  ;;  %6223 = vmatprep.mubr.msk.f32.mxu0 %vm289_vm1, %v2745_v27  ;;  %v2752_v28 = vld [vmem:[%s6496_s26 + $0x12c] sm:$0xff] }
  0xf9   : > { %v824_v32 = vpop.f32.mrf.mxu1  ;;  %v1217_v33 = vpop.f32.mrf.mxu0 }
  0xfa   : > { %v7174_v35 = vadd.f32 %v5962_v29, %v830_v30  ;;  %v825_v36 = vadd.f32 %v824_v32, %v7050_v41  ;;  %v2749_v41 = vld [vmem:[%s6496_s26 + $0x114] sm:$0xff] }
  0xfb   : > { %v5909_v37 = vpop.f32.mrf.mxu1  ;;  %v5965_v40 = vpop.f32.mrf.mxu0  ;;  %6168 = vmatmul.mubr.msk.f32.gmra.mxu1 %vm289_vm1, %v2744_v24  ;;  %6224 = vmatmul.mubr.msk.f32.gmra.mxu0 %vm289_vm1, %v2746_v31 }
  0xfc   : > { %v7179_v38 = vadd.f32 %v1217_v33, %v825_v36  ;;  %v840_v43 = vadd.f32 %v5909_v37, %v7055_v44  ;;  %6170 = vmatprep.mubr.msk.f32.mxu1 %vm289_vm1, %v2745_v27  ;;  %6226 = vmatprep.mubr.msk.f32.mxu0 %vm289_vm1, %v2747_v34  ;;  %v2754_v37 = vld [vmem:[%s6496_s26 + $0x13c] sm:$0xff] }
  0xfd   : > { %v834_v55 = vpop.f32.mrf.mxu1  ;;  %v1227_v61 = vpop.f32.mrf.mxu0 }
  0xfe   : > { %v7186_v46 = vadd.f32 %v5965_v40, %v840_v43  ;;  %v835_v47 = vadd.f32 %v834_v55, %v7064_v51  ;;  %v2751_v51 = vld [vmem:[%s6496_s26 + $0x124] sm:$0xff] }
  0xff   : > { %v5912_v54 = vpop.f32.mrf.mxu1  ;;  %v5968_v60 = vpop.f32.mrf.mxu0  ;;  %6171 = vmatmul.mubr.msk.f32.gmra.mxu1 %vm289_vm1, %v2746_v31  ;;  %6227 = vmatmul.mubr.msk.f32.gmra.mxu0 %vm289_vm1, %v2748_v49 }
 0x100   : > { %v7191_v44 = vadd.f32 %v1227_v61, %v835_v47  ;;  %v850_v2 = vadd.f32 %v5912_v54, %v7069_v57  ;;  %6173 = vmatprep.mubr.msk.f32.mxu1 %vm289_vm1, %v2747_v34  ;;  %6229 = vmatprep.mubr.msk.f32.mxu0 %vm289_vm1, %v2749_v41 }
 0x101   : > { %v844_v9 = vpop.f32.mrf.mxu1  ;;  %v1237_v12 = vpop.f32.mrf.mxu0 }
 0x102   : > { %v7198_v15 = vadd.f32 %v5968_v60, %v850_v2  ;;  %v845_v18 = vadd.f32 %v844_v9, %v7078_v63  ;;  %v2753_v63 = vld [vmem:[%s6496_s26 + $0x134] sm:$0xff] }
 0x103   : > { %v5915_v21 = vpop.f32.mrf.mxu1  ;;  %v5971_v24 = vpop.f32.mrf.mxu0  ;;  %6174 = vmatmul.mubr.msk.f32.gmra.mxu1 %vm289_vm1, %v2748_v49  ;;  %6230 = vmatmul.mubr.msk.f32.gmra.mxu0 %vm289_vm1, %v2750_v6  ;;  %v3577_v49 = vld [vmem:[%s6496_s26 + $0x26] sm:$0xff]  ;;  %v3578_v2 = vld [vmem:[%s6496_s26 + $0x2e] sm:$0xff] }
 0x104   : > { %v7203_v57 = vadd.f32 %v1237_v12, %v845_v18  ;;  %v860_v27 = vadd.f32 %v5915_v21, %v7083_v50  ;;  %6176 = vmatprep.mubr.msk.f32.mxu1 %vm289_vm1, %v2749_v41  ;;  %6232 = vmatprep.mubr.msk.f32.mxu0 %vm289_vm1, %v2751_v51  ;;  %v3149_v60 = vld [vmem:[%s6496_s26 + $0x2d] sm:$0xff]  ;;  %v3150_v9 = vld [vmem:[%s6496_s26 + $0x35] sm:$0xff] }
 0x105   : > { %v854_v29 = vpop.f32.mrf.mxu1  ;;  %v1247_v30 = vpop.f32.mrf.mxu0  ;;  %v3579_v12 = vld [vmem:[%s6496_s26 + $0x36] sm:$0xff] }
 0x106   : > { %v7210_v31 = vadd.f32 %v5971_v24, %v860_v27  ;;  %v855_v32 = vadd.f32 %v854_v29, %v7092_v48  ;;  %v3148_v48 = vld [vmem:[%s6496_s26 + $0x25] sm:$0xff] }
 0x107   : > { %v5918_v33 = vpop.f32.mrf.mxu1  ;;  %v5974_v34 = vpop.f32.mrf.mxu0  ;;  %6177 = vmatmul.mubr.msk.f32.gmra.mxu1 %vm289_vm1, %v2750_v6  ;;  %6233 = vmatmul.mubr.msk.f32.gmra.mxu0 %vm289_vm1, %v2752_v28  ;;  %v3580_v29 = vld [vmem:[%s6496_s26 + $0x3e] sm:$0xff] }
 0x108   : > { %v7215_v50 = vadd.f32 %v1247_v30, %v855_v32  ;;  %v870_v36 = vadd.f32 %v5918_v33, %v7097_v56  ;;  %6179 = vmatprep.mubr.msk.f32.mxu1 %vm289_vm1, %v2751_v51  ;;  %6235 = vmatprep.mubr.msk.f32.mxu0 %vm289_vm1, %v2753_v63  ;;  %v3152_v63 = vld [vmem:[%s6496_s26 + $0x45] sm:$0xff] }
 0x109   : > { %v864_v40 = vpop.f32.mrf.mxu1  ;;  %v1257_v43 = vpop.f32.mrf.mxu0  ;;  %v3581_v32 = vld [vmem:[%s6496_s26 + $0x46] sm:$0xff] }
 0x10a   : > { %v7223_v55 = vadd.f32 %v5974_v34, %v870_v36  ;;  %v865_v61 = vadd.f32 %v864_v40, %v7106_v62 }
 0x10b   : > { %v5921_v41 = vpop.f32.mrf.mxu1  ;;  %v5977_v47 = vpop.f32.mrf.mxu0  ;;  %6180 = vmatmul.mubr.msk.f32.gmra.mxu1 %vm289_vm1, %v2752_v28  ;;  %6236 = vmatmul.mubr.msk.f32.gmra.mxu0 %vm289_vm1, %v2754_v37  ;;  %v3151_v28 = vld [vmem:[%s6496_s26 + $0x3d] sm:$0xff] }
 0x10c   : > { %v7228_v56 = vadd.f32 %v1257_v43, %v865_v61  ;;  %v880_v54 = vadd.f32 %v5921_v41, %v7111_v4  ;;  %6240 = vmatprep.mubr.msk.f32.mxu1 %vm289_vm1, %v3148_v48  ;;  %6296 = vmatprep.mubr.msk.f32.mxu0 %vm289_vm1, %v3577_v49  ;;  %v3153_v43 = vld [vmem:[%s6496_s26 + $0x4d] sm:$0xff]  ;;  %v3154_v61 = vld [vmem:[%s6496_s26 + $0x55] sm:$0xff] }
 0x10d   : > { %v874_v6 = vpop.f32.mrf.mxu1  ;;  %v1267_v62 = vpop.f32.mrf.mxu0  ;;  %v3582_v48 = vld [vmem:[%s6496_s26 + $0x4e] sm:$0xff]  ;;  %v3583_v41 = vld [vmem:[%s6496_s26 + $0x56] sm:$0xff] }
 0x10e   : > { %v7237_v51 = vadd.f32 %v5977_v47, %v880_v54  ;;  %v875_v18 = vadd.f32 %v874_v6, %v7120_v7 }
 0x10f   : > { %v5924_v21 = vpop.f32.mrf.mxu1  ;;  %v5980_v4 = vpop.f32.mrf.mxu0  ;;  %6241 = vmatmul.mubr.msk.f32.vlgmr.msra.gmra.mxu1 %vm289_vm1, %v3149_v60  ;;  %6297 = vmatmul.mubr.msk.f32.vlgmr.msra.gmra.mxu0 %vm289_vm1, %v3578_v2 }
 0x110   : > { %v7242_v24 = vadd.f32 %v1267_v62, %v875_v18  ;;  %v890_v27 = vadd.f32 %v5924_v21, %v7125_v10  ;;  %6243 = vmatprep.mubr.msk.f32.mxu1 %vm289_vm1, %v3150_v9  ;;  %6299 = vmatprep.mubr.msk.f32.mxu0 %vm289_vm1, %v3579_v12  ;;  %v3155_v62 = vld [vmem:[%s6496_s26 + $0x5d] sm:$0xff]  ;;  %v3156_v18 = vld [vmem:[%s6496_s26 + $0x65] sm:$0xff] }
 0x111   : > { %v884_v30 = vpop.f32.mrf.mxu1  ;;  %v1277_v7 = vpop.f32.mrf.mxu0  ;;  %v3584_v9 = vld [vmem:[%s6496_s26 + $0x5e] sm:$0xff]  ;;  %v3585_v21 = vld [vmem:[%s6496_s26 + $0x66] sm:$0xff] }
 0x112   : > { %v7251_v33 = vadd.f32 %v5980_v4, %v890_v27  ;;  %v885_v34 = vadd.f32 %v884_v30, %v7134_v13 }
 0x113   : > { %v5927_v36 = vpop.f32.mrf.mxu1  ;;  %v5983_v10 = vpop.f32.mrf.mxu0  ;;  %6244 = vmatmul.mubr.msk.f32.gmra.mxu1 %vm289_vm1, %v3151_v28  ;;  %6300 = vmatmul.mubr.msk.f32.gmra.mxu0 %vm289_vm1, %v3580_v29 }
 0x114   : > { %v7256_v37 = vadd.f32 %v1277_v7, %v885_v34  ;;  %v900_v40 = vadd.f32 %v5927_v36, %v7139_v16  ;;  %6246 = vmatprep.mubr.msk.f32.mxu1 %vm289_vm1, %v3152_v63  ;;  %6302 = vmatprep.mubr.msk.f32.mxu0 %vm289_vm1, %v3581_v32  ;;  %v3157_v7 = vld [vmem:[%s6496_s26 + $0x6d] sm:$0xff]  ;;  %v3158_v34 = vld [vmem:[%s6496_s26 + $0x75] sm:$0xff] }
 0x115   : > { %v894_v49 = vpop.f32.mrf.mxu1  ;;  %v1287_v13 = vpop.f32.mrf.mxu0  ;;  %v3586_v63 = vld [vmem:[%s6496_s26 + $0x6e] sm:$0xff]  ;;  %v3587_v36 = vld [vmem:[%s6496_s26 + $0x76] sm:$0xff] }
 0x116   : > { %v7265_v47 = vadd.f32 %v5983_v10, %v900_v40  ;;  %v895_v54 = vadd.f32 %v894_v49, %v7148_v19 }
 0x117   : > { %v5930_v60 = vpop.f32.mrf.mxu1  ;;  %v5986_v16 = vpop.f32.mrf.mxu0  ;;  %6247 = vmatmul.mubr.msk.f32.gmra.mxu1 %vm289_vm1, %v3153_v43  ;;  %6303 = vmatmul.mubr.msk.f32.gmra.mxu0 %vm289_vm1, %v3582_v48 }
 0x118   : > { %v7270_v2 = vadd.f32 %v1287_v13, %v895_v54  ;;  %v910_v6 = vadd.f32 %v5930_v60, %v7153_v22  ;;  %6249 = vmatprep.mubr.msk.f32.mxu1 %vm289_vm1, %v3154_v61  ;;  %6305 = vmatprep.mubr.msk.f32.mxu0 %vm289_vm1, %v3583_v41  ;;  %v3159_v13 = vld [vmem:[%s6496_s26 + $0x7d] sm:$0xff]  ;;  %v3160_v54 = vld [vmem:[%s6496_s26 + $0x85] sm:$0xff] }
 0x119   : > { %v904_v12 = vpop.f32.mrf.mxu1  ;;  %v1297_v19 = vpop.f32.mrf.mxu0  ;;  %v3588_v61 = vld [vmem:[%s6496_s26 + $0x7e] sm:$0xff]  ;;  %v3589_v60 = vld [vmem:[%s6496_s26 + $0x86] sm:$0xff] }
 0x11a   : > { %v7279_v4 = vadd.f32 %v5986_v16, %v910_v6  ;;  %v905_v27 = vadd.f32 %v904_v12, %v7162_v25 }
 0x11b   : > { %v5933_v28 = vpop.f32.mrf.mxu1  ;;  %v5989_v22 = vpop.f32.mrf.mxu0  ;;  %6250 = vmatmul.mubr.msk.f32.gmra.mxu1 %vm289_vm1, %v3155_v62  ;;  %6306 = vmatmul.mubr.msk.f32.gmra.mxu0 %vm289_vm1, %v3584_v9 }
 0x11c   : > { %v7284_v29 = vadd.f32 %v1297_v19, %v905_v27  ;;  %v920_v30 = vadd.f32 %v5933_v28, %v7043_v39  ;;  %6252 = vmatprep.mubr.msk.f32.mxu1 %vm289_vm1, %v3156_v18  ;;  %6308 = vmatprep.mubr.msk.f32.mxu0 %vm289_vm1, %v3585_v21  ;;  %v3161_v19 = vld [vmem:[%s6496_s26 + $0x8d] sm:$0xff]  ;;  %v3162_v27 = vld [vmem:[%s6496_s26 + $0x95] sm:$0xff] }
 0x11d   : > { %v914_v32 = vpop.f32.mrf.mxu1  ;;  %v1307_v25 = vpop.f32.mrf.mxu0  ;;  %v3590_v18 = vld [vmem:[%s6496_s26 + $0x8e] sm:$0xff]  ;;  %v3591_v28 = vld [vmem:[%s6496_s26 + $0x96] sm:$0xff] }
 0x11e   : > { %v7293_v10 = vadd.f32 %v5989_v22, %v920_v30  ;;  %v915_v40 = vadd.f32 %v914_v32, %v7052_v42 }
 0x11f   : > { %v5936_v43 = vpop.f32.mrf.mxu1  ;;  %v5992_v39 = vpop.f32.mrf.mxu0  ;;  %6253 = vmatmul.mubr.msk.f32.gmra.mxu1 %vm289_vm1, %v3157_v7  ;;  %6309 = vmatmul.mubr.msk.f32.gmra.mxu0 %vm289_vm1, %v3586_v63 }
 0x120   : > { %v7298_v48 = vadd.f32 %v1307_v25, %v915_v40  ;;  %v930_v49 = vadd.f32 %v5936_v43, %v7057_v45  ;;  %6255 = vmatprep.mubr.msk.f32.mxu1 %vm289_vm1, %v3158_v34  ;;  %6311 = vmatprep.mubr.msk.f32.mxu0 %vm289_vm1, %v3587_v36  ;;  %v3163_v25 = vld [vmem:[%s6496_s26 + $0x9d] sm:$0xff]  ;;  %v3164_v40 = vld [vmem:[%s6496_s26 + $0xa5] sm:$0xff] }
 0x121   : > { %v924_v41 = vpop.f32.mrf.mxu1  ;;  %v1317_v42 = vpop.f32.mrf.mxu0  ;;  %v3592_v34 = vld [vmem:[%s6496_s26 + $0x9e] sm:$0xff]  ;;  %v3593_v43 = vld [vmem:[%s6496_s26 + $0xa6] sm:$0xff] }
 0x122   : > { %v7307_v16 = vadd.f32 %v5992_v39, %v930_v49  ;;  %v925_v6 = vadd.f32 %v924_v41, %v7066_v53 }
 0x123   : > { %v5939_v62 = vpop.f32.mrf.mxu1  ;;  %v5995_v45 = vpop.f32.mrf.mxu0  ;;  %6256 = vmatmul.mubr.msk.f32.gmra.mxu1 %vm289_vm1, %v3159_v13  ;;  %6312 = vmatmul.mubr.msk.f32.gmra.mxu0 %vm289_vm1, %v3588_v61 }
 0x124   : > { %v7312_v9 = vadd.f32 %v1317_v42, %v925_v6  ;;  %v940_v12 = vadd.f32 %v5939_v62, %v7071_v59  ;;  %6258 = vmatprep.mubr.msk.f32.mxu1 %vm289_vm1, %v3160_v54  ;;  %6314 = vmatprep.mubr.msk.f32.mxu0 %vm289_vm1, %v3589_v60  ;;  %v3165_v42 = vld [vmem:[%s6496_s26 + $0xad] sm:$0xff]  ;;  %v3166_v6 = vld [vmem:[%s6496_s26 + $0xb5] sm:$0xff] }
 0x125   : > { %v934_v21 = vpop.f32.mrf.mxu1  ;;  %v1327_v53 = vpop.f32.mrf.mxu0  ;;  %v3594_v54 = vld [vmem:[%s6496_s26 + $0xae] sm:$0xff]  ;;  %v3595_v62 = vld [vmem:[%s6496_s26 + $0xb6] sm:$0xff] }
 0x126   : > { %v7321_v22 = vadd.f32 %v5995_v45, %v940_v12  ;;  %v935_v30 = vadd.f32 %v934_v21, %v7080_v1 }
 0x127   : > { %v5942_v7 = vpop.f32.mrf.mxu1  ;;  %v5998_v59 = vpop.f32.mrf.mxu0  ;;  %6259 = vmatmul.mubr.msk.f32.gmra.mxu1 %vm289_vm1, %v3161_v19  ;;  %6315 = vmatmul.mubr.msk.f32.gmra.mxu0 %vm289_vm1, %v3590_v18 }
 0x128   : > { %v7326_v63 = vadd.f32 %v1327_v53, %v935_v30  ;;  %v950_v32 = vadd.f32 %v5942_v7, %v7085_v3  ;;  %6261 = vmatprep.mubr.msk.f32.mxu1 %vm289_vm1, %v3162_v27  ;;  %6317 = vmatprep.mubr.msk.f32.mxu0 %vm289_vm1, %v3591_v28  ;;  %v3167_v53 = vld [vmem:[%s6496_s26 + $0xbd] sm:$0xff]  ;;  %v3168_v30 = vld [vmem:[%s6496_s26 + $0xc5] sm:$0xff] }
 0x129   : > { %v944_v36 = vpop.f32.mrf.mxu1  ;;  %v1337_v1 = vpop.f32.mrf.mxu0  ;;  %v3596_v27 = vld [vmem:[%s6496_s26 + $0xbe] sm:$0xff]  ;;  %v3597_v7 = vld [vmem:[%s6496_s26 + $0xc6] sm:$0xff] }
 0x12a   : > { %v7335_v39 = vadd.f32 %v5998_v59, %v950_v32  ;;  %v945_v49 = vadd.f32 %v944_v36, %v7094_v52 }
 0x12b   : > { %v5945_v13 = vpop.f32.mrf.mxu1  ;;  %v6001_v3 = vpop.f32.mrf.mxu0  ;;  %6262 = vmatmul.mubr.msk.f32.gmra.mxu1 %vm289_vm1, %v3163_v25  ;;  %6318 = vmatmul.mubr.msk.f32.gmra.mxu0 %vm289_vm1, %v3592_v34 }
 0x12c   : > { %v7340_v61 = vadd.f32 %v1337_v1, %v945_v49  ;;  %v960_v41 = vadd.f32 %v5945_v13, %v7099_v58  ;;  %6264 = vmatprep.mubr.msk.f32.mxu1 %vm289_vm1, %v3164_v40  ;;  %6320 = vmatprep.mubr.msk.f32.mxu0 %vm289_vm1, %v3593_v43  ;;  %v3169_v1 = vld [vmem:[%s6496_s26 + $0xcd] sm:$0xff]  ;;  %v3170_v49 = vld [vmem:[%s6496_s26 + $0xd5] sm:$0xff] }
 0x12d   : > { %v954_v60 = vpop.f32.mrf.mxu1  ;;  %v1347_v52 = vpop.f32.mrf.mxu0  ;;  %v3598_v40 = vld [vmem:[%s6496_s26 + $0xce] sm:$0xff]  ;;  %v3599_v13 = vld [vmem:[%s6496_s26 + $0xd6] sm:$0xff] }
 0x12e   : > { %v7349_v45 = vadd.f32 %v6001_v3, %v960_v41  ;;  %v955_v12 = vadd.f32 %v954_v60, %v7108_v0 }
 0x12f   : > { %v5948_v19 = vpop.f32.mrf.mxu1  ;;  %v6004_v58 = vpop.f32.mrf.mxu0  ;;  %6265 = vmatmul.mubr.msk.f32.gmra.mxu1 %vm289_vm1, %v3165_v42  ;;  %6321 = vmatmul.mubr.msk.f32.gmra.mxu0 %vm289_vm1, %v3594_v54 }
 0x130   : > { %v7354_v18 = vadd.f32 %v1347_v52, %v955_v12  ;;  %v970_v21 = vadd.f32 %v5948_v19, %v7113_v5  ;;  %6267 = vmatprep.mubr.msk.f32.mxu1 %vm289_vm1, %v3166_v6  ;;  %6323 = vmatprep.mubr.msk.f32.mxu0 %vm289_vm1, %v3595_v62  ;;  %v3171_v52 = vld [vmem:[%s6496_s26 + $0xdd] sm:$0xff]  ;;  %v3172_v12 = vld [vmem:[%s6496_s26 + $0xe5] sm:$0xff] }
 0x131   : > { %v964_v28 = vpop.f32.mrf.mxu1  ;;  %v1357_v0 = vpop.f32.mrf.mxu0  ;;  %v3600_v6 = vld [vmem:[%s6496_s26 + $0xde] sm:$0xff]  ;;  %v3601_v19 = vld [vmem:[%s6496_s26 + $0xe6] sm:$0xff] }
 0x132   : > { %v7363_v59 = vadd.f32 %v6004_v58, %v970_v21  ;;  %v965_v32 = vadd.f32 %v964_v28, %v7122_v8 }
 0x133   : > { %v5951_v25 = vpop.f32.mrf.mxu1  ;;  %v6007_v5 = vpop.f32.mrf.mxu0  ;;  %6268 = vmatmul.mubr.msk.f32.gmra.mxu1 %vm289_vm1, %v3167_v53  ;;  %6324 = vmatmul.mubr.msk.f32.gmra.mxu0 %vm289_vm1, %v3596_v27 }
 0x134   : > { %v7368_v34 = vadd.f32 %v1357_v0, %v965_v32  ;;  %v980_v36 = vadd.f32 %v5951_v25, %v7127_v11  ;;  %6270 = vmatprep.mubr.msk.f32.mxu1 %vm289_vm1, %v3168_v30  ;;  %6326 = vmatprep.mubr.msk.f32.mxu0 %vm289_vm1, %v3597_v7  ;;  %v3173_v0 = vld [vmem:[%s6496_s26 + $0xed] sm:$0xff]  ;;  %v3174_v32 = vld [vmem:[%s6496_s26 + $0xf5] sm:$0xff] }
 0x135   : > { %v974_v43 = vpop.f32.mrf.mxu1  ;;  %v1367_v8 = vpop.f32.mrf.mxu0  ;;  %v3602_v30 = vld [vmem:[%s6496_s26 + $0xee] sm:$0xff]  ;;  %v3603_v25 = vld [vmem:[%s6496_s26 + $0xf6] sm:$0xff] }
 0x136   : > { %v7377_v3 = vadd.f32 %v6007_v5, %v980_v36  ;;  %v975_v41 = vadd.f32 %v974_v43, %v7136_v14 }
 0x137   : > { %v5954_v42 = vpop.f32.mrf.mxu1  ;;  %v6010_v11 = vpop.f32.mrf.mxu0  ;;  %6271 = vmatmul.mubr.msk.f32.gmra.mxu1 %vm289_vm1, %v3169_v1  ;;  %6327 = vmatmul.mubr.msk.f32.gmra.mxu0 %vm289_vm1, %v3598_v40 }
 0x138   : > { %v7382_v54 = vadd.f32 %v1367_v8, %v975_v41  ;;  %v990_v60 = vadd.f32 %v5954_v42, %v7141_v17  ;;  %6273 = vmatprep.mubr.msk.f32.mxu1 %vm289_vm1, %v3170_v49  ;;  %6329 = vmatprep.mubr.msk.f32.mxu0 %vm289_vm1, %v3599_v13  ;;  %v3175_v8 = vld [vmem:[%s6496_s26 + $0xfd] sm:$0xff]  ;;  %v3176_v41 = vld [vmem:[%s6496_s26 + $0x105] sm:$0xff] }
 0x139   : > { %v984_v62 = vpop.f32.mrf.mxu1  ;;  %v1377_v14 = vpop.f32.mrf.mxu0  ;;  %v3604_v49 = vld [vmem:[%s6496_s26 + $0xfe] sm:$0xff]  ;;  %v3605_v42 = vld [vmem:[%s6496_s26 + $0x106] sm:$0xff] }
 0x13a   : > { %v7391_v58 = vadd.f32 %v6010_v11, %v990_v60  ;;  %v985_v21 = vadd.f32 %v984_v62, %v7150_v20 }
 0x13b   : > { %v5957_v53 = vpop.f32.mrf.mxu1  ;;  %v6013_v17 = vpop.f32.mrf.mxu0  ;;  %6274 = vmatmul.mubr.msk.f32.gmra.mxu1 %vm289_vm1, %v3171_v52  ;;  %6330 = vmatmul.mubr.msk.f32.gmra.mxu0 %vm289_vm1, %v3600_v6 }
 0x13c   : > { %v7396_v27 = vadd.f32 %v1377_v14, %v985_v21  ;;  %v1000_v28 = vadd.f32 %v5957_v53, %v7155_v23  ;;  %6276 = vmatprep.mubr.msk.f32.mxu1 %vm289_vm1, %v3172_v12  ;;  %6332 = vmatprep.mubr.msk.f32.mxu0 %vm289_vm1, %v3601_v19  ;;  %v3177_v14 = vld [vmem:[%s6496_s26 + $0x10d] sm:$0xff]  ;;  %v3178_v21 = vld [vmem:[%s6496_s26 + $0x115] sm:$0xff] }
 0x13d   : > { %v994_v7 = vpop.f32.mrf.mxu1  ;;  %v1387_v20 = vpop.f32.mrf.mxu0  ;;  %v3606_v12 = vld [vmem:[%s6496_s26 + $0x10e] sm:$0xff]  ;;  %v3607_v53 = vld [vmem:[%s6496_s26 + $0x116] sm:$0xff] }
 0x13e   : > { %v7405_v5 = vadd.f32 %v6013_v17, %v1000_v28  ;;  %v995_v36 = vadd.f32 %v994_v7, %v7164_v26 }
 0x13f   : > { %v6018_v1 = vpop.f32.mrf.mxu1  ;;  %v6074_v23 = vpop.f32.mrf.mxu0  ;;  %6277 = vmatmul.mubr.msk.f32.gmra.mxu1 %vm289_vm1, %v3173_v0  ;;  %6333 = vmatmul.mubr.msk.f32.gmra.mxu0 %vm289_vm1, %v3602_v30 }
 0x140   : > { %v7410_v40 = vadd.f32 %v1387_v20, %v995_v36  ;;  %v1826_v43 = vadd.f32 %v6018_v1, %v7174_v35  ;;  %6279 = vmatprep.mubr.msk.f32.mxu1 %vm289_vm1, %v3174_v32  ;;  %6335 = vmatprep.mubr.msk.f32.mxu0 %vm289_vm1, %v3603_v25  ;;  %v3179_v20 = vld [vmem:[%s6496_s26 + $0x11d] sm:$0xff]  ;;  %v3180_v36 = vld [vmem:[%s6496_s26 + $0x125] sm:$0xff] }
 0x141   : > { %v1646_v13 = vpop.f32.mrf.mxu1  ;;  %v2075_v26 = vpop.f32.mrf.mxu0  ;;  %v3608_v32 = vld [vmem:[%s6496_s26 + $0x11e] sm:$0xff]  ;;  %v3609_v1 = vld [vmem:[%s6496_s26 + $0x126] sm:$0xff] }
 0x142   : > { %v7419_v11 = vadd.f32 %v6074_v23, %v1826_v43  ;;  %v1825_v60 = vadd.f32 %v1646_v13, %v7179_v38 }
 0x143   : > { %v6021_v52 = vpop.f32.mrf.mxu1  ;;  %v6077_v35 = vpop.f32.mrf.mxu0  ;;  %6280 = vmatmul.mubr.msk.f32.gmra.mxu1 %vm289_vm1, %v3175_v8  ;;  %6336 = vmatmul.mubr.msk.f32.gmra.mxu0 %vm289_vm1, %v3604_v49 }
 0x144   : > { %v7424_v6 = vadd.f32 %v2075_v26, %v1825_v60  ;;  %v1828_v62 = vadd.f32 %v6021_v52, %v7186_v46  ;;  %6282 = vmatprep.mubr.msk.f32.mxu1 %vm289_vm1, %v3176_v41  ;;  %6338 = vmatprep.mubr.msk.f32.mxu0 %vm289_vm1, %v3605_v42  ;;  %v3181_v26 = vld [vmem:[%s6496_s26 + $0x12d] sm:$0xff]  ;;  %v3182_v60 = vld [vmem:[%s6496_s26 + $0x135] sm:$0xff] }
 0x145   : > { %v1656_v19 = vpop.f32.mrf.mxu1  ;;  %v2085_v38 = vpop.f32.mrf.mxu0  ;;  %v3610_v41 = vld [vmem:[%s6496_s26 + $0x12e] sm:$0xff]  ;;  %v3611_v52 = vld [vmem:[%s6496_s26 + $0x136] sm:$0xff] }
 0x146   : > { %v7433_v17 = vadd.f32 %v6077_v35, %v1828_v62  ;;  %v1827_v28 = vadd.f32 %v1656_v19, %v7191_v44 }
 0x147   : > { %v6024_v0 = vpop.f32.mrf.mxu1  ;;  %v6080_v46 = vpop.f32.mrf.mxu0  ;;  %6283 = vmatmul.mubr.msk.f32.gmra.mxu1 %vm289_vm1, %v3177_v14  ;;  %6339 = vmatmul.mubr.msk.f32.gmra.mxu0 %vm289_vm1, %v3606_v12 }
 0x148   : > { %v7438_v30 = vadd.f32 %v2085_v38, %v1827_v28  ;;  %v1830_v7 = vadd.f32 %v6024_v0, %v7198_v15  ;;  %6285 = vmatprep.mubr.msk.f32.mxu1 %vm289_vm1, %v3178_v21  ;;  %6341 = vmatprep.mubr.msk.f32.mxu0 %vm289_vm1, %v3607_v53  ;;  %v3183_v38 = vld [vmem:[%s6496_s26 + $0x13d] sm:$0xff] }
 0x149   : > { %v1666_v25 = vpop.f32.mrf.mxu1  ;;  %v2095_v44 = vpop.f32.mrf.mxu0  ;;  %v3612_v21 = vld [vmem:[%s6496_s26 + $0x13e] sm:$0xff] }
 0x14a   : > { %v7447_v23 = vadd.f32 %v6080_v46, %v1830_v7  ;;  %v1829_v43 = vadd.f32 %v1666_v25, %v7203_v57 }
 0x14b   : > { %v6027_v8 = vpop.f32.mrf.mxu1  ;;  %v6083_v15 = vpop.f32.mrf.mxu0  ;;  %6286 = vmatmul.mubr.msk.f32.gmra.mxu1 %vm289_vm1, %v3179_v20  ;;  %6342 = vmatmul.mubr.msk.f32.gmra.mxu0 %vm289_vm1, %v3608_v32 }
 0x14c   : > { %v7452_v49 = vadd.f32 %v2095_v44, %v1829_v43  ;;  %v1832_v13 = vadd.f32 %v6027_v8, %v7210_v31  ;;  %6288 = vmatprep.mubr.msk.f32.mxu1 %vm289_vm1, %v3180_v36  ;;  %6344 = vmatprep.mubr.msk.f32.mxu0 %vm289_vm1, %v3609_v1 }
 0x14d   : > { %v1676_v42 = vpop.f32.mrf.mxu1  ;;  %v2105_v57 = vpop.f32.mrf.mxu0 }
 0x14e   : > { %v7461_v35 = vadd.f32 %v6083_v15, %v1832_v13  ;;  %v1831_v62 = vadd.f32 %v1676_v42, %v7215_v50 }
 0x14f   : > { %v6030_v14 = vpop.f32.mrf.mxu1  ;;  %v6086_v12 = vpop.f32.mrf.mxu0  ;;  %6289 = vmatmul.mubr.msk.f32.gmra.mxu1 %vm289_vm1, %v3181_v26  ;;  %6345 = vmatmul.mubr.msk.f32.gmra.mxu0 %vm289_vm1, %v3610_v41 }
 0x150   : > { %v7466_v31 = vadd.f32 %v2105_v57, %v1831_v62  ;;  %v1834_v19 = vadd.f32 %v6030_v14, %v7223_v55  ;;  %6291 = vmatprep.mubr.msk.f32.mxu1 %vm289_vm1, %v3182_v60  ;;  %6347 = vmatprep.mubr.msk.f32.mxu0 %vm289_vm1, %v3611_v52 }
 0x151   : > { %v1686_v53 = vpop.f32.mrf.mxu1  ;;  %v2115_v28 = vpop.f32.mrf.mxu0 }
 0x152   : > { %v7473_v0 = vadd.f32 %v6086_v12, %v1834_v19  ;;  %v1833_v50 = vadd.f32 %v1686_v53, %v7228_v56 }
 0x153   : > { %v6033_v46 = vpop.f32.mrf.mxu1  ;;  %v6089_v7 = vpop.f32.mrf.mxu0  ;;  %6292 = vmatmul.mubr.msk.f32.gmra.mxu1 %vm289_vm1, %v3183_v38  ;;  %6348 = vmatmul.mubr.msk.f32.gmra.mxu0 %vm289_vm1, %v3612_v21 }
 0x154   : > { %v7478_v20 = vadd.f32 %v2115_v28, %v1833_v50  ;;  %v1836_v55 = vadd.f32 %v6033_v46, %v7237_v51 }
 0x155   : > { %v1696_v32 = vpop.f32.mrf.mxu1  ;;  %v2125_v25 = vpop.f32.mrf.mxu0 }
 0x156   : > { %v7481_v44 = vadd.f32 %v6089_v7, %v1836_v55  ;;  %v1835_v36 = vadd.f32 %v1696_v32, %v7242_v24  ;;  %v4043_v32 = vlaneseq }
 0x157   : > { %v6036_v1 = vpop.f32.mrf.mxu1  ;;  %v6092_v43 = vpop.f32.mrf.mxu0 }
 0x158   : > { %v7484_v8 = vadd.f32 %v2125_v25, %v1835_v36  ;;  %v1838_v56 = vadd.f32 %v6036_v1, %v7251_v33 }
 0x159   : > { %v1706_v15 = vpop.f32.mrf.mxu1  ;;  %v2135_v13 = vpop.f32.mrf.mxu0 }
 0x15a   : > { %v7487_v26 = vadd.f32 %v6092_v43, %v1838_v56  ;;  %v1837_v41 = vadd.f32 %v1706_v15, %v7256_v37 }
 0x15b   : > { %v6039_v42 = vpop.f32.mrf.mxu1  ;;  %v6095_v51 = vpop.f32.mrf.mxu0 }
 0x15c   : > { %v7490_v57 = vadd.f32 %v2135_v13, %v1837_v41  ;;  %v1840_v60 = vadd.f32 %v6039_v42, %v7265_v47  ;;  %v7511_v13 = vshrl.u32 %v4043_v32, 7 }
 0x15d   : > { %v1716_v52 = vpop.f32.mrf.mxu1  ;;  %v2145_v24 = vpop.f32.mrf.mxu0 }
 0x15e   : > { %v7493_v62 = vadd.f32 %v6095_v51, %v1840_v60  ;;  %v1839_v14 = vadd.f32 %v1716_v52, %v7270_v2 }
 0x15f   : > { %v6042_v12 = vpop.f32.mrf.mxu1  ;;  %v6098_v33 = vpop.f32.mrf.mxu0 }
 0x160   : > { %v7496_v19 = vadd.f32 %v2145_v24, %v1839_v14  ;;  %v1842_v38 = vadd.f32 %v6042_v12, %v7279_v4  ;;  %v4045_v14 = vadd.s32 8, %v7511_v13 }
 0x161   : > { %v1726_v21 = vpop.f32.mrf.mxu1  ;;  %v2155_v37 = vpop.f32.mrf.mxu0 }
 0x162   : > { %v7499_v53 = vadd.f32 %v6098_v33, %v1842_v38  ;;  %v1841_v28 = vadd.f32 %v1726_v21, %v7284_v29 }
 0x163   : > { %v6045_v50 = vpop.f32.mrf.mxu1  ;;  %v6101_v47 = vpop.f32.mrf.mxu0 }
 0x164   : > { %v7502_v46 = vadd.f32 %v2155_v37, %v1841_v28  ;;  %v1844_v7 = vadd.f32 %v6045_v50, %v7293_v10 }
 0x165   : > { %v1736_v55 = vpop.f32.mrf.mxu1  ;;  %v2165_v2 = vpop.f32.mrf.mxu0 }
 0x166   : > { %v7505_v25 = vadd.f32 %v6101_v47, %v1844_v7  ;;  %v1843_v36 = vadd.f32 %v1736_v55, %v7298_v48  ;;  %v7526_v50 = vmul.u32.u64.low 3817748708, %v4045_v14  ;;  %v7527_v47 = vmul.u32.u64.high 3817748708, %v4045_v14, %v7526_v50 }
 0x167   : > { %v6048_v4 = vpop.f32.mrf.mxu1  ;;  %v6104_v1 = vpop.f32.mrf.mxu0 }
 0x168   : > { %v7508_v43 = vadd.f32 %v2165_v2, %v1843_v36  ;;  %v1846_v56 = vadd.f32 %v6048_v4, %v7307_v16 }
 0x169   : > { %v1746_v29 = vpop.f32.mrf.mxu1  ;;  %v2175_v15 = vpop.f32.mrf.mxu0 }
 0x16a   : > { %v7513_v41 = vadd.f32 %v6104_v1, %v1846_v56  ;;  %v1845_v10 = vadd.f32 %v1746_v29, %v7312_v9  ;;  %v7540_v56 = vadd.s32 24, %v7511_v13 }
 0x16b   : > { %v6051_v42 = vpop.f32.mrf.mxu1  ;;  %v6107_v51 = vpop.f32.mrf.mxu0 }
 0x16c   : > { %v7516_v60 = vadd.f32 %v2175_v15, %v1845_v10  ;;  %v1848_v48 = vadd.f32 %v6051_v42, %v7321_v22 }
 0x16d   : > { %v1756_v52 = vpop.f32.mrf.mxu1  ;;  %v2185_v24 = vpop.f32.mrf.mxu0 }
 0x16e   : > { %v7520_v12 = vadd.f32 %v6107_v51, %v1848_v48  ;;  %v1847_v16 = vadd.f32 %v1756_v52, %v7326_v63  ;;  %v7533_v32 = vmul.u32.u64.low 3817748708, %v7511_v13  ;;  %v7534_v63 = vmul.u32.u64.high 3817748708, %v7511_v13, %v7533_v32 }
 0x16f   : > { %v6054_v33 = vpop.f32.mrf.mxu1  ;;  %v6110_v38 = vpop.f32.mrf.mxu0 }
 0x170   : > { %v7523_v21 = vadd.f32 %v2185_v24, %v1847_v16  ;;  %v1850_v9 = vadd.f32 %v6054_v33, %v7335_v39  ;;  %v4097_v24 = vshrl.u32 %v7527_v47, 4  ;;  %v7554_v33 = vadd.s32 16, %v7511_v13 }
 0x171   : > { %v1766_v37 = vpop.f32.mrf.mxu1  ;;  %v2195_v28 = vpop.f32.mrf.mxu0 }
 0x172   : > { %v7529_v22 = vadd.f32 %v6110_v38, %v1850_v9  ;;  %v1849_v7 = vadd.f32 %v1766_v37, %v7340_v61 }
 0x173   : > { %v6057_v55 = vpop.f32.mrf.mxu1  ;;  %v6113_v2 = vpop.f32.mrf.mxu0 }
 0x174   : > { %v7536_v36 = vadd.f32 %v2195_v28, %v1849_v7  ;;  %v1852_v4 = vadd.f32 %v6057_v55, %v7349_v45  ;;  %v7550_v45 = vmul.u32.u64.low 3817748708, %v7540_v56  ;;  %v7551_v16 = vmul.u32.u64.high 3817748708, %v7540_v56, %v7550_v45 }
 0x175   : > { %v1776_v39 = vpop.f32.mrf.mxu1  ;;  %v2205_v1 = vpop.f32.mrf.mxu0  ;;  %v4086_v28 = vshrl.u32 %v7534_v63, 4 }
 0x176   : > { %v7542_v29 = vadd.f32 %v6113_v2, %v1852_v4  ;;  %v1851_v15 = vadd.f32 %v1776_v39, %v7354_v18  ;;  %v4098_v2 = vmul.u32 18, %v4097_v24 }
 0x177   : > { %v6060_v61 = vpop.f32.mrf.mxu1  ;;  %v6116_v10 = vpop.f32.mrf.mxu0  ;;  %v7567_v32 = vmul.u32.u64.low 3817748708, %v7554_v33  ;;  %v7568_v4 = vmul.u32.u64.high 3817748708, %v7554_v33, %v7567_v32 }
 0x178   : > { %v7545_v42 = vadd.f32 %v2205_v1, %v1851_v15  ;;  %v1854_v51 = vadd.f32 %v6060_v61, %v7363_v59  ;;  %v7561_v59 = vadd.s32 40, %v7511_v13  ;;  %v4087_v61 = vmul.u32 18, %v4086_v28 }
 0x179   : > { %v1786_v48 = vpop.f32.mrf.mxu1  ;;  %v2215_v52 = vpop.f32.mrf.mxu0 }
 0x17a   : > { %v7556_v38 = vadd.f32 %v6116_v10, %v1854_v51  ;;  %v1853_v18 = vadd.f32 %v1786_v48, %v7368_v34  ;;  %v7571_v34 = vadd.s32 32, %v7511_v13  ;;  %v7581_v51 = vadd.s32 56, %v7511_v13 }
 0x17b   : > { %v6063_v9 = vpop.f32.mrf.mxu1  ;;  %v6119_v37 = vpop.f32.mrf.mxu0 }
 0x17c   : > { %v7563_v50 = vadd.f32 %v2215_v52, %v1853_v18  ;;  %v1856_v47 = vadd.f32 %v6063_v9, %v7377_v3  ;;  %v7577_v10 = vmul.u32.u64.low 3817748708, %v7561_v59  ;;  %v7578_v3 = vmul.u32.u64.high 3817748708, %v7561_v59, %v7577_v10 }
 0x17d   : > { %v1796_v7 = vpop.f32.mrf.mxu1  ;;  %v2225_v55 = vpop.f32.mrf.mxu0  ;;  %v7586_v18 = vsub.s32 %v4045_v14, %v4098_v2  ;;  %v7603_v14 = vmul.u32.u64.low 3817748708, %v7581_v51  ;;  %v7604_v2 = vmul.u32.u64.high 3817748708, %v7581_v51, %v7603_v14  ;;  %v4108_v10 = vshrl.u32 %v7568_v4, 4 }
 0x17e   : > { %v7573_v39 = vadd.f32 %v6119_v37, %v1856_v47  ;;  %v1855_v63 = vadd.f32 %v1796_v7, %v7382_v54  ;;  %v4119_v54 = vshrl.u32 %v7551_v16, 4  ;;  %v7597_v7 = vadd.s32 48, %v7511_v13 }
 0x17f   : > { %v6066_v1 = vpop.f32.mrf.mxu1  ;;  %v6122_v15 = vpop.f32.mrf.mxu0  ;;  %9676 = vst [vmem:[#allocation2_spill] sm:$0xff] %v7586_v18  ;;  %v7590_v9 = vmul.u32.u64.low 3817748708, %v7571_v34  ;;  %v7591_v37 = vmul.u32.u64.high 3817748708, %v7571_v34, %v7590_v9  ;;  %vm4477_vm2 = vcmp.ne.s32.totalorder %v7586_v18, 0  ;;  %vm4513_vm3 = vcmp.lt.s32.totalorder %v7586_v18, 0 }
 0x180   : > { %v7583_v48 = vadd.f32 %v2225_v55, %v1855_v63  ;;  %v1858_v52 = vadd.f32 %v6066_v1, %v7391_v58  ;;  %v7600_v58 = vsub.s32 %v7511_v13, %v4087_v61  ;;  %vm7632_vm6 = vmand %vm4513_vm3, %vm4477_vm2  ;;  %v9789_v14 = vmov 0 }
 0x181   : > { %v1806_v24 = vpop.f32.mrf.mxu1  ;;  %v2235_v45 = vpop.f32.mrf.mxu0 }
 0x182   : > { %v7593_v28 = vadd.f32 %v6122_v15, %v1858_v52  ;;  %v1857_v47 = vadd.f32 %v1806_v24, %v7396_v27  ;;  %9677 = vst [vmem:[#allocation3_spill] sm:$0xff] %v7600_v58  ;;  %v4120_v27 = vmul.u32 18, %v4119_v54  ;;  %vm4476_vm4 = vcmp.ne.s32.totalorder %v7600_v58, 0 }
 0x183   : > { %v6069_v55 = vpop.f32.mrf.mxu1  ;;  %v6125_v32 = vpop.f32.mrf.mxu0  ;;  %v7616_v24 = vmul.u32.u64.low 3817748708, %v7597_v7  ;;  %v7617_v9 = vmul.u32.u64.high 3817748708, %v7597_v7, %v7616_v24  ;;  %vm4512_vm5 = vcmp.lt.s32.totalorder %v7600_v58, 0  ;;  %v7626_v54 = vadd.s32 18, %v7586_v18 }
 0x184   : > { %v7606_v16 = vadd.f32 %v2235_v45, %v1857_v47  ;;  %v1860_v63 = vadd.f32 %v6069_v55, %v7405_v5  ;;  %v4141_v5 = vshrl.u32 %v7578_v3, 4  ;;  %v7640_v3 = vsub.s32 %v7540_v56, %v4120_v27  ;;  %vm7648_vm7 = vmand %vm4512_vm5, %vm4476_vm4 }
 0x185   : > { %v1816_v1 = vpop.f32.mrf.mxu1  ;;  %v2245_v15 = vpop.f32.mrf.mxu0  ;;  %v4109_v24 = vmul.u32 18, %v4108_v10  ;;  %v7654_v56 = vadd.s32 72, %v7511_v13 }
 0x186   : > { %9678 = vst [vmem:[#allocation4_spill] sm:$0xff] %v7606_v16  ;;  %v7612_v52 = vadd.f32 %v6125_v32, %v1860_v63  ;;  %v1859_v61 = vadd.f32 %v1816_v1, %v7410_v40  ;;  %v7637_v63 = vadd.s32 18, %v7600_v58  ;;  %9684 = vst [vmem:[#allocation8_spill] sm:$0xff] %v7640_v3  ;;  %v4163_v16 = vshrl.u32 %v7604_v2, 4 }
 0x187   : > { %v6130_v45 = vpop.f32.mrf.mxu1  ;;  %v6186_v47 = vpop.f32.mrf.mxu0  ;;  %vm4479_vm8 = vcmp.ne.s32.totalorder %v7640_v3, 0  ;;  %vm4515_vm9 = vcmp.lt.s32.totalorder %v7640_v3, 0 }
 0x188   : > { %9679 = vst [vmem:[#allocation5_spill] sm:$0xff] %v7612_v52  ;;  %v7622_v55 = vadd.f32 %v2245_v15, %v1859_v61  ;;  %v2684_v4 = vadd.f32 %v6130_v45, %v7419_v11  ;;  %9683 = vst [vmem:[#allocation7_spill] sm:$0xff] %v7637_v63  ;;  %v4130_v11 = vshrl.u32 %v7591_v37, 4  ;;  %v9686_v61 = vmov 0 }
 0x189   : > { %v2504_v40 = vpop.f32.mrf.mxu1  ;;  %v2933_v32 = vpop.f32.mrf.mxu0  ;;  %v9687_v61 = vsel %vm7648_vm7, 4294967295, %v9686_v61  ;;  %v4142_v52 = vmul.u32 18, %v4141_v5  ;;  %v4164_v2 = vmul.u32 18, %v4163_v16  ;;  %vm7754_vm0 = vmand %vm4515_vm9, %vm4479_vm8 }
 0x18a   : > { %9680 = vst [vmem:[#allocation6_spill] sm:$0xff] %v7622_v55  ;;  %v7643_v1 = vadd.f32 %v6186_v47, %v2684_v4  ;;  %v2683_v15 = vadd.f32 %v2504_v40, %v7424_v6  ;;  %9688 = vst [vmem:[#allocation10_spill] sm:$0xff] %v9687_v61  ;;  %v7664_v47 = vadd.s32 64, %v7511_v13  ;;  %v4131_v5 = vmul.u32 18, %v4130_v11 }
 0x18b   : > { %v6133_v45 = vpop.f32.mrf.mxu1  ;;  %v6189_v55 = vpop.f32.mrf.mxu0  ;;  %v7685_v11 = vmul.u32.u64.low 3817748708, %v7654_v56  ;;  %v7686_v58 = vmul.u32.u64.high 3817748708, %v7654_v56, %v7685_v11 }
 0x18c   : > { %9685 = vst [vmem:[#allocation9_spill] sm:$0xff] %v7643_v1  ;;  %v7656_v37 = vadd.f32 %v2933_v32, %v2683_v15  ;;  %v2686_v27 = vadd.f32 %v6133_v45, %v7433_v17  ;;  %v7672_v17 = vadd.s32 88, %v7511_v13  ;;  %v7678_v15 = vsub.s32 %v7554_v33, %v4109_v24 }
 0x18d   : > { %v2514_v10 = vpop.f32.mrf.mxu1  ;;  %v2943_v4 = vpop.f32.mrf.mxu0  ;;  %v4152_v45 = vshrl.u32 %v7617_v9, 4  ;;  %v7682_v1 = vsub.s32 %v7561_v59, %v4142_v52  ;;  %v7697_v59 = vsub.s32 %v7571_v34, %v4131_v5  ;;  %v7715_v5 = vadd.s32 80, %v7511_v13 }
 0x18e   : > { %9689 = vst [vmem:[#allocation11_spill] sm:$0xff] %v7656_v37  ;;  %v7674_v40 = vadd.f32 %v6189_v55, %v2686_v27  ;;  %v2685_v32 = vadd.f32 %v2514_v10, %v7438_v30  ;;  %v7692_v30 = vmul.u32.u64.low 3817748708, %v7664_v47  ;;  %v7693_v33 = vmul.u32.u64.high 3817748708, %v7664_v47, %v7692_v30 }
 0x18f   : > { %v6136_v6 = vpop.f32.mrf.mxu1  ;;  %v6192_v37 = vpop.f32.mrf.mxu0  ;;  %v7700_v16 = vmul.u32.u64.low 3817748708, %v7672_v17  ;;  %v7701_v52 = vmul.u32.u64.high 3817748708, %v7672_v17, %v7700_v16  ;;  %vm4478_vm10 = vcmp.ne.s32.totalorder %v7678_v15, 0  ;;  %vm4514_vm11 = vcmp.lt.s32.totalorder %v7678_v15, 0 }
 0x190   : > { %9690 = vst [vmem:[#allocation12_spill] sm:$0xff] %v7674_v40  ;;  %v7688_v63 = vadd.f32 %v2943_v4, %v2685_v32  ;;  %v2688_v55 = vadd.f32 %v6136_v6, %v7447_v23  ;;  %v7707_v23 = vadd.s32 18, %v7640_v3  ;;  %v4153_v6 = vmul.u32 18, %v4152_v45  ;;  %vm7764_vm2 = vmand %vm4514_vm11, %vm4478_vm10 }
 0x191   : > { %v2524_v24 = vpop.f32.mrf.mxu1  ;;  %v2953_v9 = vpop.f32.mrf.mxu0  ;;  %v7712_v34 = vadd.s32 18, %v7678_v15  ;;  %vm4481_vm12 = vcmp.ne.s32.totalorder %v7682_v1, 0  ;;  %v7722_v45 = vsub.s32 %v7581_v51, %v4164_v2  ;;  %vm4517_vm13 = vcmp.lt.s32.totalorder %v7682_v1, 0 }
 0x192   : > { %9691 = vst [vmem:[#allocation13_spill] sm:$0xff] %v7688_v63  ;;  %v7703_v27 = vadd.f32 %v6192_v37, %v2688_v55  ;;  %v2687_v10 = vadd.f32 %v2524_v24, %v7452_v49  ;;  %9693 = vst [vmem:[#allocation15_spill] sm:$0xff] %v7707_v23  ;;  %v7726_v30 = vadd.s32 18, %v7682_v1  ;;  %vm4480_vm14 = vcmp.ne.s32.totalorder %v7697_v59, 0 }
 0x193   : > { %v6139_v4 = vpop.f32.mrf.mxu1  ;;  %v6195_v32 = vpop.f32.mrf.mxu0  ;;  %v7730_v24 = vadd.s32 104, %v7511_v13  ;;  %vm4516_vm15 = vcmp.lt.s32.totalorder %v7697_v59, 0  ;;  %v7737_v51 = vsub.s32 %v7597_v7, %v4153_v6  ;;  %v9697_v7 = vmov 0  ;;  %vm7781_vm4 = vmand %vm4517_vm13, %vm4481_vm12 }
 0x194   : > { %9692 = vst [vmem:[#allocation14_spill] sm:$0xff] %v7703_v27  ;;  %v7717_v37 = vadd.f32 %v2953_v9, %v2687_v10  ;;  %v2690_v49 = vadd.f32 %v6139_v4, %v7461_v35  ;;  %v4185_v10 = vshrl.u32 %v7686_v58, 4  ;;  %v7745_v27 = vadd.s32 96, %v7511_v13  ;;  %vm7795_vm9 = vmand %vm4516_vm15, %vm4480_vm14 }
 0x195   : > { %v2534_v11 = vpop.f32.mrf.mxu1  ;;  %v2963_v55 = vpop.f32.mrf.mxu0  ;;  %v9698_v7 = vsel %vm7754_vm0, 4294967295, %v9697_v7  ;;  %vm4483_vm1 = vcmp.ne.s32.totalorder %v7722_v45, 0  ;;  %v4174_v58 = vshrl.u32 %v7693_v33, 4  ;;  %vm4519_vm3 = vcmp.lt.s32.totalorder %v7722_v45, 0 }
 0x196   : > { %9694 = vst [vmem:[#allocation16_spill] sm:$0xff] %v7717_v37  ;;  %v7732_v9 = vadd.f32 %v6195_v32, %v2690_v49  ;;  %v2689_v35 = vadd.f32 %v2534_v11, %v7466_v31  ;;  %v7741_v4 = vmul.u32.u64.low 3817748708, %v7715_v5  ;;  %v7742_v37 = vmul.u32.u64.high 3817748708, %v7715_v5, %v7741_v4  ;;  %9699 = vst [vmem:[#allocation19_spill] sm:$0xff] %v9698_v7 }
 0x197   : > { %v6142_v2 = vpop.f32.mrf.mxu1  ;;  %v6198_v16 = vpop.f32.mrf.mxu0  ;;  %v4207_v11 = vshrl.u32 %v7701_v52, 4  ;;  %vm4482_vm5 = vcmp.ne.s32.totalorder %v7737_v51, 0  ;;  %vm4518_vm8 = vcmp.lt.s32.totalorder %v7737_v51, 0  ;;  %vm7812_vm10 = vmand %vm4519_vm3, %vm4483_vm1  ;;  %v7817_v63 = vadd.s32 18, %v7737_v51 }
 0x198   : > { %9695 = vst [vmem:[#allocation17_spill] sm:$0xff] %v7732_v9  ;;  %v7747_v32 = vadd.f32 %v2963_v55, %v2689_v35  ;;  %v2692_v31 = vadd.f32 %v6142_v2, %v7473_v0  ;;  %v7771_v55 = vmul.u32.u64.low 3817748708, %v7730_v24  ;;  %v7772_v35 = vmul.u32.u64.high 3817748708, %v7730_v24, %v7771_v55  ;;  %vm7823_vm11 = vmand %vm4518_vm8, %vm4482_vm5  ;;  %v9822_v0 = vld [vmem:[#allocation9_spill] sm:$0xff] }
 0x199   : > { %v2544_v6 = vpop.f32.mrf.mxu1  ;;  %v2973_v49 = vpop.f32.mrf.mxu0  ;;  %v4186_v55 = vmul.u32 18, %v4185_v10  ;;  %v4175_v40 = vmul.u32 18, %v4174_v58  ;;  %v9838_v4 = vmov 0 }
 0x19a   : > { %9696 = vst [vmem:[#allocation18_spill] sm:$0xff] %v7747_v32  ;;  %v7774_v2 = vadd.f32 %v6198_v16, %v2692_v31  ;;  %v2691_v33 = vadd.f32 %v2544_v6, %v7478_v20  ;;  %v7800_v31 = vadd.s32 18, %v7697_v59  ;;  %v7803_v6 = vadd.s32 18, %v7722_v45 }
 0x19b   : > { %v6145_v52 = vpop.f32.mrf.mxu1  ;;  %v6201_v32 = vpop.f32.mrf.mxu0  ;;  %v9708_v16 = vmov 0  ;;  %v4208_v10 = vmul.u32 18, %v4207_v11 }
 0x19c   : > { %9702 = vst [vmem:[#allocation20_spill] sm:$0xff] %v7774_v2  ;;  %v7805_v2 = vadd.f32 %v2973_v49, %v2691_v33  ;;  %v2694_v9 = vadd.f32 %v6145_v52, %v7481_v44  ;;  %v9709_v16 = vsel %vm7812_vm10, 4294967295, %v9708_v16  ;;  %v7832_v52 = vadd.s32 120, %v7511_v13  ;;  %v9872_v44 = vld [vmem:[#allocation14_spill] sm:$0xff] }
 0x19d   : > { %9710 = vst [vmem:[#allocation22_spill] sm:$0xff] %v9709_v16  ;;  %v2554_v3 = vpop.f32.mrf.mxu1  ;;  %v2983_v23 = vpop.f32.mrf.mxu0  ;;  %v7828_v49 = vmul.u32.u64.low 3817748708, %v7745_v27  ;;  %v7829_v33 = vmul.u32.u64.high 3817748708, %v7745_v27, %v7828_v49 }
 0x19e   : > { %9707 = vst [vmem:[#allocation21_spill] sm:$0xff] %v7805_v2  ;;  %v7834_v2 = vadd.f32 %v6201_v32, %v2694_v9  ;;  %v2693_v58 = vadd.f32 %v2554_v3, %v7484_v8  ;;  %v7854_v3 = vsub.s32 %v7654_v56, %v4186_v55  ;;  %v4196_v32 = vshrl.u32 %v7742_v37, 4 }
 0x19f   : > { %v6148_v61 = vpop.f32.mrf.mxu1  ;;  %v6204_v18 = vpop.f32.mrf.mxu0  ;;  %v7865_v9 = vsub.s32 %v7664_v47, %v4175_v40  ;;  %v7868_v8 = vsub.s32 %v7672_v17, %v4208_v10  ;;  %v4229_v56 = vshrl.u32 %v7772_v35, 4  ;;  %v7879_v55 = vadd.s32 112, %v7511_v13 }
 0x1a0   : > { %9713 = vst [vmem:[#allocation23_spill] sm:$0xff] %v7834_v2  ;;  %9714 = vst [vmem:[#allocation24_spill] sm:$0xff] %v7854_v3  ;;  %v7857_v49 = vadd.f32 %v2983_v23, %v2693_v58  ;;  %v2696_v11 = vadd.f32 %v6148_v61, %v7487_v26  ;;  %v7872_v23 = vmul.u32.u64.low 3817748708, %v7832_v52  ;;  %v7873_v37 = vmul.u32.u64.high 3817748708, %v7832_v52, %v7872_v23 }
 0x1a1   : > { %v2564_v2 = vpop.f32.mrf.mxu1  ;;  %v2993_v16 = vpop.f32.mrf.mxu0  ;;  %9716 = vst [vmem:[#allocation26_spill] sm:$0xff] %v7868_v8  ;;  %v7882_v47 = vadd.s32 136, %v7511_v13  ;;  %vm4485_vm12 = vcmp.ne.s32.totalorder %v7854_v3, 0  ;;  %vm4521_vm13 = vcmp.lt.s32.totalorder %v7854_v3, 0  ;;  %v7887_v17 = vadd.s32 18, %v7854_v3 }
 0x1a2   : > { %9715 = vst [vmem:[#allocation25_spill] sm:$0xff] %v7857_v49  ;;  %v7875_v26 = vadd.f32 %v6204_v18, %v2696_v11  ;;  %v2695_v61 = vadd.f32 %v2564_v2, %v7490_v57  ;;  %v4197_v35 = vmul.u32 18, %v4196_v32  ;;  %vm4484_vm14 = vcmp.ne.s32.totalorder %v7865_v9, 0  ;;  %vm7904_vm5 = vmand %vm4521_vm13, %vm4485_vm12 }
 0x1a3   : > { %v6151_v40 = vpop.f32.mrf.mxu1  ;;  %v6207_v58 = vpop.f32.mrf.mxu0  ;;  %9718 = vst [vmem:[#allocation28_spill] sm:$0xff] %v7887_v17  ;;  %vm4520_vm15 = vcmp.lt.s32.totalorder %v7865_v9, 0  ;;  %vm4487_vm1 = vcmp.ne.s32.totalorder %v7868_v8, 0  ;;  %vm4523_vm3 = vcmp.lt.s32.totalorder %v7868_v8, 0  ;;  %v4230_v11 = vmul.u32 18, %v4229_v56 }
 0x1a4   : > { %9717 = vst [vmem:[#allocation27_spill] sm:$0xff] %v7875_v26  ;;  %v7889_v18 = vadd.f32 %v2993_v16, %v2695_v61  ;;  %v2698_v57 = vadd.f32 %v6151_v40, %v7493_v62  ;;  %v4218_v23 = vshrl.u32 %v7829_v33, 4  ;;  %v9721_v62 = vmov 0  ;;  %vm7929_vm8 = vmand %vm4520_vm15, %vm4484_vm14 }
 0x1a5   : > { %v2574_v2 = vpop.f32.mrf.mxu1  ;;  %v3003_v10 = vpop.f32.mrf.mxu0  ;;  %v9722_v62 = vsel %vm7904_vm5, 4294967295, %v9721_v62  ;;  %v7909_v32 = vmul.u32.u64.low 3817748708, %v7879_v55  ;;  %v7910_v61 = vmul.u32.u64.high 3817748708, %v7879_v55, %v7909_v32  ;;  %v7913_v33 = vadd.s32 18, %v7865_v9  ;;  %vm7947_vm12 = vmand %vm4523_vm3, %vm4487_vm1 }
 0x1a6   : > { %9719 = vst [vmem:[#allocation29_spill] sm:$0xff] %v7889_v18  ;;  %v7897_v7 = vadd.f32 %v6207_v58, %v2698_v57  ;;  %v2697_v16 = vadd.f32 %v2574_v2, %v7496_v19  ;;  %9723 = vst [vmem:[#allocation31_spill] sm:$0xff] %v9722_v62  ;;  %v7916_v58 = vsub.s32 %v7715_v5, %v4197_v35  ;;  %v9726_v32 = vmov 0 }
 0x1a7   : > { %v6154_v40 = vpop.f32.mrf.mxu1  ;;  %v6210_v56 = vpop.f32.mrf.mxu0  ;;  %v7919_v19 = vmul.u32.u64.low 3817748708, %v7882_v47  ;;  %v7920_v57 = vmul.u32.u64.high 3817748708, %v7882_v47, %v7919_v19  ;;  %v9727_v32 = vsel %vm7929_vm8, 4294967295, %v9726_v32  ;;  %v7934_v18 = vadd.s32 18, %v7868_v8 }
 0x1a8   : > { %9720 = vst [vmem:[#allocation30_spill] sm:$0xff] %v7897_v7  ;;  %9724 = vst [vmem:[#allocation32_spill] sm:$0xff] %v7916_v58  ;;  %v7922_v2 = vadd.f32 %v3003_v10, %v2697_v16  ;;  %v2700_v7 = vadd.f32 %v6154_v40, %v7499_v53  ;;  %v7937_v5 = vadd.s32 128, %v7511_v13  ;;  %v9729_v10 = vmov 0 }
 0x1a9   : > { %9728 = vst [vmem:[#allocation34_spill] sm:$0xff] %v7934_v18  ;;  %v2584_v35 = vpop.f32.mrf.mxu1  ;;  %v3013_v19 = vpop.f32.mrf.mxu0  ;;  %v9730_v10 = vsel %vm7947_vm12, 4294967295, %v9729_v10  ;;  %v7952_v16 = vsub.s32 %v7730_v24, %v4230_v11  ;;  %v4219_v40 = vmul.u32 18, %v4218_v23  ;;  %v7959_v53 = vadd.s32 152, %v7511_v13 }
 0x1aa   : > { %9725 = vst [vmem:[#allocation33_spill] sm:$0xff] %v7922_v2  ;;  %9731 = vst [vmem:[#allocation35_spill] sm:$0xff] %v9730_v10  ;;  %v4251_v2 = vshrl.u32 %v7873_v37, 4  ;;  %v7955_v26 = vadd.f32 %v6210_v56, %v2700_v7  ;;  %v2699_v49 = vadd.f32 %v2584_v35, %v7502_v46  ;;  %v7962_v3 = vadd.s32 144, %v7511_v13 }
 0x1ab   : > { %9732 = vst [vmem:[#allocation36_spill] sm:$0xff] %v7952_v16  ;;  %v6157_v17 = vpop.f32.mrf.mxu1  ;;  %v6213_v62 = vpop.f32.mrf.mxu0  ;;  %vm4486_vm13 = vcmp.ne.s32.totalorder %v7916_v58, 0  ;;  %vm4522_vm14 = vcmp.lt.s32.totalorder %v7916_v58, 0  ;;  %v7971_v7 = vadd.s32 168, %v7511_v13  ;;  %v7981_v23 = vadd.s32 160, %v7511_v13 }
 0x1ac   : > { %9733 = vst [vmem:[#allocation37_spill] sm:$0xff] %v7955_v26  ;;  %v7973_v46 = vadd.f32 %v3013_v19, %v2699_v49  ;;  %v2702_v37 = vadd.f32 %v6157_v17, %v7505_v25  ;;  %v7984_v24 = vadd.s32 18, %v7916_v58  ;;  %vm4489_vm15 = vcmp.ne.s32.totalorder %v7952_v16, 0  ;;  %vm7997_vm1 = vmand %vm4522_vm14, %vm4486_vm13 }
 0x1ad   : > { %v2594_v56 = vpop.f32.mrf.mxu1  ;;  %v3023_v35 = vpop.f32.mrf.mxu0  ;;  %v7988_v49 = vsub.s32 %v7745_v27, %v4219_v40  ;;  %v4252_v19 = vmul.u32 18, %v4251_v2  ;;  %v9738_v11 = vmov 0  ;;  %vm4525_vm3 = vcmp.lt.s32.totalorder %v7952_v16, 0 }
 0x1ae   : > { %9734 = vst [vmem:[#allocation38_spill] sm:$0xff] %v7973_v46  ;;  %9735 = vst [vmem:[#allocation39_spill] sm:$0xff] %v7984_v24  ;;  %v7990_v25 = vadd.f32 %v6213_v62, %v2702_v37  ;;  %v2701_v17 = vadd.f32 %v2594_v56, %v7508_v43  ;;  %v9739_v11 = vsel %vm7997_vm1, 4294967295, %v9738_v11  ;;  %v4240_v46 = vshrl.u32 %v7910_v61, 4 }
 0x1af   : > { %9736 = vst [vmem:[#allocation40_spill] sm:$0xff] %v7988_v49  ;;  %9740 = vst [vmem:[#allocation42_spill] sm:$0xff] %v9739_v11  ;;  %v6160_v26 = vpop.f32.mrf.mxu1  ;;  %v6216_v27 = vpop.f32.mrf.mxu0  ;;  %v8004_v2 = vadd.s32 18, %v7952_v16  ;;  %v4273_v62 = vshrl.u32 %v7920_v57, 4  ;;  %v8008_v43 = vadd.s32 184, %v7511_v13  ;;  %v8011_v40 = vadd.s32 176, %v7511_v13 }
 0x1b0   : > { %9737 = vst [vmem:[#allocation41_spill] sm:$0xff] %v7990_v25  ;;  %v8013_v37 = vadd.f32 %v3023_v35, %v2701_v17  ;;  %v2704_v56 = vadd.f32 %v6160_v26, %v7513_v41  ;;  %v8017_v25 = vmul.u32.u64.low 3817748708, %v7937_v5  ;;  %v8018_v61 = vmul.u32.u64.high 3817748708, %v7937_v5, %v8017_v25  ;;  %vm8026_vm13 = vmand %vm4525_vm3, %vm4489_vm15 }
 0x1b1   : > { %9741 = vst [vmem:[#allocation43_spill] sm:$0xff] %v8004_v2  ;;  %v2604_v8 = vpop.f32.mrf.mxu1  ;;  %v3033_v18 = vpop.f32.mrf.mxu0  ;;  %v9743_v10 = vmov 0  ;;  %vm4488_vm14 = vcmp.ne.s32.totalorder %v7988_v49, 0  ;;  %vm4524_vm12 = vcmp.lt.s32.totalorder %v7988_v49, 0  ;;  %v8033_v41 = vsub.s32 %v7832_v52, %v4252_v19 }
 0x1b2   : > { %9742 = vst [vmem:[#allocation44_spill] sm:$0xff] %v8013_v37  ;;  %v9744_v10 = vsel %vm8026_vm13, 4294967295, %v9743_v10  ;;  %v8035_v26 = vadd.f32 %v6216_v27, %v2704_v56  ;;  %v2703_v35 = vadd.f32 %v2604_v8, %v7516_v60  ;;  %v4241_v25 = vmul.u32 18, %v4240_v46  ;;  %vm8060_vm15 = vmand %vm4524_vm12, %vm4488_vm14 }
 0x1b3   : > { %9745 = vst [vmem:[#allocation45_spill] sm:$0xff] %v9744_v10  ;;  %9746 = vst [vmem:[#allocation46_spill] sm:$0xff] %v8033_v41  ;;  %v8039_v17 = vadd.s32 200, %v7511_v13  ;;  %v6163_v57 = vpop.f32.mrf.mxu1  ;;  %v6219_v37 = vpop.f32.mrf.mxu0  ;;  %v8042_v58 = vadd.s32 18, %v7988_v49  ;;  %v8045_v24 = vmul.u32.u64.low 3817748708, %v7959_v53  ;;  %v8046_v11 = vmul.u32.u64.high 3817748708, %v7959_v53, %v8045_v24 }
 0x1b4   : > { %9747 = vst [vmem:[#allocation47_spill] sm:$0xff] %v8035_v26  ;;  %v8049_v52 = vadd.s32 192, %v7511_v13  ;;  %v8051_v19 = vadd.f32 %v3033_v18, %v2703_v35  ;;  %v2706_v60 = vadd.f32 %v6163_v57, %v7520_v12  ;;  %v9750_v46 = vmov 0 }
 0x1b5   : > { %9748 = vst [vmem:[#allocation48_spill] sm:$0xff] %v8042_v58  ;;  %v9751_v46 = vsel %vm8060_vm15, 4294967295, %v9750_v46  ;;  %v4274_v27 = vmul.u32 18, %v4273_v62  ;;  %v2614_v24 = vpop.f32.mrf.mxu1  ;;  %v3043_v56 = vpop.f32.mrf.mxu0  ;;  %vm4491_vm3 = vcmp.ne.s32.totalorder %v8033_v41, 0  ;;  %v8070_v12 = vadd.s32 216, %v7511_v13 }
 0x1b6   : > { %9749 = vst [vmem:[#allocation49_spill] sm:$0xff] %v8051_v19  ;;  %9752 = vst [vmem:[#allocation50_spill] sm:$0xff] %v9751_v46  ;;  %v8066_v18 = vmul.u32.u64.low 3817748708, %v7962_v3  ;;  %v8067_v35 = vmul.u32.u64.high 3817748708, %v7962_v3, %v8066_v18  ;;  %v8072_v57 = vadd.f32 %v6219_v37, %v2706_v60  ;;  %v2705_v8 = vadd.f32 %v2614_v24, %v7523_v21 }
 0x1b7   : > { %vm4527_vm12 = vcmp.lt.s32.totalorder %v8033_v41, 0  ;;  %v8077_v19 = vsub.s32 %v7879_v55, %v4241_v25  ;;  %v6166_v62 = vpop.f32.mrf.mxu1  ;;  %v6222_v26 = vpop.f32.mrf.mxu0  ;;  %v8084_v18 = vadd.s32 18, %v8033_v41  ;;  %v8087_v37 = vadd.s32 208, %v7511_v13 }
 0x1b8   : > { %9753 = vst [vmem:[#allocation51_spill] sm:$0xff] %v8072_v57  ;;  %v8090_v21 = vadd.s32 232, %v7511_v13  ;;  %v8092_v60 = vadd.f32 %v3043_v56, %v2705_v8  ;;  %v2708_v55 = vadd.f32 %v6166_v62, %v7529_v22  ;;  %v8096_v25 = vsub.s32 %v7882_v47, %v4274_v27  ;;  %vm8103_vm14 = vmand %vm4527_vm12, %vm4491_vm3 }
 0x1b9   : > { %9754 = vst [vmem:[#allocation52_spill] sm:$0xff] %v8084_v18  ;;  %v4262_v24 = vshrl.u32 %v8018_v61, 4  ;;  %v2624_v57 = vpop.f32.mrf.mxu1  ;;  %v3053_v16 = vpop.f32.mrf.mxu0  ;;  %v9756_v49 = vmov 0  ;;  %v8108_v8 = vmul.u32.u64.low 3817748708, %v7971_v7  ;;  %v8109_v56 = vmul.u32.u64.high 3817748708, %v7971_v7, %v8108_v8 }
 0x1ba   : > { %9755 = vst [vmem:[#allocation53_spill] sm:$0xff] %v8092_v60  ;;  %v9757_v49 = vsel %vm8103_vm14, 4294967295, %v9756_v49  ;;  %v8112_v22 = vmul.u32.u64.low 3817748708, %v7981_v23  ;;  %v8113_v47 = vmul.u32.u64.high 3817748708, %v7981_v23, %v8112_v22  ;;  %v8115_v27 = vadd.f32 %v6222_v26, %v2708_v55 }
 0x1bb   : > { %9758 = vst [vmem:[#allocation54_spill] sm:$0xff] %v9757_v49  ;;  %v2707_v61 = vadd.f32 %v2624_v57, %v7536_v36  ;;  %vm4490_vm15 = vcmp.ne.s32.totalorder %v8077_v19, 0  ;;  %v8120_v62 = vadd.s32 224, %v7511_v13  ;;  %v6169_v60 = vpop.f32.mrf.mxu1  ;;  %v6225_v58 = vpop.f32.mrf.mxu0  ;;  %v4295_v46 = vshrl.u32 %v8046_v11, 4 }
 0x1bc   : > { %9759 = vst [vmem:[#allocation55_spill] sm:$0xff] %v8115_v27  ;;  %v8125_v8 = vmul.u32.u64.low 3817748708, %v8008_v43  ;;  %v8126_v2 = vmul.u32.u64.high 3817748708, %v8008_v43, %v8125_v8  ;;  %v2710_v26 = vadd.f32 %v6169_v60, %v7542_v29  ;;  %v4263_v57 = vmul.u32 18, %v4262_v24 }
 0x1bd   : > { %v8128_v22 = vadd.f32 %v3053_v16, %v2707_v61  ;;  %v2634_v55 = vpop.f32.mrf.mxu1  ;;  %v3063_v27 = vpop.f32.mrf.mxu0  ;;  %v8136_v10 = vadd.s32 18, %v8077_v19  ;;  %vm4493_vm12 = vcmp.ne.s32.totalorder %v8096_v25, 0  ;;  %vm4529_vm3 = vcmp.lt.s32.totalorder %v8096_v25, 0 }
 0x1be   : > { %v4284_v16 = vshrl.u32 %v8067_v35, 4  ;;  %v8141_v11 = vadd.f32 %v6225_v58, %v2710_v26  ;;  %v2709_v29 = vadd.f32 %v2634_v55, %v7545_v42  ;;  %vm9762_vm14 = vcmp.lt.s32.totalorder %v8077_v19, 0 }
 0x1bf   : > { %9760 = vst [vmem:[#allocation56_spill] sm:$0xff] %v8128_v22  ;;  %vm8148_vm13 = vmand %vm9762_vm14, %vm4490_vm15  ;;  %v9763_v60 = vmov 0  ;;  %v8153_v24 = vmul.u32.u64.low 3817748708, %v8011_v40  ;;  %v8154_v61 = vmul.u32.u64.high 3817748708, %v8011_v40, %v8153_v24  ;;  %v6172_v8 = vpop.f32.mrf.mxu1  ;;  %v6228_v36 = vpop.f32.mrf.mxu0  ;;  %v8157_v35 = vadd.s32 18, %v8096_v25 }
 0x1c0   : > { %9761 = vst [vmem:[#allocation57_spill] sm:$0xff] %v8141_v11  ;;  %v9764_v60 = vsel %vm8148_vm13, 4294967295, %v9763_v60  ;;  %v4296_v58 = vmul.u32 18, %v4295_v46  ;;  %v8160_v42 = vmul.u32.u64.low 3817748708, %v8039_v17  ;;  %v8161_v26 = vmul.u32.u64.high 3817748708, %v8039_v17, %v8160_v42  ;;  %vm8170_vm15 = vmand %vm4529_vm3, %vm4493_vm12 }
 0x1c1   : > { %v8163_v55 = vadd.f32 %v3063_v27, %v2709_v29  ;;  %v2712_v11 = vadd.f32 %v6172_v8, %v7556_v38  ;;  %v9766_v24 = vmov 0  ;;  %v8175_v22 = vsub.s32 %v7937_v5, %v4263_v57  ;;  %v2644_v41 = vpop.f32.mrf.mxu1  ;;  %v3073_v42 = vpop.f32.mrf.mxu0 }
 0x1c2   : > { %v9767_v24 = vsel %vm8170_vm15, 4294967295, %v9766_v24  ;;  %v8178_v46 = vadd.s32 248, %v7511_v13  ;;  %v4317_v27 = vshrl.u32 %v8109_v56, 4  ;;  %v4306_v29 = vshrl.u32 %v8113_v47, 4 }
 0x1c3   : > { %9765 = vst [vmem:[#allocation58_spill] sm:$0xff] %v8163_v55  ;;  %v8187_v8 = vadd.s32 240, %v7511_v13  ;;  %v8189_v55 = vadd.f32 %v6228_v36, %v2712_v11  ;;  %v2711_v5 = vadd.f32 %v2644_v41, %v7563_v50  ;;  %v4285_v57 = vmul.u32 18, %v4284_v16  ;;  %v6175_v49 = vpop.f32.mrf.mxu1 }
 0x1c4   : > { %9768 = vst [vmem:[#allocation59_spill] sm:$0xff] %v8178_v46  ;;  %v8193_v18 = vadd.s32 264, %v7511_v13  ;;  %v6231_v46 = vpop.f32.mrf.mxu0  ;;  %v8200_v47 = vsub.s32 %v7959_v53, %v4296_v58  ;;  %v4339_v38 = vshrl.u32 %v8126_v2, 4  ;;  %v8204_v36 = vadd.s32 256, %v7511_v13 }
 0x1c5   : > { %9769 = vst [vmem:[#allocation60_spill] sm:$0xff] %v8189_v55  ;;  %v8206_v50 = vadd.f32 %v3073_v42, %v2711_v5  ;;  %v2714_v41 = vadd.f32 %v6175_v49, %v7573_v39  ;;  %v8211_v16 = vadd.s32 280, %v7511_v13  ;;  %v2654_v11 = vpop.f32.mrf.mxu1  ;;  %v8215_v53 = vadd.s32 18, %v8175_v22 }
 0x1c6   : > { %9770 = vst [vmem:[#allocation61_spill] sm:$0xff] %v8193_v18  ;;  %9771 = vst [vmem:[#allocation62_spill] sm:$0xff] %v8204_v36  ;;  %v3083_v55 = vpop.f32.mrf.mxu0  ;;  %v4318_v2 = vmul.u32 18, %v4317_v27  ;;  %v4307_v58 = vmul.u32 18, %v4306_v29  ;;  %v2713_v42 = vadd.f32 %v2654_v11, %v7583_v48  ;;  %v8221_v39 = vsub.s32 %v7962_v3, %v4285_v57 }
 0x1c7   : > { %9772 = vst [vmem:[#allocation63_spill] sm:$0xff] %v8206_v50  ;;  %9773 = vst [vmem:[#allocation64_spill] sm:$0xff] %v8211_v16  ;;  %v8217_v56 = vadd.f32 %v6231_v46, %v2714_v41  ;;  %v4328_v49 = vshrl.u32 %v8154_v61, 4  ;;  %v6178_v5 = vpop.f32.mrf.mxu1  ;;  %v4340_v16 = vmul.u32 18, %v4339_v38  ;;  %v4361_v36 = vshrl.u32 %v8161_v26, 4  ;;  %v9780_v41 = vld [vmem:[#allocation2_spill] sm:$0xff] }
 0x1c8   : > { %v6234_v50 = vpop.f32.mrf.mxu0  ;;  %v8227_v18 = vadd.s32 272, %v7511_v13  ;;  %v8229_v27 = vadd.f32 %v3083_v55, %v2713_v42  ;;  %v2716_v46 = vadd.f32 %v6178_v5, %v7593_v28  ;;  %v8234_v48 = vadd.s32 18, %v8200_v47  ;;  %v9779_v28 = vld [vmem:[#allocation4_spill] sm:$0xff]  ;;  %v9787_v5 = vld [vmem:[#allocation3_spill] sm:$0xff] }
 0x1c9   : > { %9774 = vst [vmem:[#allocation65_spill] sm:$0xff] %v8217_v56  ;;  %v2664_v3 = vpop.f32.mrf.mxu1  ;;  %v8237_v29 = vsub.s32 %v7971_v7, %v4318_v2  ;;  %v8240_v26 = vsub.s32 %v7981_v23, %v4307_v58  ;;  %v8243_v13 = vmul.u32.u64.low 3817748708, %v8049_v52  ;;  %v8244_v55 = vmul.u32.u64.high 3817748708, %v8049_v52, %v8243_v13 }
 0x1ca   : > { %9775 = vst [vmem:[#allocation66_spill] sm:$0xff] %v8227_v18  ;;  %9776 = vst [vmem:[#allocation67_spill] sm:$0xff] %v8229_v27  ;;  %v3093_v61 = vpop.f32.mrf.mxu0  ;;  %v8246_v38 = vadd.f32 %v6234_v50, %v2716_v46  ;;  %v2715_v57 = vadd.f32 %v2664_v3, %v9779_v28  ;;  %v9781_v11 = vsel %vm7632_vm6, %v7626_v54, %v9780_v41  ;;  %v9782_v7 = vmov 0  ;;  %v9786_v50 = vld [vmem:[#allocation7_spill] sm:$0xff]  ;;  %v9794_v41 = vld [vmem:[#allocation5_spill] sm:$0xff] }
 0x1cb   : > { %9777 = vst [vmem:[#allocation68_spill] sm:$0xff] %v8240_v26  ;;  %vm8254_vm14 = vcmp.lt.s32.totalorder %v9781_v11, 16  ;;  %v4329_v23 = vmul.u32 18, %v4328_v49  ;;  %v6181_v2 = vpop.f32.mrf.mxu1  ;;  %v9788_v46 = vsel %vm7648_vm7, %v9786_v50, %v9787_v5  ;;  %v8269_v54 = vsub.s32 %v8008_v43, %v4340_v16 }
 0x1cc   : > { %9778 = vst [vmem:[#allocation69_spill] sm:$0xff] %v8246_v38  ;;  %v9783_v7 = vsel %vm8254_vm14, 4294967295, %v9782_v7  ;;  %v6237_v58 = vpop.f32.mrf.mxu0  ;;  %vm8264_vm12 = vcmp.lt.s32.totalorder %v9788_v46, 16  ;;  %v4362_v3 = vmul.u32 18, %v4361_v36  ;;  %v8275_v49 = vadd.f32 %v3093_v61, %v2715_v57  ;;  %v9800_v61 = vld [vmem:[#allocation6_spill] sm:$0xff] }
 0x1cd   : > { %9784 = vst [vmem:[#allocation4_spill] sm:$0xff] %v9783_v7  ;;  %v9790_v14 = vsel %vm8264_vm12, 4294967295, %v9789_v14  ;;  %9792 = vst [vmem:[#allocation10_spill] sm:$0xff] %v8269_v54  ;;  %v8272_v13 = vmul.u32.u64.low 3817748708, %v8070_v12  ;;  %v8273_v28 = vmul.u32.u64.high 3817748708, %v8070_v12, %v8272_v13  ;;  %v2718_v11 = vadd.f32 %v6181_v2, %v9794_v41  ;;  %v2674_v50 = vpop.f32.mrf.mxu1 }
 0x1ce   : > { %9791 = vst [vmem:[#allocation2_spill] sm:$0xff] %v9790_v14  ;;  %9793 = vst [vmem:[#allocation7_spill] sm:$0xff] %v8275_v49  ;;  %v8280_v42 = vadd.s32 18, %v8221_v39  ;;  %v3103_v5 = vpop.f32.mrf.mxu0  ;;  %vm9795_vm7 = vcmp.ne.s32.totalorder %v8175_v22, 0  ;;  %vm9796_vm3 = vcmp.lt.s32.totalorder %v8175_v22, 0  ;;  %v9797_v43 = vmov 0 }
 0x1cf   : > { %vm8287_vm15 = vmand %vm9796_vm3, %vm9795_vm7  ;;  %v8294_v36 = vadd.s32 18, %v8237_v29  ;;  %v8297_v16 = vadd.f32 %v6237_v58, %v2718_v11  ;;  %v2717_v57 = vadd.f32 %v2674_v50, %v9800_v61  ;;  %vm9801_vm8 = vcmp.ne.s32.totalorder %v8200_v47, 0  ;;  %v6242_v13 = vpop.f32.mrf.mxu1  ;;  %v9806_v58 = vld [vmem:[#allocation15_spill] sm:$0xff]  ;;  %v9807_v11 = vld [vmem:[#allocation8_spill] sm:$0xff] }
 0x1d0   : > { %v9798_v43 = vsel %vm8287_vm15, 4294967295, %v9797_v43  ;;  %vm9802_vm3 = vcmp.lt.s32.totalorder %v8200_v47, 0  ;;  %v9803_v2 = vmov 0  ;;  %v8310_v46 = vsub.s32 %v8011_v40, %v4329_v23  ;;  %v6298_v41 = vpop.f32.mrf.mxu0  ;;  %v9993_v40 = vld [vmem:[#allocation37_spill] sm:$0xff] }
 0x1d1   : > { %9799 = vst [vmem:[#allocation3_spill] sm:$0xff] %v8297_v16  ;;  %vm8304_vm7 = vmand %vm9802_vm3, %vm9801_vm8  ;;  %v9808_v50 = vsel %vm7754_vm0, %v9806_v58, %v9807_v11  ;;  %v9809_v61 = vmov 0  ;;  %v9812_v16 = vsel %vm7764_vm2, %v7712_v34, %v7678_v15  ;;  %v9813_v38 = vmov 0 }
 0x1d2   : > { %v9804_v2 = vsel %vm8304_vm7, 4294967295, %v9803_v2  ;;  %vm8317_vm6 = vcmp.lt.s32.totalorder %v9808_v50, 16  ;;  %vm8326_vm8 = vcmp.lt.s32.totalorder %v9812_v16, 16  ;;  %vm9816_vm3 = vcmp.ne.s32.totalorder %v8221_v39, 0 }
 0x1d3   : > { %v9810_v61 = vsel %vm8317_vm6, 4294967295, %v9809_v61  ;;  %v9814_v38 = vsel %vm8326_vm8, 4294967295, %v9813_v38  ;;  %vm9817_vm13 = vcmp.lt.s32.totalorder %v8221_v39, 0  ;;  %v8339_v23 = vadd.s32 18, %v8240_v26 }
 0x1d4   : > { %9811 = vst [vmem:[#allocation5_spill] sm:$0xff] %v9810_v61  ;;  %9815 = vst [vmem:[#allocation6_spill] sm:$0xff] %v9814_v38  ;;  %v8344_v15 = vsub.s32 %v8039_v17, %v4362_v3  ;;  %v8346_v34 = vadd.f32 %v3103_v5, %v2717_v57  ;;  %v3542_v49 = vadd.f32 %v6242_v13, %v9822_v0  ;;  %vm9823_vm2 = vcmp.ne.s32.totalorder %v8237_v29, 0  ;;  %v3362_v17 = vpop.f32.mrf.mxu1  ;;  %v3791_v3 = vpop.f32.mrf.mxu0  ;;  %v9832_v5 = vld [vmem:[#allocation11_spill] sm:$0xff]  ;;  %v9905_v38 = vld [vmem:[#allocation42_spill] sm:$0xff] }
 0x1d5   : > { %vm8334_vm1 = vmand %vm9817_vm13, %vm9816_vm3  ;;  %vm9824_vm13 = vcmp.lt.s32.totalorder %v8237_v29, 0  ;;  %v8358_v58 = vmul.u32.u64.low 3817748708, %v8087_v37  ;;  %v8359_v11 = vmul.u32.u64.high 3817748708, %v8087_v37, %v8358_v58  ;;  %v9829_v13 = vmov 0 }
 0x1d6   : > { %9820 = vst [vmem:[#allocation19_spill] sm:$0xff] %v8344_v15  ;;  %9821 = vst [vmem:[#allocation15_spill] sm:$0xff] %v8346_v34  ;;  %v8383_v50 = vadd.s32 18, %v8269_v54  ;;  %v4350_v0 = vshrl.u32 %v8244_v55, 4  ;;  %v8386_v58 = vadd.f32 %v6298_v41, %v3542_v49  ;;  %v3541_v34 = vadd.f32 %v3362_v17, %v9832_v5  ;;  %v6245_v56 = vpop.f32.mrf.mxu1  ;;  %v6301_v18 = vpop.f32.mrf.mxu0  ;;  %v9855_v49 = vld [vmem:[#allocation13_spill] sm:$0xff] }
 0x1d7   : > { %vm8353_vm3 = vmand %vm9824_vm13, %vm9823_vm2  ;;  %vm9827_vm2 = vcmp.ne.s32.totalorder %v8240_v26, 0  ;;  %vm9828_vm13 = vcmp.lt.s32.totalorder %v8240_v26, 0  ;;  %v9833_v57 = vsel %vm7781_vm4, %v7726_v30, %v7682_v1  ;;  %v9834_v27 = vmov 0 }
 0x1d8   : > { %vm8378_vm5 = vmand %vm9828_vm13, %vm9827_vm2  ;;  %9831 = vst [vmem:[#allocation8_spill] sm:$0xff] %v8386_v58  ;;  %vm8394_vm0 = vcmp.lt.s32.totalorder %v9833_v57, 16  ;;  %v9837_v55 = vsel %vm7795_vm9, %v7800_v31, %v7697_v59  ;;  %vm9841_vm4 = vcmp.ne.s32.totalorder %v8269_v54, 0  ;;  %vm9842_vm13 = vcmp.lt.s32.totalorder %v8269_v54, 0  ;;  %v9847_v31 = vld [vmem:[#allocation12_spill] sm:$0xff]  ;;  %v3372_v5 = vpop.f32.mrf.mxu1  ;;  %v3801_v57 = vpop.f32.mrf.mxu0 }
 0x1d9   : > { %v9830_v13 = vsel %vm8378_vm5, 4294967295, %v9829_v13  ;;  %v9835_v27 = vsel %vm8394_vm0, 4294967295, %v9834_v27  ;;  %vm8405_vm7 = vcmp.lt.s32.totalorder %v9837_v55, 16  ;;  %vm8417_vm2 = vmand %vm9842_vm13, %vm9841_vm4  ;;  %v9843_v30 = vmov 0 }
 0x1da   : > { %9836 = vst [vmem:[#allocation9_spill] sm:$0xff] %v9835_v27  ;;  %v9839_v4 = vsel %vm8405_vm7, 4294967295, %v9838_v4  ;;  %v9844_v30 = vsel %vm8417_vm2, 4294967295, %v9843_v30  ;;  %vm4501_vm9 = vcmp.ne.s32.totalorder %v8344_v15, 0  ;;  %v4383_v59 = vshrl.u32 %v8273_v28, 4 }
 0x1db   : > { %9840 = vst [vmem:[#allocation11_spill] sm:$0xff] %v9839_v4  ;;  %vm9845_vm7 = vcmask 64512   ;;  %v8427_v20 = vadd.f32 %v3791_v3, %v3541_v34  ;;  %v3544_v41 = vadd.f32 %v6245_v56, %v9847_v31  ;;  %v4765_v28 = vsel %vm8254_vm14, %v8386_v58, 0.0 }
 0x1dc   : > { %4008 = vst.msk [vmem:[%s8364_s18 + $0x8] sm:$0xff] %vm9845_vm7, %v8386_v58  ;;  %vm9848_vm7 = vcmp.ne.s32.totalorder %v8310_v46, 0  ;;  %vm9849_vm13 = vcmp.lt.s32.totalorder %v8310_v46, 0  ;;  %v9850_v56 = vmov 0  ;;  %v8450_v34 = vadd.s32 18, %v8310_v46 }
 0x1dd   : > { %9846 = vst [vmem:[#allocation70_spill] sm:$0xff] %v8427_v20  ;;  %vm8445_vm4 = vmand %vm9849_vm13, %vm9848_vm7  ;;  %v8453_v3 = vadd.s32 18, %v8344_v15  ;;  %v4351_v55 = vmul.u32 18, %v4350_v0  ;;  %vm9853_vm15 = vcmask 64512   ;;  %v4764_v31 = vsel %vm8264_vm12, %v8427_v20, 0.0 }
 0x1de   : > { %v9851_v56 = vsel %vm8445_vm4, 4294967295, %v9850_v56  ;;  %4007 = vst.msk [vmem:[%s8364_s18] sm:$0xff] %vm9853_vm15, %v8427_v20  ;;  %v8461_v17 = vadd.f32 %v6301_v18, %v3544_v41  ;;  %v3543_v1 = vadd.f32 %v3372_v5, %v9855_v49  ;;  %v9857_v58 = vsel %vm7812_vm10, %v7803_v6, %v7722_v45  ;;  %v6248_v45 = vpop.f32.mrf.mxu1  ;;  %v6304_v6 = vpop.f32.mrf.mxu0 }
 0x1df   : > { %9852 = vst [vmem:[#allocation12_spill] sm:$0xff] %v8453_v3  ;;  %vm8469_vm7 = vcmp.lt.s32.totalorder %v9857_v58, 16  ;;  %v9858_v26 = vmov 0  ;;  %vm9861_vm15 = vcmp.lt.s32.totalorder %v8344_v15, 0  ;;  %v9862_v18 = vmov 0 }
 0x1e0   : > { %9854 = vst [vmem:[#allocation71_spill] sm:$0xff] %v8461_v17  ;;  %v9859_v26 = vsel %vm8469_vm7, 4294967295, %v9858_v26  ;;  %vm8481_vm13 = vmand %vm9861_vm15, %vm4501_vm9  ;;  %vm9864_vm14 = vcmask 64512   ;;  %v9865_v58 = vsel %vm7823_vm11, %v7817_v63, %v7737_v51  ;;  %v9866_v41 = vmov 0  ;;  %v3811_v54 = vpop.f32.mrf.mxu0 }
 0x1e1   : > { %9860 = vst [vmem:[#allocation13_spill] sm:$0xff] %v9859_v26  ;;  %v9863_v18 = vsel %vm8481_vm13, 4294967295, %v9862_v18  ;;  %v4800_v7 = vsel %vm9864_vm14, %v4764_v31, 0.0  ;;  %vm8491_vm10 = vcmp.lt.s32.totalorder %v9865_v58, 16  ;;  %v4384_v49 = vmul.u32 18, %v4383_v59  ;;  %vm9869_vm9 = vmmov %vm9864_vm14  ;;  %v3382_v58 = vpop.f32.mrf.mxu1  ;;  %v9921_v26 = vld [vmem:[#allocation36_spill] sm:$0xff] }
 0x1e2   : > { %v9867_v41 = vsel %vm8491_vm10, 4294967295, %v9866_v41  ;;  %v8496_v5 = vmul.u32.u64.low 3817748708, %v8090_v21  ;;  %v8497_v0 = vmul.u32.u64.high 3817748708, %v8090_v21, %v8496_v5  ;;  %v4801_v14 = vsel %vm9869_vm9, %v4765_v28, 0.0  ;;  %vm9870_vm14 = vmmov %vm9869_vm9 }
 0x1e3   : > { %9868 = vst [vmem:[#allocation22_spill] sm:$0xff] %v9867_v41  ;;  %4010 = vst.msk [vmem:[%s8364_s18 + $0x18] sm:$0xff] %vm9870_vm14, %v8461_v17  ;;  %v8503_v31 = vadd.f32 %v3801_v57, %v3543_v1  ;;  %v3546_v20 = vadd.f32 %v6248_v45, %v9872_v44  ;;  %v4372_v63 = vshrl.u32 %v8359_v11, 4  ;;  %v4802_v51 = vadd.f32 %v4801_v14, %v4800_v7  ;;  %v9875_v7 = vld [vmem:[#allocation16_spill] sm:$0xff]  ;;  %v9876_v5 = vld [vmem:[#allocation31_spill] sm:$0xff]  ;;  %v6251_v61 = vpop.f32.mrf.mxu1 }
 0x1e4   : > { %v8516_v1 = vsub.s32 %v8049_v52, %v4351_v55  ;;  %v4767_v14 = vsel %vm8317_vm6, %v8461_v17, 0.0  ;;  %vm9873_vm11 = vmmov %vm9869_vm9  ;;  %v3545_v45 = vadd.f32 %v3382_v58, %v9875_v7  ;;  %vm9877_vm15 = vnez %v9876_v5  ;;  %v9878_v44 = vld [vmem:[#allocation28_spill] sm:$0xff]  ;;  %v6307_v17 = vpop.f32.mrf.mxu0  ;;  %v9926_v41 = vld [vmem:[#allocation50_spill] sm:$0xff] }
 0x1e5   : > { %9871 = vst [vmem:[#allocation72_spill] sm:$0xff] %v8503_v31  ;;  %4009 = vst.msk [vmem:[%s8364_s18 + $0x10] sm:$0xff] %vm9873_vm11, %v8503_v31  ;;  %v4766_v11 = vsel %vm8326_vm8, %v8503_v31, 0.0  ;;  %v8527_v57 = vadd.f32 %v6304_v6, %v3546_v20  ;;  %v9879_v52 = vld [vmem:[#allocation24_spill] sm:$0xff]  ;;  %v9881_v28 = vmov 0  ;;  %v9887_v6 = vmov 0 }
 0x1e6   : > { %v9880_v55 = vsel %vm9877_vm15, %v9878_v44, %v9879_v52  ;;  %vm9884_vm14 = vmmov %vm9873_vm11  ;;  %vm9885_vm11 = vnez %v9727_v32  ;;  %v8550_v58 = vsub.s32 %v8070_v12, %v4384_v49  ;;  %v8559_v44 = vadd.f32 %v3811_v54, %v3545_v45  ;;  %v9891_v32 = vld [vmem:[#allocation17_spill] sm:$0xff]  ;;  %v3392_v49 = vpop.f32.mrf.mxu1  ;;  %v9898_v45 = vld [vmem:[#allocation34_spill] sm:$0xff] }
 0x1e7   : > { %9874 = vst [vmem:[#allocation14_spill] sm:$0xff] %v8527_v57  ;;  %vm8535_vm9 = vcmp.lt.s32.totalorder %v9880_v55, 16  ;;  %v4803_v59 = vsel %vm9884_vm14, %v4766_v11, 0.0  ;;  %v9886_v20 = vsel %vm9885_vm11, %v7913_v33, %v7865_v9  ;;  %vm9889_vm15 = vmmov %vm9884_vm14  ;;  %v3548_v52 = vadd.f32 %v6251_v61, %v9891_v32  ;;  %v3821_v55 = vpop.f32.mrf.mxu0 }
 0x1e8   : > { %v9882_v28 = vsel %vm8535_vm9, 4294967295, %v9881_v28  ;;  %vm8545_vm6 = vcmp.lt.s32.totalorder %v9886_v20, 16  ;;  %v8553_v7 = vmul.u32.u64.low 3817748708, %v8120_v62  ;;  %v8554_v5 = vmul.u32.u64.high 3817748708, %v8120_v62, %v8553_v7  ;;  %4012 = vst.msk [vmem:[%s8364_s18 + $0x28] sm:$0xff] %vm9889_vm15, %v8527_v57  ;;  %9890 = vst [vmem:[#allocation31_spill] sm:$0xff] %v8559_v44 }
 0x1e9   : > { %9883 = vst [vmem:[#allocation16_spill] sm:$0xff] %v9882_v28  ;;  %v9888_v6 = vsel %vm8545_vm6, 4294967295, %v9887_v6  ;;  %v4804_v11 = vadd.f32 %v4803_v59, %v4802_v51  ;;  %v4373_v9 = vmul.u32 18, %v4372_v63  ;;  %v4805_v33 = vsel %vm9884_vm14, %v4767_v14, 0.0  ;;  %vm9892_vm15 = vmmov %vm9884_vm14  ;;  %v9895_v51 = vld [vmem:[#allocation18_spill] sm:$0xff]  ;;  %v9896_v14 = vld [vmem:[#allocation35_spill] sm:$0xff] }
 0x1ea   : > { %v4769_v12 = vsel %vm8394_vm0, %v8527_v57, 0.0  ;;  %4011 = vst.msk [vmem:[%s8364_s18 + $0x20] sm:$0xff] %vm9892_vm15, %v8559_v44  ;;  %vm9893_vm12 = vnez %v9839_v4  ;;  %v8574_v63 = vadd.f32 %v6307_v17, %v3548_v52  ;;  %v3547_v59 = vadd.f32 %v3392_v49, %v9895_v51  ;;  %v9899_v20 = vld [vmem:[#allocation26_spill] sm:$0xff]  ;;  %vm9904_vm8 = vmmov %vm9892_vm15  ;;  %v6254_v57 = vpop.f32.mrf.mxu1  ;;  %v6310_v4 = vpop.f32.mrf.mxu0  ;;  %v9907_v17 = vld [vmem:[#allocation39_spill] sm:$0xff] }
 0x1eb   : > { %v4768_v54 = vsel %vm9893_vm12, %v8559_v44, 0.0  ;;  %v4806_v61 = vadd.f32 %v4805_v33, %v4804_v11  ;;  %vm9897_vm14 = vnez %v9896_v14  ;;  %v9901_v32 = vmov 0  ;;  %v9908_v11 = vld [vmem:[#allocation32_spill] sm:$0xff] }
 0x1ec   : > { %9894 = vst [vmem:[#allocation28_spill] sm:$0xff] %v8574_v63  ;;  %v9900_v7 = vsel %vm9897_vm14, %v9898_v45, %v9899_v20  ;;  %v4807_v27 = vsel %vm9904_vm8, %v4768_v54, 0.0  ;;  %vm9906_vm15 = vnez %v9905_v38  ;;  %v9910_v33 = vmov 0  ;;  %4014 = vst.msk [vmem:[%s8364_s18 + $0x38] sm:$0xff] %vm9904_vm8, %v8574_v63  ;;  %v9913_v38 = vld [vmem:[#allocation20_spill] sm:$0xff] }
 0x1ed   : > { %vm8582_vm11 = vcmp.lt.s32.totalorder %v9900_v7, 16  ;;  %v9909_v52 = vsel %vm9906_vm15, %v9907_v17, %v9908_v11  ;;  %v8597_v49 = vadd.s32 18, %v8516_v1  ;;  %v4405_v51 = vshrl.u32 %v8497_v0, 4  ;;  %vm9914_vm15 = vmmov %vm9904_vm8  ;;  %v3402_v11 = vpop.f32.mrf.mxu1  ;;  %v9915_v0 = vld [vmem:[#allocation59_spill] sm:$0xff] }
 0x1ee   : > { %v9902_v32 = vsel %vm8582_vm11, 4294967295, %v9901_v32  ;;  %vm8592_vm0 = vcmp.lt.s32.totalorder %v9909_v52, 16  ;;  %v4808_v54 = vadd.f32 %v4807_v27, %v4806_v61  ;;  %v8604_v14 = vadd.f32 %v3821_v55, %v3547_v59  ;;  %v3831_v52 = vpop.f32.mrf.mxu0  ;;  %v9918_v59 = vld [vmem:[#allocation45_spill] sm:$0xff] }
 0x1ef   : > { %9903 = vst [vmem:[#allocation24_spill] sm:$0xff] %v9902_v32  ;;  %v9911_v33 = vsel %vm8592_vm0, 4294967295, %v9910_v33  ;;  %v3550_v45 = vadd.f32 %v6254_v57, %v9913_v38  ;;  %v8608_v20 = vsub.s32 %v8087_v37, %v4373_v9  ;;  %v4809_v7 = vsel %vm9914_vm15, %v4769_v12, 0.0  ;;  %v9917_v12 = vld [vmem:[#allocation21_spill] sm:$0xff]  ;;  %v9920_v38 = vld [vmem:[#allocation43_spill] sm:$0xff]  ;;  %v6257_v31 = vpop.f32.mrf.mxu1 }
 0x1f0   : > { %9912 = vst [vmem:[#allocation17_spill] sm:$0xff] %v8604_v14  ;;  %v4771_v17 = vsel %vm8469_vm7, %v8574_v63, 0.0  ;;  %v8615_v27 = vmul.u32.u64.low 3817748708, %v9915_v0  ;;  %v8616_v61 = vmul.u32.u64.high 3817748708, %v9915_v0, %v8615_v27  ;;  %4013 = vst.msk [vmem:[%s8364_s18 + $0x30] sm:$0xff] %vm9904_vm8, %v8604_v14  ;;  %v4770_v37 = vsel %vm8491_vm10, %v8604_v14, 0.0  ;;  %v6313_v15 = vpop.f32.mrf.mxu0 }
 0x1f1   : > { %v4810_v57 = vadd.f32 %v4809_v7, %v4808_v54  ;;  %v8624_v9 = vadd.f32 %v6310_v4, %v3550_v45  ;;  %v3549_v55 = vadd.f32 %v3402_v11, %v9917_v12  ;;  %vm9919_vm15 = vnez %v9918_v59  ;;  %vm9925_vm7 = vmmov %vm9904_vm8  ;;  %v9928_v54 = vld [vmem:[#allocation48_spill] sm:$0xff] }
 0x1f2   : > { %v9922_v63 = vsel %vm9919_vm15, %v9920_v38, %v9921_v26  ;;  %v9923_v44 = vmov 0  ;;  %v4811_v27 = vsel %vm9925_vm7, %v4770_v37, 0.0  ;;  %vm9927_vm8 = vnez %v9926_v41  ;;  %v9929_v4 = vld [vmem:[#allocation40_spill] sm:$0xff]  ;;  %v9933_v37 = vld [vmem:[#allocation23_spill] sm:$0xff]  ;;  %vm9945_vm12 = vmmov %vm9925_vm7 }
 0x1f3   : > { %9916 = vst [vmem:[#allocation18_spill] sm:$0xff] %v8624_v9  ;;  %vm8632_vm14 = vcmp.lt.s32.totalorder %v9922_v63, 16  ;;  %v9930_v45 = vsel %vm9927_vm8, %v9928_v54, %v9929_v4  ;;  %v9931_v7 = vmov 0  ;;  %v8648_v26 = vadd.s32 18, %v8550_v58  ;;  %4016 = vst.msk [vmem:[%s8364_s18 + $0x48] sm:$0xff] %vm9925_vm7, %v8624_v9  ;;  %v3412_v4 = vpop.f32.mrf.mxu1 }
 0x1f4   : > { %v9924_v44 = vsel %vm8632_vm14, 4294967295, %v9923_v44  ;;  %vm8642_vm10 = vcmp.lt.s32.totalorder %v9930_v45, 16  ;;  %v4394_v63 = vshrl.u32 %v8554_v5, 4  ;;  %v4812_v11 = vadd.f32 %v4811_v27, %v4810_v57  ;;  %vm9934_vm8 = vmmov %vm9925_vm7  ;;  %v3841_v45 = vpop.f32.mrf.mxu0  ;;  %v9937_v57 = vld [vmem:[#allocation54_spill] sm:$0xff] }
 0x1f5   : > { %v9932_v7 = vsel %vm8642_vm10, 4294967295, %v9931_v7  ;;  %v8654_v41 = vadd.f32 %v3831_v52, %v3549_v55  ;;  %v3552_v12 = vadd.f32 %v6257_v31, %v9933_v37  ;;  %v4406_v59 = vmul.u32 18, %v4405_v51  ;;  %v9939_v55 = vld [vmem:[#allocation52_spill] sm:$0xff]  ;;  %v9940_v27 = vld [vmem:[#allocation46_spill] sm:$0xff]  ;;  %v6260_v14 = vpop.f32.mrf.mxu1  ;;  %vm9960_vm4 = vmmov %vm9945_vm12 }
 0x1f6   : > { %v4813_v38 = vsel %vm9934_vm8, %v4771_v17, 0.0  ;;  %v4773_v54 = vsel %vm8535_vm9, %v8624_v9, 0.0  ;;  %v9936_v17 = vld [vmem:[#allocation25_spill] sm:$0xff]  ;;  %vm9938_vm8 = vnez %v9937_v57  ;;  %v9942_v28 = vmov 0  ;;  %v6316_v3 = vpop.f32.mrf.mxu0 }
 0x1f7   : > { %4015 = vst.msk [vmem:[%s8364_s18 + $0x40] sm:$0xff] %vm9925_vm7, %v8654_v41  ;;  %v4772_v31 = vsel %vm8545_vm6, %v8654_v41, 0.0  ;;  %v4814_v5 = vadd.f32 %v4813_v38, %v4812_v11  ;;  %v8669_v51 = vadd.f32 %v6313_v15, %v3552_v12  ;;  %v3551_v52 = vadd.f32 %v3412_v4, %v9936_v17 }
 0x1f8   : > { %v9941_v37 = vsel %vm9938_vm8, %v9939_v55, %v9940_v27  ;;  %v4815_v9 = vsel %vm9945_vm12, %v4772_v31, 0.0  ;;  %vm9946_vm7 = vnez %v9764_v60  ;;  %v9948_v11 = vmov 0 }
 0x1f9   : > { %9935 = vst [vmem:[#allocation35_spill] sm:$0xff] %v8669_v51  ;;  %vm8677_vm15 = vcmp.lt.s32.totalorder %v9941_v37, 16  ;;  %v9947_v15 = vsel %vm9946_vm7, %v8136_v10, %v8077_v19  ;;  %vm9951_vm6 = vcmp.ne.s32.totalorder %v8516_v1, 0  ;;  %vm9952_vm8 = vcmp.lt.s32.totalorder %v8516_v1, 0  ;;  %4018 = vst.msk [vmem:[%s8364_s18 + $0x58] sm:$0xff] %vm9945_vm12, %v8669_v51  ;;  %v9955_v19 = vld [vmem:[#allocation27_spill] sm:$0xff] }
 0x1fa   : > { %v9943_v28 = vsel %vm8677_vm15, 4294967295, %v9942_v28  ;;  %vm8687_vm9 = vcmp.lt.s32.totalorder %v9947_v15, 16  ;;  %vm8695_vm13 = vmand %vm9952_vm8, %vm9951_vm6  ;;  %v4395_v38 = vmul.u32 18, %v4394_v63  ;;  %v4816_v31 = vadd.f32 %v4815_v9, %v4814_v5  ;;  %v3422_v5 = vpop.f32.mrf.mxu1 }
 0x1fb   : > { %9944 = vst [vmem:[#allocation34_spill] sm:$0xff] %v9943_v28  ;;  %v9949_v11 = vsel %vm8687_vm9, 4294967295, %v9948_v11  ;;  %v8700_v4 = vmul.u32.u64.low 3817748708, %v8187_v8  ;;  %v8701_v60 = vmul.u32.u64.high 3817748708, %v8187_v8, %v8700_v4  ;;  %v8706_v10 = vadd.f32 %v3841_v45, %v3551_v52  ;;  %v3851_v52 = vpop.f32.mrf.mxu0 }
 0x1fc   : > { %9950 = vst [vmem:[#allocation26_spill] sm:$0xff] %v9949_v11  ;;  %v3554_v17 = vadd.f32 %v6260_v14, %v9955_v19  ;;  %vm9956_vm7 = vcmp.ne.s32.totalorder %v8550_v58, 0  ;;  %vm9957_vm6 = vcmp.lt.s32.totalorder %v8550_v58, 0  ;;  %v8718_v63 = vadd.s32 18, %v8608_v20  ;;  %v9965_v4 = vld [vmem:[#allocation29_spill] sm:$0xff]  ;;  %v6263_v32 = vpop.f32.mrf.mxu1 }
 0x1fd   : > { %vm8713_vm8 = vmand %vm9957_vm6, %vm9956_vm7  ;;  %v4817_v9 = vsel %vm9960_vm4, %v4773_v54, 0.0  ;;  %v4775_v45 = vsel %vm8582_vm11, %v8669_v51, 0.0  ;;  %vm9961_vm12 = vcmp.ne.s32.totalorder %v8608_v20, 0  ;;  %vm9962_vm2 = vcmp.lt.s32.totalorder %v8608_v20, 0  ;;  %4017 = vst.msk [vmem:[%s8364_s18 + $0x50] sm:$0xff] %vm9960_vm4, %v8706_v10  ;;  %v6319_v51 = vpop.f32.mrf.mxu0 }
 0x1fe   : > { %vm8728_vm5 = vmand %vm9962_vm2, %vm9961_vm12  ;;  %v8733_v55 = vsub.s32 %v8090_v21, %v4406_v59  ;;  %v4427_v54 = vshrl.u32 %v8616_v61, 4  ;;  %v4774_v27 = vsel %vm8592_vm0, %v8706_v10, 0.0  ;;  %v4818_v37 = vadd.f32 %v4817_v9, %v4816_v31 }
 0x1ff   : > { %v8742_v15 = vadd.f32 %v6316_v3, %v3554_v17  ;;  %v3553_v19 = vadd.f32 %v3422_v5, %v9965_v4  ;;  %vm9966_vm2 = vnez %v9767_v24  ;;  %v9968_v59 = vmov 0  ;;  %vm9971_vm6 = vmmov %vm9960_vm4 }
 0x200   : > { %v9967_v21 = vsel %vm9966_vm2, %v8157_v35, %v8096_v25  ;;  %v4819_v61 = vsel %vm9971_vm6, %v4774_v27, 0.0  ;;  %vm9972_vm12 = vnez %v9798_v43  ;;  %v9974_v31 = vmov 0  ;;  %vm9977_vm2 = vmmov %vm9971_vm6  ;;  %v3861_v27 = vpop.f32.mrf.mxu0 }
 0x201   : > { %vm8750_vm7 = vcmp.lt.s32.totalorder %v9967_v21, 16  ;;  %v9973_v3 = vsel %vm9972_vm12, %v8215_v53, %v8175_v22  ;;  %v8773_v24 = vsub.s32 %v8120_v62, %v4395_v38  ;;  %v4820_v43 = vadd.f32 %v4819_v61, %v4818_v37  ;;  %4020 = vst.msk [vmem:[%s8364_s18 + $0x68] sm:$0xff] %vm9977_vm2, %v8742_v15  ;;  %v9978_v53 = vld [vmem:[#allocation30_spill] sm:$0xff]  ;;  %vm9979_vm6 = vmmov %vm9977_vm2  ;;  %v3432_v38 = vpop.f32.mrf.mxu1 }
 0x202   : > { %v9969_v59 = vsel %vm8750_vm7, 4294967295, %v9968_v59  ;;  %vm8760_vm4 = vcmp.lt.s32.totalorder %v9973_v3, 16  ;;  %v8778_v22 = vadd.f32 %v3851_v52, %v3553_v19  ;;  %v3556_v17 = vadd.f32 %v6263_v32, %v9978_v53  ;;  %vm9980_vm11 = vmmov %vm9977_vm2  ;;  %v9981_v19 = vld [vmem:[#allocation33_spill] sm:$0xff]  ;;  %v6322_v9 = vpop.f32.mrf.mxu0 }
 0x203   : > { %9970 = vst [vmem:[#allocation42_spill] sm:$0xff] %v9969_v59  ;;  %v9975_v31 = vsel %vm8760_vm4, 4294967295, %v9974_v31  ;;  %v4821_v5 = vsel %vm9979_vm6, %v4775_v45, 0.0  ;;  %v4777_v62 = vsel %vm8632_vm14, %v8742_v15, 0.0  ;;  %v8792_v32 = vadd.s32 18, %v8733_v55  ;;  %vm9987_vm12 = vmmov %vm9980_vm11  ;;  %v6266_v53 = vpop.f32.mrf.mxu1  ;;  %v10035_v59 = vld [vmem:[#allocation12_spill] sm:$0xff] }
 0x204   : > { %9976 = vst [vmem:[#allocation39_spill] sm:$0xff] %v9975_v31  ;;  %v4428_v52 = vmul.u32 18, %v4427_v54  ;;  %4019 = vst.msk [vmem:[%s8364_s18 + $0x60] sm:$0xff] %vm9980_vm11, %v8778_v22  ;;  %v4776_v45 = vsel %vm8642_vm10, %v8778_v22, 0.0  ;;  %v4822_v37 = vadd.f32 %v4821_v5, %v4820_v43  ;;  %v8800_v4 = vadd.f32 %v6319_v51, %v3556_v17  ;;  %v10036_v31 = vld [vmem:[#allocation19_spill] sm:$0xff] }
 0x205   : > { %v3555_v21 = vadd.f32 %v3432_v38, %v9981_v19  ;;  %vm9982_vm6 = vnez %v9804_v2  ;;  %v9984_v3 = vmov 0  ;;  %v4823_v54 = vsel %vm9987_vm12, %v4776_v45, 0.0  ;;  %v3442_v19 = vpop.f32.mrf.mxu1 }
 0x206   : > { %v9983_v61 = vsel %vm9982_vm6, %v8234_v48, %v8200_v47  ;;  %v9988_v51 = vsel %vm8334_vm1, %v8280_v42, %v8221_v39  ;;  %v9989_v43 = vmov 0  ;;  %v9992_v47 = vld [vmem:[#allocation61_spill] sm:$0xff]  ;;  %v4824_v17 = vadd.f32 %v4823_v54, %v4822_v37  ;;  %4022 = vst.msk [vmem:[%s8364_s18 + $0x78] sm:$0xff] %vm9987_vm12, %v8800_v4  ;;  %vm9994_vm1 = vmmov %vm9987_vm12 }
 0x207   : > { %vm8808_vm2 = vcmp.lt.s32.totalorder %v9983_v61, 16  ;;  %vm8818_vm11 = vcmp.lt.s32.totalorder %v9988_v51, 16  ;;  %v8824_v48 = vmul.u32.u64.low 3817748708, %v9992_v47  ;;  %v8825_v2 = vmul.u32.u64.high 3817748708, %v9992_v47, %v8824_v48  ;;  %v3871_v61 = vpop.f32.mrf.mxu0  ;;  %vm9995_vm12 = vmmov %vm9994_vm1  ;;  %v6269_v51 = vpop.f32.mrf.mxu1 }
 0x208   : > { %v9985_v3 = vsel %vm8808_vm2, 4294967295, %v9984_v3  ;;  %v9990_v43 = vsel %vm8818_vm11, 4294967295, %v9989_v43  ;;  %v8830_v5 = vadd.f32 %v3861_v27, %v3555_v21  ;;  %v3558_v38 = vadd.f32 %v6266_v53, %v9993_v40  ;;  %v9996_v21 = vld [vmem:[#allocation38_spill] sm:$0xff]  ;;  %vm10000_vm6 = vmmov %vm9995_vm12 }
 0x209   : > { %9986 = vst [vmem:[#allocation32_spill] sm:$0xff] %v9985_v3  ;;  %9991 = vst [vmem:[#allocation20_spill] sm:$0xff] %v9990_v43  ;;  %v4416_v39 = vshrl.u32 %v8701_v60, 4  ;;  %v4825_v42 = vsel %vm9994_vm1, %v4777_v62, 0.0  ;;  %v4779_v45 = vsel %vm8677_vm15, %v8800_v4, 0.0  ;;  %v8840_v37 = vsub.s32 %v9915_v0, %v4428_v52  ;;  %v6325_v48 = vpop.f32.mrf.mxu0 }
 0x20a   : > { %4021 = vst.msk [vmem:[%s8364_s18 + $0x70] sm:$0xff] %vm9995_vm12, %v8830_v5  ;;  %v4778_v60 = vsel %vm8687_vm9, %v8830_v5, 0.0  ;;  %v4826_v62 = vadd.f32 %v4825_v42, %v4824_v17  ;;  %v8848_v27 = vadd.f32 %v6322_v9, %v3558_v38  ;;  %v3557_v54 = vadd.f32 %v3442_v19, %v9996_v21  ;;  %v10002_v9 = vld [vmem:[#allocation68_spill] sm:$0xff] }
 0x20b   : > { %v9997_v53 = vsel %vm8353_vm3, %v8294_v36, %v8237_v29  ;;  %v4827_v52 = vsel %vm10000_vm6, %v4778_v60, 0.0  ;;  %vm10001_vm12 = vnez %v9830_v13  ;;  %v8871_v29 = vadd.s32 18, %v8773_v24  ;;  %v10006_v36 = vld [vmem:[#allocation62_spill] sm:$0xff]  ;;  %vm10007_vm3 = vmmov %vm10000_vm6  ;;  %v10008_v13 = vld [vmem:[#allocation41_spill] sm:$0xff] }
 0x20c   : > { %vm8856_vm1 = vcmp.lt.s32.totalorder %v9997_v53, 16  ;;  %v10003_v17 = vsel %vm10001_vm12, %v8339_v23, %v10002_v9  ;;  %v8874_v16 = vmul.u32.u64.low 3817748708, %v10006_v36  ;;  %v8875_v38 = vmul.u32.u64.high 3817748708, %v10006_v36, %v8874_v16  ;;  %4024 = vst.msk [vmem:[%s8364_s18 + $0x88] sm:$0xff] %vm10007_vm3, %v8848_v27  ;;  %vm10009_vm6 = vmmov %vm10007_vm3  ;;  %v3452_v9 = vpop.f32.mrf.mxu1 }
 0x20d   : > { %vm8866_vm15 = vcmp.lt.s32.totalorder %v10003_v17, 16  ;;  %v4828_v42 = vadd.f32 %v4827_v52, %v4826_v62  ;;  %v8880_v19 = vadd.f32 %v3871_v61, %v3557_v54  ;;  %v3560_v60 = vadd.f32 %v6269_v51, %v10008_v13  ;;  %v3881_v17 = vpop.f32.mrf.mxu0  ;;  %v10010_v62 = vld [vmem:[#allocation44_spill] sm:$0xff]  ;;  %v10012_v52 = vld [vmem:[#allocation10_spill] sm:$0xff]  ;;  %vm10016_vm9 = vmmov %vm10007_vm3 }
 0x20e   : > { %v4417_v23 = vmul.u32 18, %v4416_v39  ;;  %v4829_v21 = vsel %vm10009_vm6, %v4779_v45, 0.0  ;;  %v4781_v53 = vsel %vm8750_vm7, %v8848_v27, 0.0  ;;  %v3559_v54 = vadd.f32 %v3452_v9, %v10010_v62  ;;  %v6272_v35 = vpop.f32.mrf.mxu1  ;;  %vm10027_vm14 = vmmov %vm10016_vm9 }
 0x20f   : > { %4023 = vst.msk [vmem:[%s8364_s18 + $0x80] sm:$0xff] %vm10007_vm3, %v8880_v19  ;;  %v4780_v39 = vsel %vm8760_vm4, %v8880_v19, 0.0  ;;  %v4830_v61 = vadd.f32 %v4829_v21, %v4828_v42  ;;  %v8895_v45 = vadd.f32 %v6325_v48, %v3560_v60  ;;  %vm10011_vm6 = vnez %v9844_v30  ;;  %v6328_v25 = vpop.f32.mrf.mxu0  ;;  %v10021_v30 = vld [vmem:[#allocation64_spill] sm:$0xff] }
 0x210   : > { %v10013_v51 = vsel %vm10011_vm6, %v8383_v50, %v10012_v52  ;;  %v4831_v13 = vsel %vm10016_vm9, %v4780_v39, 0.0  ;;  %vm10017_vm3 = vnez %v9851_v56  ;;  %v4449_v50 = vshrl.u32 %v8825_v2, 4  ;;  %v10022_v56 = vld [vmem:[#allocation47_spill] sm:$0xff]  ;;  %v10032_v52 = vld [vmem:[#allocation66_spill] sm:$0xff] }
 0x211   : > { %vm8903_vm12 = vcmp.lt.s32.totalorder %v10013_v51, 16  ;;  %v10018_v48 = vsel %vm10017_vm3, %v8450_v34, %v8310_v46  ;;  %v8919_v60 = vmul.u32.u64.low 3817748708, %v10021_v30  ;;  %v8920_v21 = vmul.u32.u64.high 3817748708, %v10021_v30, %v8919_v60  ;;  %4026 = vst.msk [vmem:[%s8364_s18 + $0x98] sm:$0xff] %vm10016_vm9, %v8895_v45 }
 0x212   : > { %vm8913_vm7 = vcmp.lt.s32.totalorder %v10018_v48, 16  ;;  %v4832_v9 = vadd.f32 %v4831_v13, %v4830_v61  ;;  %v8925_v39 = vadd.f32 %v3881_v17, %v3559_v54  ;;  %v3562_v62 = vadd.f32 %v6272_v35, %v10022_v56  ;;  %v3462_v61 = vpop.f32.mrf.mxu1  ;;  %v3891_v54 = vpop.f32.mrf.mxu0  ;;  %v10033_v56 = vld [vmem:[#allocation49_spill] sm:$0xff] }
 0x213   : > { %vm10023_vm6 = vcmp.ne.s32.totalorder %v8733_v55, 0  ;;  %vm10024_vm3 = vcmp.lt.s32.totalorder %v8733_v55, 0  ;;  %v8937_v34 = vadd.s32 18, %v8840_v37  ;;  %v4833_v2 = vsel %vm10027_vm14, %v4781_v53, 0.0 }
 0x214   : > { %vm8932_vm4 = vmand %vm10024_vm3, %vm10023_vm6  ;;  %v4783_v17 = vsel %vm8808_vm2, %v8895_v45, 0.0  ;;  %vm10028_vm9 = vcmp.ne.s32.totalorder %v8773_v24, 0  ;;  %vm10029_vm10 = vcmp.lt.s32.totalorder %v8773_v24, 0  ;;  %4025 = vst.msk [vmem:[%s8364_s18 + $0x90] sm:$0xff] %vm10027_vm14, %v8925_v39  ;;  %v4782_v53 = vsel %vm8818_vm11, %v8925_v39, 0.0 }
 0x215   : > { %vm8947_vm0 = vmand %vm10029_vm10, %vm10028_vm9  ;;  %v8952_v51 = vmul.u32.u64.low 3817748708, %v10032_v52  ;;  %v8953_v13 = vmul.u32.u64.high 3817748708, %v10032_v52, %v8952_v51  ;;  %v4834_v48 = vadd.f32 %v4833_v2, %v4832_v9  ;;  %v8961_v60 = vadd.f32 %v6328_v25, %v3562_v62  ;;  %v6275_v9 = vpop.f32.mrf.mxu1  ;;  %v6331_v62 = vpop.f32.mrf.mxu0 }
 0x216   : > { %v3561_v3 = vadd.f32 %v3462_v61, %v10033_v56  ;;  %vm10034_vm10 = vnez %v9863_v18  ;;  %v10038_v51 = vmov 0  ;;  %vm10040_vm3 = vcmp.ne.s32.totalorder %v8840_v37, 0 }
 0x217   : > { %v10037_v28 = vsel %vm10034_vm10, %v10035_v59, %v10036_v31  ;;  %vm10041_vm9 = vcmp.lt.s32.totalorder %v8840_v37, 0  ;;  %vm10044_vm2 = vcmask 64512   ;;  %v10045_v18 = vsel %vm8695_vm13, %v8597_v49, %v8516_v1  ;;  %v10048_v1 = vld [vmem:[#allocation51_spill] sm:$0xff] }
 0x218   : > { %vm8969_vm6 = vcmp.lt.s32.totalorder %v10037_v28, 16  ;;  %vm8977_vm14 = vmand %vm10041_vm9, %vm10040_vm3  ;;  %v4835_v25 = vsel %vm10044_vm2, %v4782_v53, 0.0  ;;  %vm8987_vm10 = vcmp.lt.s32.totalorder %v10045_v18, 16  ;;  %v4649_v59 = vsel %vm8932_vm4, %v8792_v32, %v8733_v55  ;;  %4028 = vst.msk [vmem:[%s8364_s18 + $0xa8] sm:$0xff] %vm10044_vm2, %v8961_v60  ;;  %v3472_v32 = vpop.f32.mrf.mxu1 }
 0x219   : > { %v10039_v51 = vsel %vm8969_vm6, 4294967295, %v10038_v51  ;;  %v8996_v31 = vsub.s32 %v8187_v8, %v4417_v23  ;;  %v4450_v2 = vmul.u32 18, %v4449_v50  ;;  %v4836_v61 = vadd.f32 %v4835_v25, %v4834_v48  ;;  %vm10049_vm13 = vmmov %vm10044_vm2  ;;  %v3901_v8 = vpop.f32.mrf.mxu0  ;;  %v10060_v25 = vld [vmem:[#allocation55_spill] sm:$0xff] }
 0x21a   : > { %v9001_v12 = vadd.f32 %v3891_v54, %v3561_v3  ;;  %v3564_v49 = vadd.f32 %v6275_v9, %v10048_v1  ;;  %v4438_v53 = vshrl.u32 %v8875_v38, 4  ;;  %v4837_v56 = vsel %vm10049_vm13, %v4783_v17, 0.0  ;;  %vm10050_vm4 = vmmov %vm10044_vm2  ;;  %v10051_v17 = vld [vmem:[#allocation53_spill] sm:$0xff] }
 0x21b   : > { %v4785_v55 = vsel %vm8856_vm1, %v8961_v60, 0.0  ;;  %v4648_v23 = vsel %vm8947_vm0, %v8871_v29, %v8773_v24  ;;  %v4651_v3 = vsel %vm8977_vm14, %v8937_v34, %v8840_v37  ;;  %v4838_v50 = vadd.f32 %v4837_v56, %v4836_v61  ;;  %vm10055_vm3 = vmmov %vm10044_vm2  ;;  %v6278_v29 = vpop.f32.mrf.mxu1  ;;  %v6334_v34 = vpop.f32.mrf.mxu0 }
 0x21c   : > { %4027 = vst.msk [vmem:[%s8364_s18 + $0xa0] sm:$0xff] %vm10050_vm4, %v9001_v12  ;;  %v4784_v38 = vsel %vm8866_vm15, %v9001_v12, 0.0  ;;  %v9023_v46 = vadd.f32 %v6331_v62, %v3564_v49  ;;  %v3563_v54 = vadd.f32 %v3472_v32, %v10051_v17  ;;  %v10052_v24 = vsel %vm8713_vm8, %v8648_v26, %v8550_v58  ;;  %vm10059_vm14 = vmmov %vm10044_vm2  ;;  %v10063_v49 = vld [vmem:[#allocation56_spill] sm:$0xff] }
 0x21d   : > { %vm9031_vm0 = vcmp.lt.s32.totalorder %v10052_v24, 16  ;;  %v10053_v43 = vmov 0  ;;  %v4839_v37 = vsel %vm10055_vm3, %v4784_v38, 0.0  ;;  %v10056_v35 = vsel %vm8728_vm5, %v8718_v63, %v8608_v20  ;;  %vm10061_vm5 = vmmov %vm10044_vm2  ;;  %v3482_v18 = vpop.f32.mrf.mxu1 }
 0x21e   : > { %v10054_v43 = vsel %vm9031_vm0, 4294967295, %v10053_v43  ;;  %vm9041_vm9 = vcmp.lt.s32.totalorder %v10056_v35, 16  ;;  %vm4506_vm8 = vcmp.ne.s32.totalorder %v8996_v31, 0  ;;  %v9047_v58 = vsub.s32 %v9992_v47, %v4450_v2  ;;  %4030 = vst.msk [vmem:[%s8364_s18 + $0xb8] sm:$0xff] %vm10059_vm14, %v9023_v46  ;;  %v3911_v47 = vpop.f32.mrf.mxu0  ;;  %vm10062_vm13 = vmmov %vm10055_vm3 }
 0x21f   : > { %v4471_v26 = vshrl.u32 %v8920_v21, 4  ;;  %v4840_v57 = vadd.f32 %v4839_v37, %v4838_v50  ;;  %v9053_v14 = vadd.f32 %v3901_v8, %v3563_v54  ;;  %v3566_v20 = vadd.f32 %v6278_v29, %v10060_v25  ;;  %v6281_v32 = vpop.f32.mrf.mxu1  ;;  %v10069_v54 = vld [vmem:[#allocation57_spill] sm:$0xff] }
 0x220   : > { %v4439_v63 = vmul.u32 18, %v4438_v53  ;;  %v4841_v9 = vsel %vm10061_vm5, %v4785_v55, 0.0  ;;  %v4787_v62 = vsel %vm8903_vm12, %v9023_v46, 0.0  ;;  %vm4542_vm2 = vcmp.lt.s32.totalorder %v8996_v31, 0 }
 0x221   : > { %v4460_v21 = vshrl.u32 %v8953_v13, 4  ;;  %4029 = vst.msk [vmem:[%s8364_s18 + $0xb0] sm:$0xff] %vm10062_vm13, %v9053_v14  ;;  %v4786_v2 = vsel %vm8913_vm7, %v9053_v14, 0.0  ;;  %v4842_v61 = vadd.f32 %v4841_v9, %v4840_v57  ;;  %v9068_v1 = vadd.f32 %v6334_v34, %v3566_v20  ;;  %v6337_v13 = vpop.f32.mrf.mxu0  ;;  %vm10068_vm13 = vmmov %vm10055_vm3  ;;  %v3492_v35 = vpop.f32.mrf.mxu1 }
 0x222   : > { %v3565_v53 = vadd.f32 %v3482_v18, %v10063_v49  ;;  %vm9071_vm4 = vcmp.lt.s32.totalorder %v4649_v59, 16  ;;  %v10064_v56 = vmov 0  ;;  %v4843_v55 = vsel %vm10055_vm3, %v4786_v2, 0.0  ;;  %vm9094_vm3 = vmand %vm4542_vm2, %vm4506_vm8 }
 0x223   : > { %v10065_v56 = vsel %vm9071_vm4, 4294967295, %v10064_v56  ;;  %vm9076_vm14 = vcmp.lt.s32.totalorder %v4648_v23, 16  ;;  %v9081_v38 = vadd.s32 18, %v8996_v31  ;;  %v4472_v50 = vmul.u32 18, %v4471_v26  ;;  %4032 = vst.msk [vmem:[%s8364_s18 + $0xc8] sm:$0xff] %vm10068_vm13, %v9068_v1  ;;  %v3921_v26 = vpop.f32.mrf.mxu0  ;;  %vm10072_vm8 = vmmov %vm10061_vm5 }
 0x224   : > { %v4844_v17 = vadd.f32 %v4843_v55, %v4842_v61  ;;  %v9087_v59 = vadd.f32 %v3911_v47, %v3565_v53  ;;  %v3568_v24 = vadd.f32 %v6281_v32, %v10069_v54  ;;  %v9099_v37 = vsub.s32 %v10006_v36, %v4439_v63  ;;  %v10073_v63 = vld [vmem:[#allocation58_spill] sm:$0xff]  ;;  %v6284_v47 = vpop.f32.mrf.mxu1  ;;  %v10077_v55 = vld [vmem:[#allocation60_spill] sm:$0xff] }
 0x225   : > { %v4845_v29 = vsel %vm10061_vm5, %v4787_v62, 0.0  ;;  %v4789_v34 = vsel %vm8969_vm6, %v9068_v1, 0.0  ;;  %vm4545_vm13 = vcmp.lt.s32.totalorder %v9047_v58, 0  ;;  %v4461_v57 = vmul.u32 18, %v4460_v21  ;;  %v6340_v21 = vpop.f32.mrf.mxu0 }
 0x226   : > { %4031 = vst.msk [vmem:[%s8364_s18 + $0xc0] sm:$0xff] %vm10072_vm8, %v9087_v59  ;;  %v4788_v36 = vsel %vm8987_vm10, %v9087_v59, 0.0  ;;  %v4846_v25 = vadd.f32 %v4845_v29, %v4844_v17  ;;  %v9112_v20 = vadd.f32 %v6337_v13, %v3568_v24  ;;  %v3567_v9 = vadd.f32 %v3492_v35, %v10073_v63  ;;  %vm10076_vm8 = vmmov %vm10061_vm5  ;;  %v10083_v29 = vld [vmem:[#allocation63_spill] sm:$0xff] }
 0x227   : > { %vm9115_vm2 = vcmp.lt.s32.totalorder %v4651_v3, 16  ;;  %v10074_v62 = vmov 0  ;;  %v4847_v18 = vsel %vm10061_vm5, %v4788_v36, 0.0  ;;  %v4650_v2 = vsel %vm9094_vm3, %v9081_v38, %v8996_v31  ;;  %vm10081_vm6 = vmmov %vm10076_vm8  ;;  %v3502_v38 = vpop.f32.mrf.mxu1 }
 0x228   : > { %v10075_v62 = vsel %vm9115_vm2, 4294967295, %v10074_v62  ;;  %v4617_v61 = vadd.s32 18, %v9047_v58  ;;  %v9126_v49 = vsub.s32 %v10021_v30, %v4472_v50  ;;  %v4848_v53 = vadd.f32 %v4847_v18, %v4846_v25  ;;  %4034 = vst.msk [vmem:[%s8364_s18 + $0xd8] sm:$0xff] %vm10076_vm8, %v9112_v20  ;;  %v3931_v50 = vpop.f32.mrf.mxu0 }
 0x229   : > { %v9131_v3 = vadd.f32 %v3921_v26, %v3567_v9  ;;  %v3570_v32 = vadd.f32 %v6284_v47, %v10077_v55  ;;  %vm10078_vm5 = vcmp.ne.s32.totalorder %v9047_v58, 0  ;;  %vm4508_vm3 = vcmp.ne.s32.totalorder %v9099_v37, 0  ;;  %v6287_v26 = vpop.f32.mrf.mxu1  ;;  %v10085_v9 = vld [vmem:[#allocation65_spill] sm:$0xff] }
 0x22a   : > { %vm9138_vm11 = vmand %vm4545_vm13, %vm10078_vm5  ;;  %v4849_v30 = vsel %vm10081_vm6, %v4789_v34, 0.0  ;;  %v4791_v31 = vsel %vm9031_vm0, %v9112_v20, 0.0  ;;  %vm4544_vm8 = vcmp.lt.s32.totalorder %v9099_v37, 0  ;;  %v9149_v17 = vsub.s32 %v10032_v52, %v4461_v57  ;;  %v6343_v36 = vpop.f32.mrf.mxu0 }
 0x22b   : > { %vm10082_vm13 = vmmov %vm10081_vm6  ;;  %v4790_v54 = vsel %vm9041_vm9, %v9131_v3, 0.0  ;;  %v4850_v24 = vadd.f32 %v4849_v30, %v4848_v53  ;;  %v9157_v23 = vadd.f32 %v6340_v21, %v3570_v32  ;;  %v3569_v34 = vadd.f32 %v3502_v38, %v10083_v29  ;;  %v10090_v30 = vld [vmem:[#allocation67_spill] sm:$0xff] }
 0x22c   : > { %4033 = vst.msk [vmem:[%s8364_s18 + $0xd0] sm:$0xff] %vm10082_vm13, %v9131_v3  ;;  %v4851_v35 = vsel %vm10081_vm6, %v4790_v54, 0.0  ;;  %v4653_v52 = vsel %vm9138_vm11, %v4617_v61, %v9047_v58  ;;  %v4616_v57 = vadd.s32 18, %v9099_v37  ;;  %vm10084_vm13 = vmmov %vm10081_vm6  ;;  %v3572_v18 = vadd.f32 %v6287_v26, %v10085_v9  ;;  %v3512_v61 = vpop.f32.mrf.mxu1  ;;  %v3941_v53 = vpop.f32.mrf.mxu0 }
 0x22d   : > { %v4852_v25 = vadd.f32 %v4851_v35, %v4850_v24  ;;  %4036 = vst.msk [vmem:[%s8364_s18 + $0xe8] sm:$0xff] %vm10084_vm13, %v9157_v23  ;;  %v9169_v63 = vadd.f32 %v3931_v50, %v3569_v34  ;;  %vm9176_vm6 = vmand %vm4544_vm8, %vm4508_vm3  ;;  %vm4547_vm11 = vcmp.lt.s32.totalorder %v9126_v49, 0  ;;  %v4793_v21 = vsel %vm9071_vm4, %v9157_v23, 0.0 }
 0x22e   : > { %vm10088_vm0 = vmmov %vm10084_vm13  ;;  %vm4510_vm13 = vcmp.ne.s32.totalorder %v9149_v17, 0  ;;  %v9193_v13 = vadd.f32 %v6343_v36, %v3572_v18  ;;  %vm9197_vm8 = vcmp.lt.s32.totalorder %v4650_v2, 16  ;;  %v6290_v54 = vpop.f32.mrf.mxu1  ;;  %v6346_v24 = vpop.f32.mrf.mxu0  ;;  %v4652_v29 = vsel %vm9176_vm6, %v4616_v57, %v9099_v37  ;;  %v10094_v36 = vld [vmem:[#allocation69_spill] sm:$0xff] }
 0x22f   : > { %v4853_v58 = vsel %vm10088_vm0, %v4791_v31, 0.0  ;;  %vm10089_vm3 = vmmov %vm10088_vm0  ;;  %v4792_v55 = vsel %vm9076_vm14, %v9169_v63, 0.0  ;;  %v3571_v31 = vadd.f32 %v3512_v61, %v10090_v30  ;;  %v4619_v34 = vadd.s32 18, %v9126_v49  ;;  %v10111_v61 = vld [vmem:[#allocation15_spill] sm:$0xff] }
 0x230   : > { %4035 = vst.msk [vmem:[%s8364_s18 + $0xe0] sm:$0xff] %vm10089_vm3, %v9169_v63  ;;  %v4854_v32 = vadd.f32 %v4853_v58, %v4852_v25  ;;  %v4855_v38 = vsel %vm10088_vm0, %v4792_v55, 0.0  ;;  %vm10093_vm3 = vmmov %vm10088_vm0  ;;  %v3574_v2 = vadd.f32 %v6290_v54, %v10094_v36  ;;  %vm10095_vm0 = vcmp.ne.s32.totalorder %v9126_v49, 0  ;;  %v3522_v47 = vpop.f32.mrf.mxu1  ;;  %v3951_v58 = vpop.f32.mrf.mxu0  ;;  %v10104_v55 = vld [vmem:[#allocation7_spill] sm:$0xff] }
 0x231   : > { %4038 = vst.msk [vmem:[%s8364_s18 + $0xf8] sm:$0xff] %vm10093_vm3, %v9193_v13  ;;  %v9208_v26 = vadd.f32 %v3941_v53, %v3571_v31  ;;  %vm9215_vm5 = vmand %vm4547_vm11, %vm10095_vm0  ;;  %v4618_v37 = vadd.s32 18, %v9149_v17  ;;  %v4795_v9 = vsel %vm9115_vm2, %v9193_v13, 0.0  ;;  %v10099_v18 = vmov 0 }
 0x232   : > { %v4856_v35 = vadd.f32 %v4855_v38, %v4854_v32  ;;  %vm10098_vm6 = vmmov %vm10093_vm3  ;;  %vm9224_vm3 = vcmp.lt.s32.totalorder %v4653_v52, 16  ;;  %vm10101_vm11 = vcmp.lt.s32.totalorder %v9149_v17, 0  ;;  %v9242_v53 = vadd.f32 %v6346_v24, %v3574_v2  ;;  %v6293_v38 = vpop.f32.mrf.mxu1  ;;  %v6349_v54 = vpop.f32.mrf.mxu0 }
 0x233   : > { %v4857_v57 = vsel %vm10098_vm6, %v4793_v21, 0.0  ;;  %v10100_v18 = vsel %vm9224_vm3, 4294967295, %v10099_v18  ;;  %vm9232_vm0 = vmand %vm10101_vm11, %vm4510_vm13  ;;  %4037 = vst.msk [vmem:[%s8364_s18 + $0xf0] sm:$0xff] %vm10098_vm6, %v9208_v26  ;;  %v4794_v52 = vsel %vm9197_vm8, %v9208_v26, 0.0  ;;  %v3573_v32 = vadd.f32 %v3522_v47, %v10104_v55 }
 0x234   : > { %v4858_v21 = vadd.f32 %v4857_v57, %v4856_v35  ;;  %vm10105_vm2 = vmmov %vm10098_vm6  ;;  %vm9246_vm4 = vcmp.lt.s32.totalorder %v4652_v29, 16  ;;  %v4655_v36 = vsel %vm9215_vm5, %v4619_v34, %v9126_v49  ;;  %v10109_v35 = vld [vmem:[#allocation3_spill] sm:$0xff]  ;;  %v4654_v29 = vsel %vm9232_vm0, %v4618_v37, %v9149_v17  ;;  %v3532_v49 = vpop.f32.mrf.mxu1 }
 0x235   : > { %v4859_v30 = vsel %vm10105_vm2, %v4794_v52, 0.0  ;;  %vm10108_vm13 = vmmov %vm10105_vm2  ;;  %v9256_v24 = vadd.f32 %v3951_v58, %v3573_v32  ;;  %v3576_v2 = vadd.f32 %v6293_v38, %v10109_v35  ;;  %v4861_v57 = vsel %vm10105_vm2, %v4795_v9, 0.0  ;;  %v3961_v52 = vpop.f32.mrf.mxu0 }
 0x236   : > { %v4860_v11 = vadd.f32 %v4859_v30, %v4858_v21  ;;  %4040 = vst.msk [vmem:[%s8364_s18 + $0x108] sm:$0xff] %vm10108_vm13, %v9242_v53  ;;  %v4797_v25 = vsel %vm9224_vm3, %v9242_v53, 0.0  ;;  %vm10110_vm5 = vmmov %vm10105_vm2  ;;  %v3575_v17 = vadd.f32 %v3532_v49, %v10111_v61  ;;  %vm9276_vm0 = vcmp.lt.s32.totalorder %v4655_v36, 16  ;;  %v10134_v21 = vld [vmem:[#allocation31_spill] sm:$0xff] }
 0x237   : > { %4039 = vst.msk [vmem:[%s8364_s18 + $0x100] sm:$0xff] %vm10110_vm5, %v9256_v24  ;;  %v4796_v34 = vsel %vm9246_vm4, %v9256_v24, 0.0  ;;  %v9272_v58 = vadd.f32 %v6349_v54, %v3576_v2  ;;  %vm10112_vm11 = vmmov %vm10105_vm2  ;;  %vm9280_vm6 = vcmp.lt.s32.totalorder %v4654_v29, 16  ;;  %v4865_v32 = vsel %vm10105_vm2, %v4797_v25, 0.0 }
 0x238   : > { %v4862_v47 = vadd.f32 %v4861_v57, %v4860_v11  ;;  %v4863_v37 = vsel %vm10112_vm11, %v4796_v34, 0.0  ;;  %vm10117_vm13 = vmmov %vm10105_vm2  ;;  %v4004_v11 = vadd.f32 %v3961_v52, %v3575_v17 }
 0x239   : > { %4042 = vst.msk [vmem:[%s8364_s18 + $0x118] sm:$0xff] %vm10117_vm13, %v9272_v58  ;;  %v4799_v30 = vsel %vm9276_vm0, %v9272_v58, 0.0  ;;  %vm10118_vm5 = vmmov %vm10105_vm2  ;;  %vm4950_vm13 = vcmask 57344  }
 0x23a   : > { %v4864_v55 = vadd.f32 %v4863_v37, %v4862_v47  ;;  %4041 = vst.msk [vmem:[%s8364_s18 + $0x110] sm:$0xff] %vm10118_vm5, %v4004_v11  ;;  %v4798_v38 = vsel %vm9280_vm6, %v4004_v11, 0.0  ;;  %vm10119_vm11 = vmmov %vm10105_vm2 }
 0x23b   : > { %v4867_v36 = vsel %vm10119_vm11, %v4798_v38, 0.0  ;;  %vm10120_vm3 = vmmov %vm10105_vm2 }
 0x23c   : > { %v4866_v54 = vadd.f32 %v4865_v32, %v4864_v55  ;;  %v4869_v2 = vsel %vm10120_vm3, %v4799_v30, 0.0  ;;  %vm10123_vm3 = vnez %v10039_v51 }
 0x23e   : > { %v4868_v35 = vadd.f32 %v4867_v36, %v4866_v54 }
 0x240   : > { %v4870_v29 = vadd.f32 %v4869_v2, %v4868_v35 }
 0x242   : > { %v4871_v57 = vrot.slane %v4870_v29, 4 }
 0x244   : > { %v4872_v49 = vadd.f32 %v4871_v57, %v4870_v29 }
 0x246   : > { %v4873_v34 = vrot.slane %v4872_v49, 2 }
 0x248   : > { %v4874_v25 = vadd.f32 %v4873_v34, %v4872_v49  ;;  %v10121_v49 = vld [vmem:[#allocation70_spill] sm:$0xff]  ;;  %v10122_v34 = vld [vmem:[#allocation8_spill] sm:$0xff] }
 0x24a   : > { %v4875_v47 = vrot.slane %v4874_v25, 1 }
 0x24c   : > { %v4876_v61 = vadd.f32 %v4875_v47, %v4874_v25  ;;  %v10129_v47 = vld [vmem:[#allocation71_spill] sm:$0xff] }
 0x24e   : > { %4951 = vst.msk [vmem:[%s211_s21] sm:$0x1] %vm4950_vm13, %v4876_v61  ;;  %v9302_v17 = vmul.f32 0.00390625, %v4876_v61  ;;  %v10130_v61 = vld [vmem:[#allocation2_spill] sm:$0xff] }
 0x250   : > { %v4892_v37 = vsub.f32 %v8830_v5, %v9302_v17  ;;  %v4894_v52 = vsub.f32 %v8880_v19, %v9302_v17  ;;  %v4895_v55 = vsub.f32 %v8848_v27, %v9302_v17  ;;  %v4896_v32 = vsub.f32 %v8925_v39, %v9302_v17  ;;  %v10182_v19 = vld [vmem:[#allocation20_spill] sm:$0xff] }
 0x251   : > { %v4897_v30 = vsub.f32 %v8895_v45, %v9302_v17  ;;  %v4898_v38 = vsub.f32 %v9001_v12, %v9302_v17  ;;  %v4899_v54 = vsub.f32 %v8961_v60, %v9302_v17  ;;  %v4900_v36 = vsub.f32 %v9053_v14, %v9302_v17  ;;  %v10185_v27 = vld [vmem:[#allocation32_spill] sm:$0xff] }
 0x252   : > { %v4901_v35 = vsub.f32 %v9023_v46, %v9302_v17  ;;  %v4902_v2 = vsub.f32 %v9087_v59, %v9302_v17  ;;  %v4903_v29 = vsub.f32 %v9068_v1, %v9302_v17  ;;  %v4904_v57 = vsub.f32 %v9131_v3, %v9302_v17 }
 0x253   : > { %v4905_v12 = vsub.f32 %v9112_v20, %v9302_v17  ;;  %v4906_v60 = vsub.f32 %v9169_v63, %v9302_v17  ;;  %v4907_v14 = vsub.f32 %v9157_v23, %v9302_v17  ;;  %v4908_v46 = vsub.f32 %v9208_v26, %v9302_v17 }
 0x254   : > { %v4909_v59 = vsub.f32 %v9193_v13, %v9302_v17  ;;  %v4910_v1 = vsub.f32 %v9256_v24, %v9302_v17  ;;  %v4911_v3 = vsub.f32 %v9242_v53, %v9302_v17  ;;  %v4912_v20 = vsub.f32 %v4004_v11, %v9302_v17 }
 0x255   : > { %v4913_v63 = vsub.f32 %v9272_v58, %v9302_v17  ;;  %v4878_v23 = vsub.f32 %v10121_v49, %v9302_v17  ;;  %v4879_v26 = vsub.f32 %v10122_v34, %v9302_v17  ;;  %v9351_v13 = vsel %vm8866_vm15, %v4898_v38, 0.0  ;;  %v10145_v34 = vld [vmem:[#allocation28_spill] sm:$0xff] }
 0x256   : > { %v9355_v24 = vsel %vm8856_vm1, %v4899_v54, 0.0  ;;  %v9359_v53 = vsel %vm8913_vm7, %v4900_v36, 0.0  ;;  %v9363_v58 = vsel %vm8903_vm12, %v4901_v35, 0.0  ;;  %v9367_v11 = vsel %vm8987_vm10, %v4902_v2, 0.0  ;;  %v10135_v35 = vld [vmem:[#allocation6_spill] sm:$0xff] }
 0x257   : > { %v9371_v40 = vsel %vm10123_vm3, %v4903_v29, 0.0  ;;  %v9375_v0 = vsel %vm9041_vm9, %v4904_v57, 0.0  ;;  %vm10124_vm15 = vnez %v10054_v43  ;;  %v9383_v16 = vsel %vm9076_vm14, %v4906_v60, 0.0  ;;  %v10137_v57 = vld [vmem:[#allocation14_spill] sm:$0xff]  ;;  %v10138_v60 = vld [vmem:[#allocation5_spill] sm:$0xff] }
 0x258   : > { %v9379_v42 = vsel %vm10124_vm15, %v4905_v12, 0.0  ;;  %vm10125_vm7 = vnez %v10065_v56  ;;  %v9391_v51 = vsel %vm9197_vm8, %v4908_v46, 0.0  ;;  %vm10126_vm1 = vnez %v10075_v62  ;;  %v10128_v62 = vld [vmem:[#allocation72_spill] sm:$0xff] }
 0x259   : > { %v9387_v28 = vsel %vm10125_vm7, %v4907_v14, 0.0  ;;  %v9395_v48 = vsel %vm10126_vm1, %v4909_v59, 0.0  ;;  %v9399_v43 = vsel %vm9246_vm4, %v4910_v1, 0.0  ;;  %vm10127_vm12 = vnez %v10100_v18  ;;  %v10132_v18 = vld [vmem:[#allocation4_spill] sm:$0xff]  ;;  %v10140_v59 = vld [vmem:[#allocation17_spill] sm:$0xff] }
 0x25a   : > { %v9403_v8 = vsel %vm10127_vm12, %v4911_v3, 0.0  ;;  %v9407_v56 = vsel %vm9280_vm6, %v4912_v20, 0.0  ;;  %v9411_v50 = vsel %vm9276_vm0, %v4913_v63, 0.0  ;;  %v4880_v25 = vsub.f32 %v10128_v62, %v9302_v17  ;;  %v10141_v3 = vld [vmem:[#allocation11_spill] sm:$0xff]  ;;  %vm10143_vm0 = vmmov %vm10105_vm2  ;;  %v10146_v62 = vld [vmem:[#allocation9_spill] sm:$0xff] }
 0x25b   : > { %v4881_v31 = vsub.f32 %v10129_v47, %v9302_v17  ;;  %vm10131_vm10 = vnez %v10130_v61  ;;  %vm10133_vm9 = vnez %v10132_v18  ;;  %v4882_v36 = vsub.f32 %v10134_v21, %v9302_v17  ;;  %vm10144_vm6 = vmmov %vm10143_vm0  ;;  %v10149_v18 = vld [vmem:[#allocation22_spill] sm:$0xff] }
 0x25c   : > { %v4914_v38 = vsel %vm10131_vm10, %v4878_v23, 0.0  ;;  %v4915_v54 = vsel %vm10133_vm9, %v4879_v26, 0.0  ;;  %vm10136_vm4 = vnez %v10135_v35  ;;  %v4883_v12 = vsub.f32 %v10137_v57, %v9302_v17  ;;  %vm10148_vm5 = vmmov %vm10143_vm0 }
 0x25d   : > { %v4916_v9 = vsel %vm10136_vm4, %v4880_v25, 0.0  ;;  %v4952_v2 = vmul.f32 %v4914_v38, %v4914_v38  ;;  %v4953_v29 = vmul.f32 %v4915_v54, %v4915_v54  ;;  %vm10139_vm14 = vnez %v10138_v60  ;;  %vm10151_vm3 = vmmov %vm10143_vm0 }
 0x25e   : > { %v4917_v14 = vsel %vm10139_vm14, %v4881_v31, 0.0  ;;  %v4954_v46 = vmul.f32 %v4916_v9, %v4916_v9  ;;  %v4884_v1 = vsub.f32 %v10140_v59, %v9302_v17  ;;  %vm10142_vm8 = vnez %v10141_v3  ;;  %v10152_v9 = vld [vmem:[#allocation18_spill] sm:$0xff]  ;;  %vm10155_vm7 = vmmov %vm10143_vm0 }
 0x25f   : > { %v4918_v20 = vsel %vm10142_vm8, %v4882_v36, 0.0  ;;  %v4955_v63 = vmul.f32 %v4917_v14, %v4917_v14  ;;  %v4988_v49 = vsel %vm10143_vm0, %v4952_v2, 0.0  ;;  %v4989_v23 = vsel %vm10144_vm6, %v4953_v29, 0.0  ;;  %v10153_v29 = vld [vmem:[#allocation13_spill] sm:$0xff]  ;;  %vm10157_vm12 = vmmov %vm10143_vm0 }
 0x260   : > { %v4885_v26 = vsub.f32 %v10145_v34, %v9302_v17  ;;  %vm10147_vm2 = vnez %v10146_v62  ;;  %v4990_v47 = vadd.f32 %v4989_v23, %v4988_v49  ;;  %v4956_v31 = vmul.f32 %v4918_v20, %v4918_v20  ;;  %v10158_v20 = vld [vmem:[#allocation35_spill] sm:$0xff]  ;;  %v10159_v49 = vld [vmem:[#allocation16_spill] sm:$0xff]  ;;  %vm10161_vm9 = vmmov %vm10143_vm0 }
 0x261   : > { %v4919_v25 = vsel %vm10147_vm2, %v4883_v12, 0.0  ;;  %v4991_v61 = vsel %vm10148_vm5, %v4954_v46, 0.0  ;;  %v4886_v38 = vsub.f32 %v8654_v41, %v9302_v17  ;;  %vm10150_vm11 = vnez %v10149_v18  ;;  %vm10163_vm14 = vmmov %vm10143_vm0 }
 0x262   : > { %v4920_v54 = vsel %vm10150_vm11, %v4884_v1, 0.0  ;;  %v4992_v21 = vadd.f32 %v4991_v61, %v4990_v47  ;;  %v4957_v36 = vmul.f32 %v4919_v25, %v4919_v25  ;;  %v4993_v35 = vsel %vm10151_vm3, %v4955_v63, 0.0  ;;  %vm10167_vm2 = vmmov %vm10143_vm0 }
 0x263   : > { %v4887_v2 = vsub.f32 %v10152_v9, %v9302_v17  ;;  %vm10154_vm15 = vnez %v10153_v29  ;;  %v4958_v60 = vmul.f32 %v4920_v54, %v4920_v54  ;;  %v4995_v14 = vsel %vm10155_vm7, %v4956_v31, 0.0  ;;  %vm10169_vm11 = vmmov %vm10143_vm0 }
 0x264   : > { %v4921_v57 = vsel %vm10154_vm15, %v4885_v26, 0.0  ;;  %v4994_v12 = vadd.f32 %v4993_v35, %v4992_v21  ;;  %v4888_v41 = vsub.f32 %v8706_v10, %v9302_v17  ;;  %vm10156_vm1 = vnez %v9888_v6  ;;  %vm10172_vm15 = vmmov %vm10143_vm0 }
 0x265   : > { %v4922_v46 = vsel %vm10156_vm1, %v4886_v38, 0.0  ;;  %v4959_v1 = vmul.f32 %v4921_v57, %v4921_v57  ;;  %v4997_v3 = vsel %vm10157_vm12, %v4957_v36, 0.0  ;;  %v4889_v63 = vsub.f32 %v10158_v20, %v9302_v17  ;;  %v10164_v38 = vld [vmem:[#allocation24_spill] sm:$0xff]  ;;  %vm10175_vm1 = vmmov %vm10143_vm0  ;;  %v10176_v20 = vld [vmem:[#allocation39_spill] sm:$0xff] }
 0x266   : > { %v4996_v59 = vadd.f32 %v4995_v14, %v4994_v12  ;;  %vm10160_vm10 = vnez %v10159_v49  ;;  %v4960_v26 = vmul.f32 %v4922_v46, %v4922_v46  ;;  %v4999_v62 = vsel %vm10161_vm9, %v4958_v60, 0.0  ;;  %v10170_v60 = vld [vmem:[#allocation26_spill] sm:$0xff] }
 0x267   : > { %v4923_v23 = vsel %vm10160_vm10, %v4887_v2, 0.0  ;;  %v4890_v10 = vsub.f32 %v8778_v22, %v9302_v17  ;;  %vm10162_vm4 = vnez %v9911_v33  ;;  %v5001_v31 = vsel %vm10163_vm14, %v4959_v1, 0.0  ;;  %vm10178_vm10 = vmmov %vm10143_vm0 }
 0x268   : > { %v4998_v34 = vadd.f32 %v4997_v3, %v4996_v59  ;;  %v4924_v6 = vsel %vm10162_vm4, %v4888_v41, 0.0  ;;  %v4961_v47 = vmul.f32 %v4923_v23, %v4923_v23  ;;  %v4891_v61 = vsub.f32 %v8742_v15, %v9302_v17  ;;  %v10173_v59 = vld [vmem:[#allocation34_spill] sm:$0xff]  ;;  %vm10181_vm4 = vmmov %vm10143_vm0 }
 0x269   : > { %vm10165_vm8 = vnez %v10164_v38  ;;  %v4962_v21 = vmul.f32 %v4924_v6, %v4924_v6  ;;  %v5003_v36 = vsel %vm10143_vm0, %v4960_v26, 0.0  ;;  %vm10166_vm6 = vnez %v9932_v7  ;;  %v10179_v23 = vld [vmem:[#allocation42_spill] sm:$0xff] }
 0x26a   : > { %v5000_v25 = vadd.f32 %v4999_v62, %v4998_v34  ;;  %v4925_v18 = vsel %vm10165_vm8, %v4889_v63, 0.0  ;;  %v4926_v22 = vsel %vm10166_vm6, %v4890_v10, 0.0  ;;  %v5005_v9 = vsel %vm10167_vm2, %v4961_v47, 0.0  ;;  %vm10184_vm8 = vmmov %vm10143_vm0 }
 0x26b   : > { %v4963_v33 = vmul.f32 %v4925_v18, %v4925_v18  ;;  %v4893_v2 = vsub.f32 %v8800_v4, %v9302_v17  ;;  %vm10168_vm5 = vnez %v9924_v44  ;;  %v4964_v57 = vmul.f32 %v4926_v22, %v4926_v22  ;;  %vm10187_vm6 = vmmov %vm10175_vm1 }
 0x26c   : > { %v5002_v54 = vadd.f32 %v5001_v31, %v5000_v25  ;;  %v4927_v15 = vsel %vm10168_vm5, %v4891_v61, 0.0  ;;  %v5007_v12 = vsel %vm10169_vm11, %v4962_v21, 0.0  ;;  %vm10171_vm3 = vnez %v10170_v60  ;;  %vm10188_vm2 = vmmov %vm10175_vm1 }
 0x26d   : > { %v4928_v7 = vsel %vm10171_vm3, %v4892_v37, 0.0  ;;  %v4965_v41 = vmul.f32 %v4927_v15, %v4927_v15  ;;  %v5009_v46 = vsel %vm10172_vm15, %v4963_v33, 0.0  ;;  %vm10174_vm7 = vnez %v10173_v59  ;;  %vm10189_vm5 = vmmov %vm10175_vm1 }
 0x26e   : > { %v5004_v35 = vadd.f32 %v5003_v36, %v5002_v54  ;;  %v4929_v4 = vsel %vm10174_vm7, %v4893_v2, 0.0  ;;  %v4966_v44 = vmul.f32 %v4928_v7, %v4928_v7  ;;  %v5011_v3 = vsel %vm10175_vm1, %v4964_v57, 0.0  ;;  %vm10190_vm11 = vmmov %vm10175_vm1 }
 0x26f   : > { %vm10177_vm12 = vnez %v10176_v20  ;;  %v4967_v49 = vmul.f32 %v4929_v4, %v4929_v4  ;;  %v5013_v37 = vsel %vm10178_vm10, %v4965_v41, 0.0  ;;  %vm10180_vm9 = vnez %v10179_v23  ;;  %vm10191_vm3 = vmmov %vm10175_vm1 }
 0x270   : > { %v5006_v29 = vadd.f32 %v5005_v9, %v5004_v35  ;;  %v4930_v5 = vsel %vm10177_vm12, %v4894_v52, 0.0  ;;  %v4931_v34 = vsel %vm10180_vm9, %v4895_v55, 0.0  ;;  %v5015_v10 = vsel %vm10181_vm4, %v4966_v44, 0.0  ;;  %vm10192_vm15 = vmmov %vm10175_vm1 }
 0x271   : > { %v4968_v62 = vmul.f32 %v4930_v5, %v4930_v5  ;;  %vm10183_vm14 = vnez %v10182_v19  ;;  %v4969_v25 = vmul.f32 %v4931_v34, %v4931_v34  ;;  %v5017_v47 = vsel %vm10184_vm8, %v4967_v49, 0.0  ;;  %vm10193_vm7 = vmmov %vm10175_vm1 }
 0x272   : > { %v5008_v14 = vadd.f32 %v5007_v12, %v5006_v29  ;;  %v4932_v52 = vsel %vm10183_vm14, %v4896_v32, 0.0  ;;  %vm10186_vm0 = vnez %v10185_v27  ;;  %v4972_v32 = vmul.f32 %v9351_v13, %v9351_v13  ;;  %vm10194_vm12 = vmmov %vm10175_vm1 }
 0x273   : > { %v4933_v55 = vsel %vm10186_vm0, %v4897_v30, 0.0  ;;  %v4970_v61 = vmul.f32 %v4932_v52, %v4932_v52  ;;  %v5019_v38 = vsel %vm10187_vm6, %v4968_v62, 0.0  ;;  %v5021_v39 = vsel %vm10188_vm2, %v4969_v25, 0.0  ;;  %vm10195_vm10 = vmmov %vm10175_vm1 }
 0x274   : > { %v5010_v1 = vadd.f32 %v5009_v46, %v5008_v14  ;;  %v4971_v54 = vmul.f32 %v4933_v55, %v4933_v55  ;;  %v4973_v45 = vmul.f32 %v9355_v24, %v9355_v24  ;;  %v4974_v35 = vmul.f32 %v9359_v53, %v9359_v53  ;;  %vm10196_vm9 = vmmov %vm10175_vm1 }
 0x275   : > { %v5023_v36 = vsel %vm10189_vm5, %v4970_v61, 0.0  ;;  %v5027_v33 = vsel %vm10191_vm3, %v4972_v32, 0.0  ;;  %v4975_v2 = vmul.f32 %v9363_v58, %v9363_v58  ;;  %v4976_v29 = vmul.f32 %v9367_v11, %v9367_v11  ;;  %vm10197_vm4 = vmmov %vm10175_vm1 }
 0x276   : > { %v5012_v63 = vadd.f32 %v5011_v3, %v5010_v1  ;;  %v5025_v17 = vsel %vm10190_vm11, %v4971_v54, 0.0  ;;  %v5029_v13 = vsel %vm10192_vm15, %v4973_v45, 0.0  ;;  %v5031_v24 = vsel %vm10193_vm7, %v4974_v35, 0.0  ;;  %vm10198_vm14 = vmmov %vm10175_vm1 }
 0x277   : > { %v4977_v12 = vmul.f32 %v9371_v40, %v9371_v40  ;;  %v5033_v53 = vsel %vm10175_vm1, %v4975_v2, 0.0  ;;  %v4978_v7 = vmul.f32 %v9375_v0, %v9375_v0  ;;  %v5035_v58 = vsel %vm10194_vm12, %v4976_v29, 0.0  ;;  %vm10199_vm8 = vmmov %vm10175_vm1 }
 0x278   : > { %v5014_v26 = vadd.f32 %v5013_v37, %v5012_v63  ;;  %v4979_v41 = vmul.f32 %v9379_v42, %v9379_v42  ;;  %v4980_v59 = vmul.f32 %v9383_v16, %v9383_v16  ;;  %v4981_v1 = vmul.f32 %v9387_v28, %v9387_v28  ;;  %vm10200_vm0 = vmmov %vm10175_vm1 }
 0x279   : > { %v5037_v11 = vsel %vm10195_vm10, %v4977_v12, 0.0  ;;  %v5039_v40 = vsel %vm10196_vm9, %v4978_v7, 0.0  ;;  %v4982_v3 = vmul.f32 %v9391_v51, %v9391_v51  ;;  %v4983_v5 = vmul.f32 %v9395_v48, %v9395_v48  ;;  %vm10201_vm6 = vmmov %vm10200_vm0 }
 0x27a   : > { %v5016_v6 = vadd.f32 %v5015_v10, %v5014_v26  ;;  %v5041_v0 = vsel %vm10197_vm4, %v4979_v41, 0.0  ;;  %v5043_v42 = vsel %vm10198_vm14, %v4980_v59, 0.0  ;;  %v5045_v16 = vsel %vm10199_vm8, %v4981_v1, 0.0  ;;  %vm10202_vm2 = vmmov %vm10200_vm0 }
 0x27b   : > { %v4984_v49 = vmul.f32 %v9399_v43, %v9399_v43  ;;  %v5047_v28 = vsel %vm10200_vm0, %v4982_v3, 0.0  ;;  %v4985_v23 = vmul.f32 %v9403_v8, %v9403_v8  ;;  %v5049_v51 = vsel %vm10201_vm6, %v4983_v5, 0.0  ;;  %vm10203_vm5 = vmmov %vm10200_vm0 }
 0x27c   : > { %v5018_v31 = vadd.f32 %v5017_v47, %v5016_v6  ;;  %v4986_v26 = vmul.f32 %v9407_v56, %v9407_v56  ;;  %v4987_v10 = vmul.f32 %v9411_v50, %v9411_v50  ;;  %vm10204_vm11 = vmmov %vm10200_vm0 }
 0x27d   : > { %v5051_v48 = vsel %vm10202_vm2, %v4984_v49, 0.0  ;;  %v5053_v43 = vsel %vm10203_vm5, %v4985_v23, 0.0  ;;  %vm10205_vm3 = vmmov %vm10200_vm0 }
 0x27e   : > { %v5020_v18 = vadd.f32 %v5019_v38, %v5018_v31  ;;  %v5055_v52 = vsel %vm10204_vm11, %v4986_v26, 0.0  ;;  %v5057_v8 = vsel %vm10205_vm3, %v4987_v10, 0.0 }
 0x280   : > { %v5022_v21 = vadd.f32 %v5021_v39, %v5020_v18 }
 0x282   : > { %v5024_v22 = vadd.f32 %v5023_v36, %v5022_v21 }
 0x284   : > { %v5026_v30 = vadd.f32 %v5025_v17, %v5024_v22 }
 0x286   : > { %v5028_v9 = vadd.f32 %v5027_v33, %v5026_v30 }
 0x288   : > { %v5030_v15 = vadd.f32 %v5029_v13, %v5028_v9 }
 0x28a   : > { %v5032_v57 = vadd.f32 %v5031_v24, %v5030_v15 }
 0x28c   : > { %v5034_v60 = vadd.f32 %v5033_v53, %v5032_v57 }
 0x28e   : > { %v5036_v14 = vadd.f32 %v5035_v58, %v5034_v60 }
 0x290   : > { %v5038_v46 = vadd.f32 %v5037_v11, %v5036_v14 }
 0x292   : > { %v5040_v4 = vadd.f32 %v5039_v40, %v5038_v46 }
 0x294   : > { %v5042_v44 = vadd.f32 %v5041_v0, %v5040_v4 }
 0x296   : > { %v5044_v20 = vadd.f32 %v5043_v42, %v5042_v44 }
 0x298   : > { %v5046_v63 = vadd.f32 %v5045_v16, %v5044_v20 }
 0x29a   : > { %v5048_v37 = vadd.f32 %v5047_v28, %v5046_v63 }
 0x29c   : > { %v5050_v34 = vadd.f32 %v5049_v51, %v5048_v37 }
 0x29e   : > { %v5052_v62 = vadd.f32 %v5051_v48, %v5050_v34 }
 0x2a0   : > { %v5054_v19 = vadd.f32 %v5053_v43, %v5052_v62 }
 0x2a2   : > { %v5056_v6 = vadd.f32 %v5055_v52, %v5054_v19 }
 0x2a4   : > { %v5058_v25 = vadd.f32 %v5057_v8, %v5056_v6 }
 0x2a6   : > { %v5059_v47 = vrot.slane %v5058_v25, 4 }
 0x2a8   : > { %v5060_v27 = vadd.f32 %v5059_v47, %v5058_v25 }
 0x2aa   : > { %v5061_v55 = vrot.slane %v5060_v27, 2 }
 0x2ac   : > { %v5062_v31 = vadd.f32 %v5061_v55, %v5060_v27 }
 0x2ae   : > { %v5063_v56 = vrot.slane %v5062_v31, 1 }
 0x2b0   : > { %v5064_v61 = vadd.f32 %v5063_v56, %v5062_v31 }
 0x2b2   : > { %5065 = vst.msk [vmem:[%s214_s24] sm:$0x1] %vm4950_vm13, %v5064_v61 }
 0x2b3 PF: > { %s15_s15 = sadd.s32 1, %s6440_s15  }
 0x2b4   : > { %p12_p4 = scmp.ge.s32.totalorder %s15_s15, 4  }
 0x2b6   :  { %14 = sbr.rel (!%p12_p4) target bundleno = 1 (0x1), region = 82 }

</bundles_post_ra>
